<compile_context>
chip_gen: v7x
topology: tpu7x:2x2x1
jax: 0.10.0
libtpu: 0.0.40
codegen_flags: <defaults>
</compile_context>

<pallas_src>
import functools

import jax
import jax.numpy as jnp
from jax.experimental import pallas as pl
from jax.experimental.pallas import tpu as pltpu

BN_EPS = 1e-5  # nn.BatchNorm3d default


# ---------------------------------------------------------------------------
# Generation-aware VMEM sizing (v7x: 64 MiB VMEM; v5e/v6e: 128 MiB)
# ---------------------------------------------------------------------------
def _tpu_vmem_bytes():
    try:
        info = pltpu.get_tpu_info()
        for attr in ("vmem_capacity_bytes", "vmem_size_bytes", "vmem_bytes"):
            v = getattr(info, attr, None)
            if v:
                return int(v)
    except Exception:
        pass
    return 128 * 1024 * 1024


_VMEM_BYTES = _tpu_vmem_bytes()
_VMEM_LIMIT = min(48 * 1024 * 1024, _VMEM_BYTES // 2)        # 48 MiB v5e/v6e, 32 MiB v7x
_ROW_TILE_BUDGET = max(2 * 1024 * 1024, _VMEM_BYTES // 16)   # ~8 MiB v5e/v6e, 4 MiB v7x


def _round_up(x, m):
    return (x + m - 1) // m * m


def _sublane_multiple(dtype):
    # native second-minor tiling: 8 for f32, 16 for bf16, 32 for int8/fp8
    return max(8, 32 // jnp.dtype(dtype).itemsize)


# ---------------------------------------------------------------------------
# Pallas kernels
# ---------------------------------------------------------------------------
def _conv_branch_kernel(x_ref, w_ref, y_ref, stats_ref, *, dil):
    # Grid: (N,).  One batch element per step; all output depth slices fused into M.
    #   x_ref:     [Dpad, HW, 9*Cin]  bf16  (in-plane 9-tap patches, depth-padded)
    #   w_ref:     [3, 9*Cin, Cout]   bf16  (one [9*Cin, Cout] slab per depth tap)
    #   y_ref:     [D*HW, Cout]       f32   pre-BN conv output
    #   stats_ref: [2, Cout]          f32   per-n [sum, sum_sq] over all rows
    dpad, hw, k9 = x_ref.shape
    d_out = dpad - 2 * dil
    m = d_out * hw

    slab = x_ref[...]                                         # [Dpad, HW, 9*Cin]
    # Depth-tap reduction as 3 unrolled fat matmuls (M = D*HW, K = 9*Cin).
    # (Leading-dim slices + major-dim collapse are free relayouts in Mosaic;
    #  this avoids an in-kernel lane-dim concat for K = 27*Cin.)
    acc = jnp.dot(slab[0:d_out].reshape(m, k9), w_ref[0],
                  preferred_element_type=jnp.float32)
    for kd in (1, 2):
        p = slab[kd * dil:kd * dil + d_out].reshape(m, k9)
        acc = acc + jnp.dot(p, w_ref[kd], preferred_element_type=jnp.float32)

    y_ref[...] = acc
    stats_ref[0:1, :] = jnp.sum(acc, axis=0, keepdims=True)
    stats_ref[1:2, :] = jnp.sum(acc * acc, axis=0, keepdims=True)


def _bn_relu_kernel(y_ref, s_ref, t_ref, o_ref):
    # Scale/shift + ReLU:  max(y * scale + shift, 0), cast to output dtype.
    #   y_ref: [TR, L] f32;  s_ref/t_ref: [1, L] f32;  o_ref: [TR, L] out dtype.
    o_ref[...] = jnp.maximum(y_ref[...] * s_ref[...] + t_ref[...],
                             0.0).astype(o_ref.dtype)


# ---------------------------------------------------------------------------
# Glue (plain JAX) + pallas_call wrappers
# ---------------------------------------------------------------------------
def maxpool3d_2x2(x):
    """x: [N, D, H, W, C] (channels-last), even D/H/W -> [N, D/2, H/2, W/2, C].

    Fused pairwise maxima (no [8, M, C] stack materialization)."""
    m = jnp.maximum(x[:, 0::2], x[:, 1::2])
    m = jnp.maximum(m[:, :, 0::2], m[:, :, 1::2])
    return jnp.maximum(m[:, :, :, 0::2], m[:, :, :, 1::2])


def _im2col_hw(x, d):
    """Single-pass in-plane (kh, kw) 3x3 dilated patches in bf16.

    One pad over (D, H, W) together (no second depth pad).
    x: [N, D, H, W, C] -> [N, D+2d, H*W, 9*C], tap order kh-major/kw-minor,
    channel minor, so out[n, z] = sum_kd patches[n, z + kd*d] @ W[kd]."""
    N, D, H, W, C = x.shape
    xb = x.astype(jnp.bfloat16)
    xp = jnp.pad(xb, ((0, 0), (d, d), (d, d), (d, d), (0, 0)))
    slabs = []
    for kh in range(3):
        for kw in range(3):
            slabs.append(xp[:, :, kh * d:kh * d + H, kw * d:kw * d + W, :])
    return jnp.concatenate(slabs, axis=-1).reshape(N, D + 2 * d, H * W, 9 * C)


def _conv_pass1(patches, w3, dil):
    """Conv3d(k=3, dilation=dil, padding=dil) without bias + BN partial statistics.

    patches: [N, Dpad, HW, 9*Cin] bf16;  w3: [3, 9*Cin, Cout] bf16.
    Returns y_pre [N, D*HW, Cout] f32 and stats [N, 2, Cout] f32 ([sum, sum_sq])."""
    N, Dpad, HW, K9 = patches.shape
    Cout = w3.shape[-1]
    D = Dpad - 2 * dil
    M = D * HW

    # TODO(synk): for large D*H*W add a z-tile grid axis (manual overlap DMA);
    # at these shapes the whole per-n slab (~64 KB) trivially fits VMEM.
    flops = 2 * N * 3 * M * K9 * Cout
    bytes_acc = (N * (Dpad * HW * K9 * 2 + M * Cout * 4 + 2 * Cout * 4)
                 + 3 * K9 * Cout * 2)

    y_pre, stats = pl.pallas_call(
        functools.partial(_conv_branch_kernel, dil=dil),
        grid=(N,),
        in_specs=[
            pl.BlockSpec((None, Dpad, HW, K9), lambda n: (n, 0, 0, 0)),
            pl.BlockSpec((3, K9, Cout), lambda n: (0, 0, 0)),   # VMEM-resident
        ],
        out_specs=(
            pl.BlockSpec((None, M, Cout), lambda n: (n, 0, 0)),
            pl.BlockSpec((None, 2, Cout), lambda n: (n, 0, 0)),
        ),
        out_shape=(
            jax.ShapeDtypeStruct((N, M, Cout), jnp.float32),
            jax.ShapeDtypeStruct((N, 2, Cout), jnp.float32),
        ),
        compiler_params=pltpu.CompilerParams(
            dimension_semantics=("parallel",),      # N=2 blocks -> both v7x TCs
            vmem_limit_bytes=_VMEM_LIMIT,
        ),
        cost_estimate=pl.CostEstimate(flops=flops, transcendentals=0,
                                      bytes_accessed=bytes_acc),
    )(patches, w3)
    return y_pre, stats


def _bn_relu_pass2(y3, s_row, t_row, out_dtype):
    """y3: [N, R, L] f32.  scale/shift rows: [1, L] f32.  Returns [N, R, L] out_dtype."""
    N, R, L = y3.shape
    out_itemsize = jnp.dtype(out_dtype).itemsize
    sub = _sublane_multiple(out_dtype)

    # Double-buffered input + output blocks per row.
    row_bytes = 2 * L * (4 + out_itemsize)
    cap = max(sub, (_ROW_TILE_BUDGET // max(1, row_bytes)) // sub * sub)
    if R <= cap:
        tr, r_pad = R, R                 # full-extent block: always legal
    else:
        tr = cap                         # multiple of the dtype's sublane tile
        r_pad = _round_up(R, tr)         # pad rows instead of silently blowing budget
    if r_pad != R:
        y3 = jnp.pad(y3, ((0, 0), (0, r_pad - R), (0, 0)))

    out = pl.pallas_call(
        _bn_relu_kernel,
        grid=(N, r_pad // tr),
        in_specs=[
            pl.BlockSpec((None, tr, L), lambda n, i: (n, i, 0)),
            pl.BlockSpec((1, L), lambda n, i: (0, 0)),
            pl.BlockSpec((1, L), lambda n, i: (0, 0)),
        ],
        out_specs=pl.BlockSpec((None, tr, L), lambda n, i: (n, i, 0)),
        out_shape=jax.ShapeDtypeStruct((N, r_pad, L), out_dtype),
        compiler_params=pltpu.CompilerParams(
            dimension_semantics=("parallel", "parallel"),
            vmem_limit_bytes=_VMEM_LIMIT,
        ),
        cost_estimate=pl.CostEstimate(
            flops=3 * N * r_pad * L, transcendentals=0,
            bytes_accessed=N * r_pad * L * (4 + out_itemsize) + 2 * L * 4),
    )(y3, s_row, t_row)
    return out if r_pad == R else out[:, :R]


def conv3d_bn_relu(x, p, dil, out_dtype):
    """Fused Conv3d(k=3, s=1, padding=dil, dilation=dil) + BatchNorm(train) + ReLU.

    x: [N, D, H, W, Cin] (f32 or bf16, channels-last). Returns [N, D, H, W, Cout]."""
    N, D, H, W, Cin = x.shape
    Cout = p["w3"].shape[-1]
    HW = H * W

    patches = _im2col_hw(x, dil)                         # [N, D+2d, HW, 9*Cin] bf16
    # Conv bias dropped: training-mode BN subtracts the batch mean, which absorbs
    # any per-channel constant, so the forward output is unchanged.
    y_pre, stats = _conv_pass1(patches, p["w3"].astype(jnp.bfloat16), dil)

    # Finalize BN batch statistics (tiny [N,2,Cout] reduction, plain JAX).  Biased
    # variance, matching PyTorch's training-mode normalization.
    s = jnp.sum(stats, axis=0)                           # [2, Cout]
    count = N * D * HW
    mean = s[0] / count
    var = jnp.maximum(s[1] / count - mean * mean, 0.0)
    scale = p["gamma"] * jax.lax.rsqrt(var + BN_EPS)
    shift = p["beta"] - mean * scale

    if Cout < 128:
        # Lane-densify: fold HW into the lane axis so stores are unmasked.
        L = HW * Cout
        y3 = y_pre.reshape(N, D, L)
        s_row = jnp.tile(scale, HW).reshape(1, L)
        t_row = jnp.tile(shift, HW).reshape(1, L)
    else:
        # Already lane-dense; avoid the HW-tiled broadcast rows.
        L = Cout
        y3 = y_pre
        s_row = scale.reshape(1, L)
        t_row = shift.reshape(1, L)

    y = _bn_relu_pass2(y3, s_row, t_row, out_dtype)
    return y.reshape(N, D, H, W, Cout)


# ---------------------------------------------------------------------------
# Parameter construction (deterministic, synthetic)
# ---------------------------------------------------------------------------
def make_conv_params(key, cin, cout):
    kw, kb = jax.random.split(key)
    # Weight stored as [3 (kd), 9*cin ((kh*3+kw)*cin + c), cout]
    # i.e. PyTorch weight[o, c, kd, kh, kw] -> w3[kd, (kh*3+kw)*cin + c, o].
    w3 = jax.random.normal(kw, (3, 9 * cin, cout), jnp.float32) * (27.0 * cin) ** -0.5
    b = jax.random.normal(kb, (cout,), jnp.float32) * 0.01
    return dict(w3=w3, b=b,
                gamma=jnp.ones((cout,), jnp.float32),   # BatchNorm3d default init
                beta=jnp.zeros((cout,), jnp.float32))


def make_down_params(key, in_ch, out_ch, dilation):
    params = []
    for _ in dilation:
        k1, k2, key = jax.random.split(key, 3)
        params.append(dict(conv_a=make_conv_params(k1, in_ch, out_ch),
                           conv_b=make_conv_params(k2, out_ch, out_ch)))
    return params


# ---------------------------------------------------------------------------
# Down forward
# ---------------------------------------------------------------------------
@functools.partial(jax.jit, static_argnames=("dilation",))
def down_forward(x_ncdhw, params, dilation):
    """x_ncdhw: [N, Cin, D, H, W].  Returns [N, 3*out_ch, D/2, H/2, W/2] (NCDHW)."""
    x = jnp.transpose(x_ncdhw, (0, 2, 3, 4, 1))   # -> NDHWC
    xp = maxpool3d_2x2(x)                         # MaxPool3d(2, 2)

    outs = []
    for p, d in zip(params, dilation):
        # bf16 intermediate between the two convs (it gets bf16-cast for the next
        # im2col anyway); final branch output stays f32 for PyTorch parity.
        h = conv3d_bn_relu(xp, p["conv_a"], d, jnp.bfloat16)
        outs.append(conv3d_bn_relu(h, p["conv_b"], d, jnp.float32))

    out = jnp.concatenate(outs, axis=-1)          # cat along channels (glue)
    return jnp.transpose(out, (0, 4, 1, 2, 3))    # back to NCDHW for PyTorch parity


# ---------------------------------------------------------------------------
# Pure-JAX reference (for correctness validation only)
# ---------------------------------------------------------------------------
@functools.partial(jax.jit, static_argnames=("dilation",))
def _reference_down(x_ncdhw, params, dilation):
    x = jnp.transpose(x_ncdhw, (0, 2, 3, 4, 1))
    xp = maxpool3d_2x2(x)

    def conv_bn_relu_ref(h, p, d):
        cin = h.shape[-1]
        cout = p["w3"].shape[-1]
        w = p["w3"].reshape(3, 3, 3, cin, cout)   # DHWIO
        y = jax.lax.conv_general_dilated(
            h, w, window_strides=(1, 1, 1), padding=[(d, d)] * 3,
            rhs_dilation=(d, d, d),
            dimension_numbers=("NDHWC", "DHWIO", "NDHWC"),
            precision=jax.lax.Precision.HIGHEST,
        ) + p["b"]
        mean = jnp.mean(y, axis=(0, 1, 2, 3))
        var = jnp.mean((y - mean) ** 2, axis=(0, 1, 2, 3))
        yn = (y - mean) * jax.lax.rsqrt(var + BN_EPS) * p["gamma"] + p["beta"]
        return jnp.maximum(yn, 0.0)

    outs = []
    for p, d in zip(params, dilation):
        hh = conv_bn_relu_ref(xp, p["conv_a"], d)
        outs.append(conv_bn_relu_ref(hh, p["conv_b"], d))
    out = jnp.concatenate(outs, axis=-1)
    return jnp.transpose(out, (0, 4, 1, 2, 3))


if __name__ == "__main__":
    key = jax.random.PRNGKey(0)
    kx, kp = jax.random.split(key)

    N, in_ch, out_ch = 2, 4, 4
    D = H = W = 16
    dilation = (1, 2, 3)

    x = jax.random.normal(kx, (N, in_ch, D, H, W), jnp.float32)
    params = make_down_params(kp, in_ch, out_ch, dilation)

    out = down_forward(x, params, dilation)
    jax.block_until_ready(out)
    assert out.shape == (N, 3 * out_ch, D // 2, H // 2, W // 2), out.shape

    # Validate against a pure-JAX reference.  Loose tolerance: matmul operands and
    # the inter-conv activation are bf16, so expect ~1e-2-level deviation from f32.
    ref = _reference_down(x, params, dilation)
    err = float(jnp.max(jnp.abs(out - ref)))
    assert err < 0.25, f"max abs error vs reference too large: {err}"

    # TODO(synk): BatchNorm running-stat updates (a training-mode side effect) are
    # not modeled; they do not affect the forward output.
    print("KERNEL_OK")
</pallas_src>

<mosaic_0001>
module attributes {stable_mosaic.version = 11 : i64} {
  func.func @_conv_branch_kernel(%arg0: i32, %arg1: memref<1x14x64x36xbf16, #tpu.memory_space<vmem>>, %arg2: memref<3x36x4xbf16, #tpu.memory_space<vmem>>, %arg3: memref<1x512x4xf32, #tpu.memory_space<vmem>>, %arg4: memref<1x2x4xf32, #tpu.memory_space<vmem>>) attributes {dimension_semantics = [#tpu.dimension_semantics<parallel>], iteration_bounds = array<i64: 2>, scalar_prefetch = 0 : i64, scratch_operands = 0 : i64, tpu.core_type = #tpu.core_type<tc>, window_params = [{transform_indices = @transform_0, window_bounds = array<i64: 1, 14, 64, 36>}, {pipeline_mode = #tpu.pipeline_mode<synchronous>, transform_indices = @transform_1, window_bounds = array<i64: 3, 36, 4>}, {transform_indices = @transform_2, window_bounds = array<i64: 1, 512, 4>}, {transform_indices = @transform_3, window_bounds = array<i64: 1, 2, 4>}]} {
    %c0 = arith.constant 0 : index
    %c0_0 = arith.constant 0 : index
    %c0_1 = arith.constant 0 : index
    %c0_2 = arith.constant 0 : index
    %0 = vector.load %arg1[%c0, %c0_0, %c0_1, %c0_2] : memref<1x14x64x36xbf16, #tpu.memory_space<vmem>>, vector<1x14x64x36xbf16>
    %1 = vector.shape_cast %0 : vector<1x14x64x36xbf16> to vector<14x64x36xbf16>
    %2 = vector.extract_strided_slice %1 {offsets = [0, 0, 0], sizes = [8, 64, 36], strides = [1, 1, 1]} : vector<14x64x36xbf16> to vector<8x64x36xbf16>
    %3 = vector.shape_cast %2 : vector<8x64x36xbf16> to vector<512x36xbf16>
    %c0_3 = arith.constant 0 : index
    %c0_4 = arith.constant 0 : index
    %c0_5 = arith.constant 0 : index
    %4 = vector.load %arg2[%c0_3, %c0_4, %c0_5] : memref<3x36x4xbf16, #tpu.memory_space<vmem>>, vector<1x36x4xbf16>
    %5 = vector.shape_cast %4 : vector<1x36x4xbf16> to vector<36x4xbf16>
    %cst = arith.constant dense<0.000000e+00> : vector<512x4xf32>
    %6 = tpu.matmul %3, %5, %cst {dimension_numbers = #tpu.dot_dimension_numbers<[1], [0], [0], [1], [0, 0, 1, 1], [], []>} : vector<512x36xbf16>, vector<36x4xbf16>, vector<512x4xf32> -> vector<512x4xf32>
    %7 = vector.extract_strided_slice %1 {offsets = [3, 0, 0], sizes = [8, 64, 36], strides = [1, 1, 1]} : vector<14x64x36xbf16> to vector<8x64x36xbf16>
    %8 = vector.shape_cast %7 : vector<8x64x36xbf16> to vector<512x36xbf16>
    %c1 = arith.constant 1 : index
    %c0_6 = arith.constant 0 : index
    %c0_7 = arith.constant 0 : index
    %9 = vector.load %arg2[%c1, %c0_6, %c0_7] : memref<3x36x4xbf16, #tpu.memory_space<vmem>>, vector<1x36x4xbf16>
    %10 = vector.shape_cast %9 : vector<1x36x4xbf16> to vector<36x4xbf16>
    %cst_8 = arith.constant dense<0.000000e+00> : vector<512x4xf32>
    %11 = tpu.matmul %8, %10, %cst_8 {dimension_numbers = #tpu.dot_dimension_numbers<[1], [0], [0], [1], [0, 0, 1, 1], [], []>} : vector<512x36xbf16>, vector<36x4xbf16>, vector<512x4xf32> -> vector<512x4xf32>
    %12 = arith.addf %6, %11 : vector<512x4xf32>
    %13 = vector.extract_strided_slice %1 {offsets = [6, 0, 0], sizes = [8, 64, 36], strides = [1, 1, 1]} : vector<14x64x36xbf16> to vector<8x64x36xbf16>
    %14 = vector.shape_cast %13 : vector<8x64x36xbf16> to vector<512x36xbf16>
    %c2 = arith.constant 2 : index
    %c0_9 = arith.constant 0 : index
    %c0_10 = arith.constant 0 : index
    %15 = vector.load %arg2[%c2, %c0_9, %c0_10] : memref<3x36x4xbf16, #tpu.memory_space<vmem>>, vector<1x36x4xbf16>
    %16 = vector.shape_cast %15 : vector<1x36x4xbf16> to vector<36x4xbf16>
    %cst_11 = arith.constant dense<0.000000e+00> : vector<512x4xf32>
    %17 = tpu.matmul %14, %16, %cst_11 {dimension_numbers = #tpu.dot_dimension_numbers<[1], [0], [0], [1], [0, 0, 1, 1], [], []>} : vector<512x36xbf16>, vector<36x4xbf16>, vector<512x4xf32> -> vector<512x4xf32>
    %18 = arith.addf %12, %17 : vector<512x4xf32>
    %c0_12 = arith.constant 0 : index
    %c0_13 = arith.constant 0 : index
    %c0_14 = arith.constant 0 : index
    %19 = vector.load %arg3[%c0_12, %c0_13, %c0_14] : memref<1x512x4xf32, #tpu.memory_space<vmem>>, vector<1x512x4xf32>
    %20 = vector.shape_cast %19 : vector<1x512x4xf32> to vector<512x4xf32>
    %21 = vector.shape_cast %18 : vector<512x4xf32> to vector<1x512x4xf32>
    tpu.vector_store %arg3[%c0_12, %c0_13, %c0_14], %21 {strides = array<i32>} : memref<1x512x4xf32, #tpu.memory_space<vmem>>, vector<1x512x4xf32>,
    %cst_15 = arith.constant dense<0.000000e+00> : vector<4xf32>
    %22 = vector.multi_reduction <add>, %18, %cst_15 [0] : vector<512x4xf32> to vector<4xf32>
    %23 = vector.shape_cast %22 : vector<4xf32> to vector<1x4xf32>
    %c0_16 = arith.constant 0 : index
    %c0_17 = arith.constant 0 : index
    %c0_18 = arith.constant 0 : index
    %24 = vector.load %arg4[%c0_16, %c0_17, %c0_18] : memref<1x2x4xf32, #tpu.memory_space<vmem>>, vector<1x1x4xf32>
    %25 = vector.shape_cast %24 : vector<1x1x4xf32> to vector<1x4xf32>
    %26 = vector.shape_cast %23 : vector<1x4xf32> to vector<1x1x4xf32>
    tpu.vector_store %arg4[%c0_16, %c0_17, %c0_18], %26 {strides = array<i32>} : memref<1x2x4xf32, #tpu.memory_space<vmem>>, vector<1x1x4xf32>,
    %27 = arith.mulf %18, %18 : vector<512x4xf32>
    %cst_19 = arith.constant dense<0.000000e+00> : vector<4xf32>
    %28 = vector.multi_reduction <add>, %27, %cst_19 [0] : vector<512x4xf32> to vector<4xf32>
    %29 = vector.shape_cast %28 : vector<4xf32> to vector<1x4xf32>
    %c0_20 = arith.constant 0 : index
    %c1_21 = arith.constant 1 : index
    %c0_22 = arith.constant 0 : index
    %30 = vector.load %arg4[%c0_20, %c1_21, %c0_22] : memref<1x2x4xf32, #tpu.memory_space<vmem>>, vector<1x1x4xf32>
    %31 = vector.shape_cast %30 : vector<1x1x4xf32> to vector<1x4xf32>
    %32 = vector.shape_cast %29 : vector<1x4xf32> to vector<1x1x4xf32>
    tpu.vector_store %arg4[%c0_20, %c1_21, %c0_22], %32 {strides = array<i32>} : memref<1x2x4xf32, #tpu.memory_space<vmem>>, vector<1x1x4xf32>,
    return
  }
  func.func @transform_0(%arg0: i32) -> (i32, i32, i32, i32) {
    %c0_i32 = arith.constant 0 : i32
    %c0_i32_0 = arith.constant 0 : i32
    %c0_i32_1 = arith.constant 0 : i32
    %c0_i32_2 = arith.constant 0 : i32
    return %arg0, %c0_i32, %c0_i32_0, %c0_i32_1 : i32, i32, i32, i32
  }
  func.func @transform_1(%arg0: i32) -> (i32, i32, i32) {
    %c0_i32 = arith.constant 0 : i32
    %c0_i32_0 = arith.constant 0 : i32
    %c0_i32_1 = arith.constant 0 : i32
    %c0_i32_2 = arith.constant 0 : i32
    return %c0_i32, %c0_i32_0, %c0_i32_1 : i32, i32, i32
  }
  func.func @transform_2(%arg0: i32) -> (i32, i32, i32) {
    %c0_i32 = arith.constant 0 : i32
    %c0_i32_0 = arith.constant 0 : i32
    %c0_i32_1 = arith.constant 0 : i32
    return %arg0, %c0_i32, %c0_i32_0 : i32, i32, i32
  }
  func.func @transform_3(%arg0: i32) -> (i32, i32, i32) {
    %c0_i32 = arith.constant 0 : i32
    %c0_i32_0 = arith.constant 0 : i32
    %c0_i32_1 = arith.constant 0 : i32
    return %arg0, %c0_i32, %c0_i32_0 : i32, i32, i32
  }
}

module attributes {stable_mosaic.version = 11 : i64} {
  func.func @_bn_relu_kernel(%arg0: i32, %arg1: i32, %arg2: memref<1x8x256xf32, #tpu.memory_space<vmem>>, %arg3: memref<1x256xf32, #tpu.memory_space<vmem>>, %arg4: memref<1x256xf32, #tpu.memory_space<vmem>>, %arg5: memref<1x8x256xbf16, #tpu.memory_space<vmem>>) attributes {dimension_semantics = [#tpu.dimension_semantics<parallel>, #tpu.dimension_semantics<parallel>], iteration_bounds = array<i64: 2, 1>, scalar_prefetch = 0 : i64, scratch_operands = 0 : i64, tpu.core_type = #tpu.core_type<tc>, window_params = [{transform_indices = @transform_0, window_bounds = array<i64: 1, 8, 256>}, {pipeline_mode = #tpu.pipeline_mode<synchronous>, transform_indices = @transform_1, window_bounds = array<i64: 1, 256>}, {pipeline_mode = #tpu.pipeline_mode<synchronous>, transform_indices = @transform_2, window_bounds = array<i64: 1, 256>}, {transform_indices = @transform_3, window_bounds = array<i64: 1, 8, 256>}]} {
    %c0 = arith.constant 0 : index
    %c0_0 = arith.constant 0 : index
    %c0_1 = arith.constant 0 : index
    %0 = vector.load %arg2[%c0, %c0_0, %c0_1] : memref<1x8x256xf32, #tpu.memory_space<vmem>>, vector<1x8x256xf32>
    %1 = vector.shape_cast %0 : vector<1x8x256xf32> to vector<8x256xf32>
    %c0_2 = arith.constant 0 : index
    %c0_3 = arith.constant 0 : index
    %2 = vector.load %arg3[%c0_2, %c0_3] : memref<1x256xf32, #tpu.memory_space<vmem>>, vector<1x256xf32>
    %3 = vector.broadcast %2 : vector<1x256xf32> to vector<8x256xf32>
    %4 = arith.mulf %1, %3 : vector<8x256xf32>
    %c0_4 = arith.constant 0 : index
    %c0_5 = arith.constant 0 : index
    %5 = vector.load %arg4[%c0_4, %c0_5] : memref<1x256xf32, #tpu.memory_space<vmem>>, vector<1x256xf32>
    %6 = vector.broadcast %5 : vector<1x256xf32> to vector<8x256xf32>
    %7 = arith.addf %4, %6 : vector<8x256xf32>
    %cst = arith.constant 0.000000e+00 : f32
    %8 = vector.broadcast %cst : f32 to vector<8x256xf32>
    %9 = arith.maximumf %7, %8 : vector<8x256xf32>
    %10 = arith.truncf %9 : vector<8x256xf32> to vector<8x256xbf16>
    %c0_6 = arith.constant 0 : index
    %c0_7 = arith.constant 0 : index
    %c0_8 = arith.constant 0 : index
    %11 = vector.load %arg5[%c0_6, %c0_7, %c0_8] : memref<1x8x256xbf16, #tpu.memory_space<vmem>>, vector<1x8x256xbf16>
    %12 = vector.shape_cast %11 : vector<1x8x256xbf16> to vector<8x256xbf16>
    %13 = vector.shape_cast %10 : vector<8x256xbf16> to vector<1x8x256xbf16>
    tpu.vector_store %arg5[%c0_6, %c0_7, %c0_8], %13 {strides = array<i32>} : memref<1x8x256xbf16, #tpu.memory_space<vmem>>, vector<1x8x256xbf16>,
    return
  }
  func.func @transform_0(%arg0: i32, %arg1: i32) -> (i32, i32, i32) {
    %c0_i32 = arith.constant 0 : i32
    %c0_i32_0 = arith.constant 0 : i32
    return %arg0, %arg1, %c0_i32 : i32, i32, i32
  }
  func.func @transform_1(%arg0: i32, %arg1: i32) -> (i32, i32) {
    %c0_i32 = arith.constant 0 : i32
    %c0_i32_0 = arith.constant 0 : i32
    %c0_i32_1 = arith.constant 0 : i32
    return %c0_i32, %c0_i32_0 : i32, i32
  }
  func.func @transform_2(%arg0: i32, %arg1: i32) -> (i32, i32) {
    %c0_i32 = arith.constant 0 : i32
    %c0_i32_0 = arith.constant 0 : i32
    %c0_i32_1 = arith.constant 0 : i32
    return %c0_i32, %c0_i32_0 : i32, i32
  }
  func.func @transform_3(%arg0: i32, %arg1: i32) -> (i32, i32, i32) {
    %c0_i32 = arith.constant 0 : i32
    %c0_i32_0 = arith.constant 0 : i32
    return %arg0, %arg1, %c0_i32 : i32, i32, i32
  }
}

module attributes {stable_mosaic.version = 11 : i64} {
  func.func @_bn_relu_kernel(%arg0: i32, %arg1: i32, %arg2: memref<1x8x256xf32, #tpu.memory_space<vmem>>, %arg3: memref<1x256xf32, #tpu.memory_space<vmem>>, %arg4: memref<1x256xf32, #tpu.memory_space<vmem>>, %arg5: memref<1x8x256xf32, #tpu.memory_space<vmem>>) attributes {dimension_semantics = [#tpu.dimension_semantics<parallel>, #tpu.dimension_semantics<parallel>], iteration_bounds = array<i64: 2, 1>, scalar_prefetch = 0 : i64, scratch_operands = 0 : i64, tpu.core_type = #tpu.core_type<tc>, window_params = [{transform_indices = @transform_0, window_bounds = array<i64: 1, 8, 256>}, {pipeline_mode = #tpu.pipeline_mode<synchronous>, transform_indices = @transform_1, window_bounds = array<i64: 1, 256>}, {pipeline_mode = #tpu.pipeline_mode<synchronous>, transform_indices = @transform_2, window_bounds = array<i64: 1, 256>}, {transform_indices = @transform_3, window_bounds = array<i64: 1, 8, 256>}]} {
    %c0 = arith.constant 0 : index
    %c0_0 = arith.constant 0 : index
    %c0_1 = arith.constant 0 : index
    %0 = vector.load %arg2[%c0, %c0_0, %c0_1] : memref<1x8x256xf32, #tpu.memory_space<vmem>>, vector<1x8x256xf32>
    %1 = vector.shape_cast %0 : vector<1x8x256xf32> to vector<8x256xf32>
    %c0_2 = arith.constant 0 : index
    %c0_3 = arith.constant 0 : index
    %2 = vector.load %arg3[%c0_2, %c0_3] : memref<1x256xf32, #tpu.memory_space<vmem>>, vector<1x256xf32>
    %3 = vector.broadcast %2 : vector<1x256xf32> to vector<8x256xf32>
    %4 = arith.mulf %1, %3 : vector<8x256xf32>
    %c0_4 = arith.constant 0 : index
    %c0_5 = arith.constant 0 : index
    %5 = vector.load %arg4[%c0_4, %c0_5] : memref<1x256xf32, #tpu.memory_space<vmem>>, vector<1x256xf32>
    %6 = vector.broadcast %5 : vector<1x256xf32> to vector<8x256xf32>
    %7 = arith.addf %4, %6 : vector<8x256xf32>
    %cst = arith.constant 0.000000e+00 : f32
    %8 = vector.broadcast %cst : f32 to vector<8x256xf32>
    %9 = arith.maximumf %7, %8 : vector<8x256xf32>
    %c0_6 = arith.constant 0 : index
    %c0_7 = arith.constant 0 : index
    %c0_8 = arith.constant 0 : index
    %10 = vector.load %arg5[%c0_6, %c0_7, %c0_8] : memref<1x8x256xf32, #tpu.memory_space<vmem>>, vector<1x8x256xf32>
    %11 = vector.shape_cast %10 : vector<1x8x256xf32> to vector<8x256xf32>
    %12 = vector.shape_cast %9 : vector<8x256xf32> to vector<1x8x256xf32>
    tpu.vector_store %arg5[%c0_6, %c0_7, %c0_8], %12 {strides = array<i32>} : memref<1x8x256xf32, #tpu.memory_space<vmem>>, vector<1x8x256xf32>,
    return
  }
  func.func @transform_0(%arg0: i32, %arg1: i32) -> (i32, i32, i32) {
    %c0_i32 = arith.constant 0 : i32
    %c0_i32_0 = arith.constant 0 : i32
    return %arg0, %arg1, %c0_i32 : i32, i32, i32
  }
  func.func @transform_1(%arg0: i32, %arg1: i32) -> (i32, i32) {
    %c0_i32 = arith.constant 0 : i32
    %c0_i32_0 = arith.constant 0 : i32
    %c0_i32_1 = arith.constant 0 : i32
    return %c0_i32, %c0_i32_0 : i32, i32
  }
  func.func @transform_2(%arg0: i32, %arg1: i32) -> (i32, i32) {
    %c0_i32 = arith.constant 0 : i32
    %c0_i32_0 = arith.constant 0 : i32
    %c0_i32_1 = arith.constant 0 : i32
    return %c0_i32, %c0_i32_0 : i32, i32
  }
  func.func @transform_3(%arg0: i32, %arg1: i32) -> (i32, i32, i32) {
    %c0_i32 = arith.constant 0 : i32
    %c0_i32_0 = arith.constant 0 : i32
    return %arg0, %arg1, %c0_i32 : i32, i32, i32
  }
}

module attributes {stable_mosaic.version = 11 : i64} {
  func.func @_conv_branch_kernel(%arg0: i32, %arg1: memref<1x12x64x36xbf16, #tpu.memory_space<vmem>>, %arg2: memref<3x36x4xbf16, #tpu.memory_space<vmem>>, %arg3: memref<1x512x4xf32, #tpu.memory_space<vmem>>, %arg4: memref<1x2x4xf32, #tpu.memory_space<vmem>>) attributes {dimension_semantics = [#tpu.dimension_semantics<parallel>], iteration_bounds = array<i64: 2>, scalar_prefetch = 0 : i64, scratch_operands = 0 : i64, tpu.core_type = #tpu.core_type<tc>, window_params = [{transform_indices = @transform_0, window_bounds = array<i64: 1, 12, 64, 36>}, {pipeline_mode = #tpu.pipeline_mode<synchronous>, transform_indices = @transform_1, window_bounds = array<i64: 3, 36, 4>}, {transform_indices = @transform_2, window_bounds = array<i64: 1, 512, 4>}, {transform_indices = @transform_3, window_bounds = array<i64: 1, 2, 4>}]} {
    %c0 = arith.constant 0 : index
    %c0_0 = arith.constant 0 : index
    %c0_1 = arith.constant 0 : index
    %c0_2 = arith.constant 0 : index
    %0 = vector.load %arg1[%c0, %c0_0, %c0_1, %c0_2] : memref<1x12x64x36xbf16, #tpu.memory_space<vmem>>, vector<1x12x64x36xbf16>
    %1 = vector.shape_cast %0 : vector<1x12x64x36xbf16> to vector<12x64x36xbf16>
    %2 = vector.extract_strided_slice %1 {offsets = [0, 0, 0], sizes = [8, 64, 36], strides = [1, 1, 1]} : vector<12x64x36xbf16> to vector<8x64x36xbf16>
    %3 = vector.shape_cast %2 : vector<8x64x36xbf16> to vector<512x36xbf16>
    %c0_3 = arith.constant 0 : index
    %c0_4 = arith.constant 0 : index
    %c0_5 = arith.constant 0 : index
    %4 = vector.load %arg2[%c0_3, %c0_4, %c0_5] : memref<3x36x4xbf16, #tpu.memory_space<vmem>>, vector<1x36x4xbf16>
    %5 = vector.shape_cast %4 : vector<1x36x4xbf16> to vector<36x4xbf16>
    %cst = arith.constant dense<0.000000e+00> : vector<512x4xf32>
    %6 = tpu.matmul %3, %5, %cst {dimension_numbers = #tpu.dot_dimension_numbers<[1], [0], [0], [1], [0, 0, 1, 1], [], []>} : vector<512x36xbf16>, vector<36x4xbf16>, vector<512x4xf32> -> vector<512x4xf32>
    %7 = vector.extract_strided_slice %1 {offsets = [2, 0, 0], sizes = [8, 64, 36], strides = [1, 1, 1]} : vector<12x64x36xbf16> to vector<8x64x36xbf16>
    %8 = vector.shape_cast %7 : vector<8x64x36xbf16> to vector<512x36xbf16>
    %c1 = arith.constant 1 : index
    %c0_6 = arith.constant 0 : index
    %c0_7 = arith.constant 0 : index
    %9 = vector.load %arg2[%c1, %c0_6, %c0_7] : memref<3x36x4xbf16, #tpu.memory_space<vmem>>, vector<1x36x4xbf16>
    %10 = vector.shape_cast %9 : vector<1x36x4xbf16> to vector<36x4xbf16>
    %cst_8 = arith.constant dense<0.000000e+00> : vector<512x4xf32>
    %11 = tpu.matmul %8, %10, %cst_8 {dimension_numbers = #tpu.dot_dimension_numbers<[1], [0], [0], [1], [0, 0, 1, 1], [], []>} : vector<512x36xbf16>, vector<36x4xbf16>, vector<512x4xf32> -> vector<512x4xf32>
    %12 = arith.addf %6, %11 : vector<512x4xf32>
    %13 = vector.extract_strided_slice %1 {offsets = [4, 0, 0], sizes = [8, 64, 36], strides = [1, 1, 1]} : vector<12x64x36xbf16> to vector<8x64x36xbf16>
    %14 = vector.shape_cast %13 : vector<8x64x36xbf16> to vector<512x36xbf16>
    %c2 = arith.constant 2 : index
    %c0_9 = arith.constant 0 : index
    %c0_10 = arith.constant 0 : index
    %15 = vector.load %arg2[%c2, %c0_9, %c0_10] : memref<3x36x4xbf16, #tpu.memory_space<vmem>>, vector<1x36x4xbf16>
    %16 = vector.shape_cast %15 : vector<1x36x4xbf16> to vector<36x4xbf16>
    %cst_11 = arith.constant dense<0.000000e+00> : vector<512x4xf32>
    %17 = tpu.matmul %14, %16, %cst_11 {dimension_numbers = #tpu.dot_dimension_numbers<[1], [0], [0], [1], [0, 0, 1, 1], [], []>} : vector<512x36xbf16>, vector<36x4xbf16>, vector<512x4xf32> -> vector<512x4xf32>
    %18 = arith.addf %12, %17 : vector<512x4xf32>
    %c0_12 = arith.constant 0 : index
    %c0_13 = arith.constant 0 : index
    %c0_14 = arith.constant 0 : index
    %19 = vector.load %arg3[%c0_12, %c0_13, %c0_14] : memref<1x512x4xf32, #tpu.memory_space<vmem>>, vector<1x512x4xf32>
    %20 = vector.shape_cast %19 : vector<1x512x4xf32> to vector<512x4xf32>
    %21 = vector.shape_cast %18 : vector<512x4xf32> to vector<1x512x4xf32>
    tpu.vector_store %arg3[%c0_12, %c0_13, %c0_14], %21 {strides = array<i32>} : memref<1x512x4xf32, #tpu.memory_space<vmem>>, vector<1x512x4xf32>,
    %cst_15 = arith.constant dense<0.000000e+00> : vector<4xf32>
    %22 = vector.multi_reduction <add>, %18, %cst_15 [0] : vector<512x4xf32> to vector<4xf32>
    %23 = vector.shape_cast %22 : vector<4xf32> to vector<1x4xf32>
    %c0_16 = arith.constant 0 : index
    %c0_17 = arith.constant 0 : index
    %c0_18 = arith.constant 0 : index
    %24 = vector.load %arg4[%c0_16, %c0_17, %c0_18] : memref<1x2x4xf32, #tpu.memory_space<vmem>>, vector<1x1x4xf32>
    %25 = vector.shape_cast %24 : vector<1x1x4xf32> to vector<1x4xf32>
    %26 = vector.shape_cast %23 : vector<1x4xf32> to vector<1x1x4xf32>
    tpu.vector_store %arg4[%c0_16, %c0_17, %c0_18], %26 {strides = array<i32>} : memref<1x2x4xf32, #tpu.memory_space<vmem>>, vector<1x1x4xf32>,
    %27 = arith.mulf %18, %18 : vector<512x4xf32>
    %cst_19 = arith.constant dense<0.000000e+00> : vector<4xf32>
    %28 = vector.multi_reduction <add>, %27, %cst_19 [0] : vector<512x4xf32> to vector<4xf32>
    %29 = vector.shape_cast %28 : vector<4xf32> to vector<1x4xf32>
    %c0_20 = arith.constant 0 : index
    %c1_21 = arith.constant 1 : index
    %c0_22 = arith.constant 0 : index
    %30 = vector.load %arg4[%c0_20, %c1_21, %c0_22] : memref<1x2x4xf32, #tpu.memory_space<vmem>>, vector<1x1x4xf32>
    %31 = vector.shape_cast %30 : vector<1x1x4xf32> to vector<1x4xf32>
    %32 = vector.shape_cast %29 : vector<1x4xf32> to vector<1x1x4xf32>
    tpu.vector_store %arg4[%c0_20, %c1_21, %c0_22], %32 {strides = array<i32>} : memref<1x2x4xf32, #tpu.memory_space<vmem>>, vector<1x1x4xf32>,
    return
  }
  func.func @transform_0(%arg0: i32) -> (i32, i32, i32, i32) {
    %c0_i32 = arith.constant 0 : i32
    %c0_i32_0 = arith.constant 0 : i32
    %c0_i32_1 = arith.constant 0 : i32
    %c0_i32_2 = arith.constant 0 : i32
    return %arg0, %c0_i32, %c0_i32_0, %c0_i32_1 : i32, i32, i32, i32
  }
  func.func @transform_1(%arg0: i32) -> (i32, i32, i32) {
    %c0_i32 = arith.constant 0 : i32
    %c0_i32_0 = arith.constant 0 : i32
    %c0_i32_1 = arith.constant 0 : i32
    %c0_i32_2 = arith.constant 0 : i32
    return %c0_i32, %c0_i32_0, %c0_i32_1 : i32, i32, i32
  }
  func.func @transform_2(%arg0: i32) -> (i32, i32, i32) {
    %c0_i32 = arith.constant 0 : i32
    %c0_i32_0 = arith.constant 0 : i32
    %c0_i32_1 = arith.constant 0 : i32
    return %arg0, %c0_i32, %c0_i32_0 : i32, i32, i32
  }
  func.func @transform_3(%arg0: i32) -> (i32, i32, i32) {
    %c0_i32 = arith.constant 0 : i32
    %c0_i32_0 = arith.constant 0 : i32
    %c0_i32_1 = arith.constant 0 : i32
    return %arg0, %c0_i32, %c0_i32_0 : i32, i32, i32
  }
}

module attributes {stable_mosaic.version = 11 : i64} {
  func.func @_conv_branch_kernel(%arg0: i32, %arg1: memref<1x10x64x36xbf16, #tpu.memory_space<vmem>>, %arg2: memref<3x36x4xbf16, #tpu.memory_space<vmem>>, %arg3: memref<1x512x4xf32, #tpu.memory_space<vmem>>, %arg4: memref<1x2x4xf32, #tpu.memory_space<vmem>>) attributes {dimension_semantics = [#tpu.dimension_semantics<parallel>], iteration_bounds = array<i64: 2>, scalar_prefetch = 0 : i64, scratch_operands = 0 : i64, tpu.core_type = #tpu.core_type<tc>, window_params = [{transform_indices = @transform_0, window_bounds = array<i64: 1, 10, 64, 36>}, {pipeline_mode = #tpu.pipeline_mode<synchronous>, transform_indices = @transform_1, window_bounds = array<i64: 3, 36, 4>}, {transform_indices = @transform_2, window_bounds = array<i64: 1, 512, 4>}, {transform_indices = @transform_3, window_bounds = array<i64: 1, 2, 4>}]} {
    %c0 = arith.constant 0 : index
    %c0_0 = arith.constant 0 : index
    %c0_1 = arith.constant 0 : index
    %c0_2 = arith.constant 0 : index
    %0 = vector.load %arg1[%c0, %c0_0, %c0_1, %c0_2] : memref<1x10x64x36xbf16, #tpu.memory_space<vmem>>, vector<1x10x64x36xbf16>
    %1 = vector.shape_cast %0 : vector<1x10x64x36xbf16> to vector<10x64x36xbf16>
    %2 = vector.extract_strided_slice %1 {offsets = [0, 0, 0], sizes = [8, 64, 36], strides = [1, 1, 1]} : vector<10x64x36xbf16> to vector<8x64x36xbf16>
    %3 = vector.shape_cast %2 : vector<8x64x36xbf16> to vector<512x36xbf16>
    %c0_3 = arith.constant 0 : index
    %c0_4 = arith.constant 0 : index
    %c0_5 = arith.constant 0 : index
    %4 = vector.load %arg2[%c0_3, %c0_4, %c0_5] : memref<3x36x4xbf16, #tpu.memory_space<vmem>>, vector<1x36x4xbf16>
    %5 = vector.shape_cast %4 : vector<1x36x4xbf16> to vector<36x4xbf16>
    %cst = arith.constant dense<0.000000e+00> : vector<512x4xf32>
    %6 = tpu.matmul %3, %5, %cst {dimension_numbers = #tpu.dot_dimension_numbers<[1], [0], [0], [1], [0, 0, 1, 1], [], []>} : vector<512x36xbf16>, vector<36x4xbf16>, vector<512x4xf32> -> vector<512x4xf32>
    %7 = vector.extract_strided_slice %1 {offsets = [1, 0, 0], sizes = [8, 64, 36], strides = [1, 1, 1]} : vector<10x64x36xbf16> to vector<8x64x36xbf16>
    %8 = vector.shape_cast %7 : vector<8x64x36xbf16> to vector<512x36xbf16>
    %c1 = arith.constant 1 : index
    %c0_6 = arith.constant 0 : index
    %c0_7 = arith.constant 0 : index
    %9 = vector.load %arg2[%c1, %c0_6, %c0_7] : memref<3x36x4xbf16, #tpu.memory_space<vmem>>, vector<1x36x4xbf16>
    %10 = vector.shape_cast %9 : vector<1x36x4xbf16> to vector<36x4xbf16>
    %cst_8 = arith.constant dense<0.000000e+00> : vector<512x4xf32>
    %11 = tpu.matmul %8, %10, %cst_8 {dimension_numbers = #tpu.dot_dimension_numbers<[1], [0], [0], [1], [0, 0, 1, 1], [], []>} : vector<512x36xbf16>, vector<36x4xbf16>, vector<512x4xf32> -> vector<512x4xf32>
    %12 = arith.addf %6, %11 : vector<512x4xf32>
    %13 = vector.extract_strided_slice %1 {offsets = [2, 0, 0], sizes = [8, 64, 36], strides = [1, 1, 1]} : vector<10x64x36xbf16> to vector<8x64x36xbf16>
    %14 = vector.shape_cast %13 : vector<8x64x36xbf16> to vector<512x36xbf16>
    %c2 = arith.constant 2 : index
    %c0_9 = arith.constant 0 : index
    %c0_10 = arith.constant 0 : index
    %15 = vector.load %arg2[%c2, %c0_9, %c0_10] : memref<3x36x4xbf16, #tpu.memory_space<vmem>>, vector<1x36x4xbf16>
    %16 = vector.shape_cast %15 : vector<1x36x4xbf16> to vector<36x4xbf16>
    %cst_11 = arith.constant dense<0.000000e+00> : vector<512x4xf32>
    %17 = tpu.matmul %14, %16, %cst_11 {dimension_numbers = #tpu.dot_dimension_numbers<[1], [0], [0], [1], [0, 0, 1, 1], [], []>} : vector<512x36xbf16>, vector<36x4xbf16>, vector<512x4xf32> -> vector<512x4xf32>
    %18 = arith.addf %12, %17 : vector<512x4xf32>
    %c0_12 = arith.constant 0 : index
    %c0_13 = arith.constant 0 : index
    %c0_14 = arith.constant 0 : index
    %19 = vector.load %arg3[%c0_12, %c0_13, %c0_14] : memref<1x512x4xf32, #tpu.memory_space<vmem>>, vector<1x512x4xf32>
    %20 = vector.shape_cast %19 : vector<1x512x4xf32> to vector<512x4xf32>
    %21 = vector.shape_cast %18 : vector<512x4xf32> to vector<1x512x4xf32>
    tpu.vector_store %arg3[%c0_12, %c0_13, %c0_14], %21 {strides = array<i32>} : memref<1x512x4xf32, #tpu.memory_space<vmem>>, vector<1x512x4xf32>,
    %cst_15 = arith.constant dense<0.000000e+00> : vector<4xf32>
    %22 = vector.multi_reduction <add>, %18, %cst_15 [0] : vector<512x4xf32> to vector<4xf32>
    %23 = vector.shape_cast %22 : vector<4xf32> to vector<1x4xf32>
    %c0_16 = arith.constant 0 : index
    %c0_17 = arith.constant 0 : index
    %c0_18 = arith.constant 0 : index
    %24 = vector.load %arg4[%c0_16, %c0_17, %c0_18] : memref<1x2x4xf32, #tpu.memory_space<vmem>>, vector<1x1x4xf32>
    %25 = vector.shape_cast %24 : vector<1x1x4xf32> to vector<1x4xf32>
    %26 = vector.shape_cast %23 : vector<1x4xf32> to vector<1x1x4xf32>
    tpu.vector_store %arg4[%c0_16, %c0_17, %c0_18], %26 {strides = array<i32>} : memref<1x2x4xf32, #tpu.memory_space<vmem>>, vector<1x1x4xf32>,
    %27 = arith.mulf %18, %18 : vector<512x4xf32>
    %cst_19 = arith.constant dense<0.000000e+00> : vector<4xf32>
    %28 = vector.multi_reduction <add>, %27, %cst_19 [0] : vector<512x4xf32> to vector<4xf32>
    %29 = vector.shape_cast %28 : vector<4xf32> to vector<1x4xf32>
    %c0_20 = arith.constant 0 : index
    %c1_21 = arith.constant 1 : index
    %c0_22 = arith.constant 0 : index
    %30 = vector.load %arg4[%c0_20, %c1_21, %c0_22] : memref<1x2x4xf32, #tpu.memory_space<vmem>>, vector<1x1x4xf32>
    %31 = vector.shape_cast %30 : vector<1x1x4xf32> to vector<1x4xf32>
    %32 = vector.shape_cast %29 : vector<1x4xf32> to vector<1x1x4xf32>
    tpu.vector_store %arg4[%c0_20, %c1_21, %c0_22], %32 {strides = array<i32>} : memref<1x2x4xf32, #tpu.memory_space<vmem>>, vector<1x1x4xf32>,
    return
  }
  func.func @transform_0(%arg0: i32) -> (i32, i32, i32, i32) {
    %c0_i32 = arith.constant 0 : i32
    %c0_i32_0 = arith.constant 0 : i32
    %c0_i32_1 = arith.constant 0 : i32
    %c0_i32_2 = arith.constant 0 : i32
    return %arg0, %c0_i32, %c0_i32_0, %c0_i32_1 : i32, i32, i32, i32
  }
  func.func @transform_1(%arg0: i32) -> (i32, i32, i32) {
    %c0_i32 = arith.constant 0 : i32
    %c0_i32_0 = arith.constant 0 : i32
    %c0_i32_1 = arith.constant 0 : i32
    %c0_i32_2 = arith.constant 0 : i32
    return %c0_i32, %c0_i32_0, %c0_i32_1 : i32, i32, i32
  }
  func.func @transform_2(%arg0: i32) -> (i32, i32, i32) {
    %c0_i32 = arith.constant 0 : i32
    %c0_i32_0 = arith.constant 0 : i32
    %c0_i32_1 = arith.constant 0 : i32
    return %arg0, %c0_i32, %c0_i32_0 : i32, i32, i32
  }
  func.func @transform_3(%arg0: i32) -> (i32, i32, i32) {
    %c0_i32 = arith.constant 0 : i32
    %c0_i32_0 = arith.constant 0 : i32
    %c0_i32_1 = arith.constant 0 : i32
    return %arg0, %c0_i32, %c0_i32_0 : i32, i32, i32
  }
}

</mosaic_0001>

<bundles_post_ra>
// kernel: down_forward.20
= control target key start
LH: loop header
LB: loop body
LE: loop exit
PB: predicated region body
PF: predicated region fallthrough
CT: control target
= control target key end

     0   :  { %s2969_s12 = smov 0   ;;  %s3602_s0 = inlined_call_operand.vmem [shape: bf16[2,14,64,36], index: 0, kind: input, shape index: {}]   ;;  %s3603_s1 = inlined_call_operand.vmem [shape: bf16[3,36,4], index: 1, kind: input, shape index: {}]   ;;  %s3604_s2 = inlined_call_operand.vmem [shape: f32[2,512,4], index: 2, kind: output, shape index: {0}]   ;;  %s3605_s3 = inlined_call_operand.vmem [shape: f32[2,2,4], index: 3, kind: output, shape index: {1}]  }
   0x1 LB: > { %s2231_s13 = sadd.s32 4294967295, %s2947_s12   ;;  %p2235_p0 = scmp.ge.s32.totalorder %s2947_s12, 1  ;;  %s2947_s12 = sphi %s2969_s12, %s14_s12  }
   0x2   : > { %p140_p1 = scmp.lt.s32.totalorder %s2947_s12, 3 }
   0x4   : > { %p141_p2 = pnand %p2235_p0, %p140_p1 }
   0x5   : > { %v2876_v0 = vld [vmem:[%s3603_s1 + $0x14] sm:$0xff] (!%p141_p2)   ;;  %v2877_v1 = vld [vmem:[%s3603_s1] sm:$0xff] (!%p141_p2)   ;;  %p168_p3 = scmp.lt.s32.totalorder (!%p141_p2), %s2231_s13, 1  ;;  %v2879_v3 = vld [vmem:[%s3603_s1 + $0x8] sm:$0xff] (!%p141_p2)   ;;  %vm578_vm0 = vcmask (!%p141_p2), 1041408   ;;  %vm481_vm1 = vcmask (!%p141_p2), 293888  }
   0x6   : > { %144 = sbr.rel (%p141_p2) target bundleno = 443 (0x1bb), region = 28  ;;  %2519 = vmatprep.subr.bf16.mxu1 (!%p141_p2), %v2876_v0  ;;  %v2878_v2 = vld [vmem:[%s3603_s1 + $0x1c] sm:$0xff] (!%p141_p2)   ;;  %2589 = vmatprep.subr.bf16.mxu0 (!%p141_p2), %v2877_v1  ;;  %v2880_v4 = vld [vmem:[%s3603_s1 + $0x24] ss:$0 sps:$4 sm:$0x33] (!%p141_p2)   ;;  %v2886_v6 = vld [vmem:[%s3603_s1 + $0x28] sm:$0xff] (!%p141_p2)  }
   0x7   : > { %2520 = vmatpush3.bf16.msra.mxu1 (!%p141_p2), %v2876_v0  ;;  %2590 = vmatpush3.bf16.msra.mxu0 (!%p141_p2), %v2877_v1  ;;  %v2881_v5 = vld [vmem:[%s3603_s1 + $0x10] ss:$0 sps:$4 sm:$0x33] (!%p141_p2)   ;;  %v580_v7 = vsel (!%p141_p2), %vm578_vm0, %v2880_v4, 0  ;;  %vm1747_vm2 = vcmask (!%p141_p2), 31744   ;;  %vm1945_vm3 = vcmask (!%p141_p2), 24576  }
   0x8   : > { %2521 = vmatprep.subr.bf16.mxu1 (!%p141_p2), %v2878_v2  ;;  %2591 = vmatprep.subr.bf16.mxu0 (!%p141_p2), %v2879_v3  ;;  %v983_v9 = vsel (!%p141_p2), %vm578_vm0, %v2881_v5, 0  ;;  %v2895_v13 = vld [vmem:[%s3603_s1 + $0x30] sm:$0xff] (!%p141_p2)   ;;  %v2908_v25 = vld [vmem:[%s3603_s1 + $0x38] ss:$0 sps:$4 sm:$0x33] (!%p141_p2)  }
   0x9   : > { %v1392_v27 = vsel (!%p141_p2), %vm578_vm0, %v2908_v25, 0 }
   0xb   : > { %2522 = vmatpush3.bf16.msra.mxu1 (!%p141_p2), %v2878_v2  ;;  %2592 = vmatpush3.bf16.msra.mxu0 (!%p141_p2), %v2879_v3 }
   0xc   : > { %2863 = vmatprep.subr.msk.bf16.mxu1 (!%p141_p2), %vm578_vm0, %v2880_v4  ;;  %2864 = vmatprep.subr.msk.bf16.mxu0 (!%p141_p2), %vm578_vm0, %v2881_v5 }
   0xd   : > { %s3607_s13 = smov (!%p168_p3, %s2231_s13), 1 }
   0xe   : > { %s2867_s26 = smul.u32 448, %s3607_s13  ;;  %s2413_s9 = sshll.u32 %s3607_s13, 9 }
   0xf   : > { %2524 = vmatpush3.bf16.msra.mxu1 %v580_v7  ;;  %2594 = vmatpush3.bf16.msra.mxu0 %v983_v9  ;;  %s3311_s14 = scalar_lea.vmem %s3604_s2, %s2413_s9  ;;  %s2239_s15 = sshll.u32 %s3607_s13, 1 }
  0x10   : > { %s3001_s29 = scalar_lea.vmem %s3602_s0, %s2867_s26  ;;  %2729 = vmatprep.subr.bf16.mxu1 %v2877_v1  ;;  %2659 = vmatprep.subr.bf16.mxu0 %v2886_v6  ;;  %s181_s18 = scalar_lea.vmem %s3605_s3, %s2239_s15 }
  0x11   : > { %v3009_v8 = vld [vmem:[%s3001_s29 + $0x60] sm:$0xff]   ;;  %v3017_v11 = vld [vmem:[%s3001_s29 + $0x68] sm:$0xff]   ;;  %v3025_v14 = vld [vmem:[%s3001_s29 + $0x70] sm:$0xff]  }
  0x12   : > { %v2883_v10 = vld [vmem:[%s3001_s29] sm:$0xff]   ;;  %2525 = vmatprep.mubr.msk.bf16.mxu1 %vm481_vm1, %v3009_v8  ;;  %v2885_v12 = vld [vmem:[%s3001_s29 + $0x8] sm:$0xff]   ;;  %v2888_v15 = vld [vmem:[%s3001_s29 + $0x10] sm:$0xff]  }
  0x13   : > { %2595 = vmatprep.mubr.msk.bf16.mxu0 %vm481_vm1, %v2883_v10  ;;  %2526 = vmatmul.mubr.msk.bf16.vlgmr.msra.gmra.mrb[0].mxu1 %vm481_vm1, %v3017_v11  ;;  %v2889_v16 = vld [vmem:[%s3001_s29 + $0x78] sm:$0xff]   ;;  %v3037_v18 = vld [vmem:[%s3001_s29 + $0x80] sm:$0xff]   ;;  %v3047_v20 = vld [vmem:[%s3001_s29 + $0x88] sm:$0xff]  }
  0x14   : > { %2596 = vmatmul.mubr.msk.bf16.vlgmr.msra.gmra.mrb[0].mxu0 %vm481_vm1, %v2885_v12  ;;  %2732 = vmatpush3.bf16.msra.mxu1 %v2877_v1  ;;  %v2890_v17 = vld [vmem:[%s3001_s29 + $0x18] sm:$0xff]   ;;  %v2892_v19 = vld [vmem:[%s3001_s29 + $0x20] sm:$0xff]   ;;  %v2894_v21 = vld [vmem:[%s3001_s29 + $0x28] sm:$0xff]  }
  0x15   : > { %2660 = vmatpush3.bf16.msra.mxu0 %v2886_v6  ;;  %2529 = vmatprep.mubr.msk.bf16.mxu1 %vm481_vm1, %v3025_v14  ;;  %v3051_v22 = vld [vmem:[%s3001_s29 + $0x90] sm:$0xff]   ;;  %v3061_v24 = vld [vmem:[%s3001_s29 + $0x98] sm:$0xff]   ;;  %v3070_v28 = vld [vmem:[%s3001_s29 + $0xa0] sm:$0xff]  }
  0x16   : > { %2599 = vmatprep.mubr.msk.bf16.mxu0 %vm481_vm1, %v2888_v15  ;;  %2661 = vmatprep.subr.bf16.mxu0 %v2895_v13  ;;  %v2897_v23 = vld [vmem:[%s3001_s29 + $0x30] sm:$0xff]   ;;  %v2899_v26 = vld [vmem:[%s3001_s29 + $0x38] sm:$0xff]   ;;  %v2901_v29 = vld [vmem:[%s3001_s29 + $0x40] sm:$0xff]  }
  0x17   : > { %2730 = vmatprep.subr.bf16.mxu1 %v2879_v3  ;;  %v3080_v30 = vld [vmem:[%s3001_s29 + $0xa8] sm:$0xff]   ;;  %v3084_v32 = vld [vmem:[%s3001_s29 + $0xb0] sm:$0xff]   ;;  %v3094_v34 = vld [vmem:[%s3001_s29 + $0xb8] sm:$0xff]  }
  0x18   : > { %2733 = vmatpush3.bf16.msra.mxu1 %v2879_v3  ;;  %v2903_v31 = vld [vmem:[%s3001_s29 + $0x48] sm:$0xff]   ;;  %v2905_v33 = vld [vmem:[%s3001_s29 + $0x50] sm:$0xff]   ;;  %v2907_v35 = vld [vmem:[%s3001_s29 + $0x58] sm:$0xff]  }
  0x19   : > { %2662 = vmatpush3.bf16.msra.mxu0 %v2895_v13  ;;  %2865 = vmatprep.subr.msk.bf16.mxu1 %vm578_vm0, %v2881_v5  ;;  %v3098_v36 = vld [vmem:[%s3001_s29 + $0xc0] sm:$0xff]   ;;  %v3108_v37 = vld [vmem:[%s3001_s29 + $0xc8] sm:$0xff]   ;;  %v3111_v38 = vld [vmem:[%s3001_s29 + $0xd0] sm:$0xff]  }
  0x1a   : > { %2866 = vmatprep.subr.msk.bf16.mxu0 %vm578_vm0, %v2908_v25  ;;  %v3122_v39 = vld [vmem:[%s3001_s29 + $0xd8] sm:$0xff]   ;;  %v3125_v40 = vld [vmem:[%s3001_s29 + $0xe0] sm:$0xff]   ;;  %v3135_v41 = vld [vmem:[%s3001_s29 + $0xe8] sm:$0xff]  }
  0x1b   : > { %2530 = vmatmul.mubr.msk.bf16.gmra.mrb[4].mxu1 %vm481_vm1, %v2889_v16  ;;  %v3138_v42 = vld [vmem:[%s3001_s29 + $0xf0] sm:$0xff]   ;;  %v3149_v43 = vld [vmem:[%s3001_s29 + $0xf8] sm:$0xff]   ;;  %v2917_v44 = vld [vmem:[%s3001_s29 + $0x100] sm:$0xff]  }
  0x1c   : > { %2600 = vmatmul.mubr.msk.bf16.gmra.mrb[4].mxu0 %vm481_vm1, %v2890_v17  ;;  %2533 = vmatprep.mubr.msk.bf16.mxu1 %vm481_vm1, %v3037_v18  ;;  %v2918_v45 = vld [vmem:[%s3001_s29 + $0x108] sm:$0xff]   ;;  %v2919_v46 = vld [vmem:[%s3001_s29 + $0x110] sm:$0xff]   ;;  %v2920_v47 = vld [vmem:[%s3001_s29 + $0x118] sm:$0xff]  }
  0x1d   : > { %2603 = vmatprep.mubr.msk.bf16.mxu0 %vm481_vm1, %v2892_v19  ;;  %2734 = vmatpush3.bf16.msra.mxu1 %v983_v9  ;;  %v2921_v48 = vld [vmem:[%s3001_s29 + $0x120] sm:$0xff]   ;;  %v2922_v49 = vld [vmem:[%s3001_s29 + $0x128] sm:$0xff]   ;;  %v2923_v50 = vld [vmem:[%s3001_s29 + $0x130] sm:$0xff]  }
  0x1e   : > { %2664 = vmatpush3.bf16.msra.mxu0 %v1392_v27  ;;  %v2924_v51 = vld [vmem:[%s3001_s29 + $0x138] sm:$0xff]   ;;  %v2925_v52 = vld [vmem:[%s3001_s29 + $0x140] sm:$0xff]   ;;  %v2926_v53 = vld [vmem:[%s3001_s29 + $0x148] sm:$0xff]  }
  0x1f   : > { %v2927_v54 = vld [vmem:[%s3001_s29 + $0x150] sm:$0xff]   ;;  %v2928_v55 = vld [vmem:[%s3001_s29 + $0x158] sm:$0xff]   ;;  %v2929_v56 = vld [vmem:[%s3001_s29 + $0x160] sm:$0xff]  }
  0x20   : > { %v2930_v57 = vld [vmem:[%s3001_s29 + $0x168] sm:$0xff]   ;;  %v2931_v58 = vld [vmem:[%s3001_s29 + $0x170] sm:$0xff]   ;;  %v2932_v59 = vld [vmem:[%s3001_s29 + $0x178] sm:$0xff]  }
  0x21   : > { %v2933_v60 = vld [vmem:[%s3001_s29 + $0x180] sm:$0xff]   ;;  %v2934_v61 = vld [vmem:[%s3001_s29 + $0x188] sm:$0xff]   ;;  %v2935_v62 = vld [vmem:[%s3001_s29 + $0x190] sm:$0xff]  }
  0x22   : > { %v2936_v63 = vld [vmem:[%s3001_s29 + $0x198] sm:$0xff]   ;;  %v2937_v0 = vld [vmem:[%s3001_s29 + $0x1a0] sm:$0xff]   ;;  %v2938_v1 = vld [vmem:[%s3001_s29 + $0x1a8] sm:$0xff]  }
  0x23   : > { %2534 = vmatmul.mubr.msk.bf16.gmra.mrb[8].mxu1 %vm481_vm1, %v3047_v20  ;;  %v2939_v2 = vld [vmem:[%s3001_s29 + $0x1b0] sm:$0xff]   ;;  %v2940_v3 = vld [vmem:[%s3001_s29 + $0x1b8] sm:$0xff]  }
  0x24   : > { %2604 = vmatmul.mubr.msk.bf16.gmra.mrb[8].mxu0 %vm481_vm1, %v2894_v21  ;;  %2537 = vmatprep.mubr.msk.bf16.mxu1 %vm481_vm1, %v3051_v22 }
  0x25   : > { %2607 = vmatprep.mubr.msk.bf16.mxu0 %vm481_vm1, %v2897_v23 }
  0x2b   : > { %2538 = vmatmul.mubr.msk.bf16.gmra.mrb[12].mxu1 %vm481_vm1, %v3061_v24 }
  0x2c   : > { %2608 = vmatmul.mubr.msk.bf16.gmra.mrb[12].mxu0 %vm481_vm1, %v2899_v26  ;;  %2541 = vmatprep.mubr.msk.bf16.mxu1 %vm481_vm1, %v3070_v28 }
  0x2d   : > { %2611 = vmatprep.mubr.msk.bf16.mxu0 %vm481_vm1, %v2901_v29 }
  0x33   : > { %2542 = vmatmul.mubr.msk.bf16.gmra.mrb[16].mxu1 %vm481_vm1, %v3080_v30 }
  0x34   : > { %2612 = vmatmul.mubr.msk.bf16.gmra.mrb[16].mxu0 %vm481_vm1, %v2903_v31  ;;  %2545 = vmatprep.mubr.msk.bf16.mxu1 %vm481_vm1, %v3084_v32 }
  0x35   : > { %2615 = vmatprep.mubr.msk.bf16.mxu0 %vm481_vm1, %v2905_v33 }
  0x3b   : > { %2546 = vmatmul.mubr.msk.bf16.gmra.mrb[20].mxu1 %vm481_vm1, %v3094_v34 }
  0x3c   : > { %2616 = vmatmul.mubr.msk.bf16.gmra.mrb[20].mxu0 %vm481_vm1, %v2907_v35  ;;  %2549 = vmatprep.mubr.msk.bf16.mxu1 %vm481_vm1, %v3098_v36 }
  0x3d   : > { %2619 = vmatprep.mubr.msk.bf16.mxu0 %vm481_vm1, %v3009_v8 }
  0x43   : > { %2550 = vmatmul.mubr.msk.bf16.gmra.mrb[24].mxu1 %vm481_vm1, %v3108_v37 }
  0x44   : > { %2620 = vmatmul.mubr.msk.bf16.gmra.mrb[24].mxu0 %vm481_vm1, %v3017_v11  ;;  %2553 = vmatprep.mubr.msk.bf16.mxu1 %vm481_vm1, %v3111_v38 }
  0x45   : > { %2623 = vmatprep.mubr.msk.bf16.mxu0 %vm481_vm1, %v3025_v14 }
  0x4b   : > { %2554 = vmatmul.mubr.msk.bf16.gmra.mrb[28].mxu1 %vm481_vm1, %v3122_v39 }
  0x4c   : > { %2624 = vmatmul.mubr.msk.bf16.gmra.mrb[28].mxu0 %vm481_vm1, %v2889_v16  ;;  %2557 = vmatprep.mubr.msk.bf16.mxu1 %vm481_vm1, %v3125_v40 }
  0x4d   : > { %2665 = vmatprep.mubr.msk.bf16.mxu0 %vm481_vm1, %v3098_v36 }
  0x53   : > { %2558 = vmatmul.mubr.msk.bf16.gmra.mrb[32].mxu1 %vm481_vm1, %v3135_v41 }
  0x54   : > { %2666 = vmatmul.mubr.msk.bf16.vlgmr.msra.gmra.mrb[0].mxu0 %vm481_vm1, %v3108_v37  ;;  %2561 = vmatprep.mubr.msk.bf16.mxu1 %vm481_vm1, %v3138_v42 }
  0x55   : > { %2669 = vmatprep.mubr.msk.bf16.mxu0 %vm481_vm1, %v3111_v38 }
  0x5b   : > { %2562 = vmatmul.mubr.msk.bf16.gmra.mrb[36].mxu1 %vm481_vm1, %v3149_v43 }
  0x5c   : > { %2670 = vmatmul.mubr.msk.bf16.gmra.mrb[4].mxu0 %vm481_vm1, %v3122_v39  ;;  %2565 = vmatprep.mubr.msk.bf16.mxu1 %vm481_vm1, %v2917_v44 }
  0x5d   : > { %2673 = vmatprep.mubr.msk.bf16.mxu0 %vm481_vm1, %v3125_v40 }
  0x63   : > { %2566 = vmatmul.mubr.msk.bf16.gmra.mrb[40].mxu1 %vm481_vm1, %v2918_v45 }
  0x64   : > { %2674 = vmatmul.mubr.msk.bf16.gmra.mrb[8].mxu0 %vm481_vm1, %v3135_v41  ;;  %2569 = vmatprep.mubr.msk.bf16.mxu1 %vm481_vm1, %v2919_v46 }
  0x65   : > { %2677 = vmatprep.mubr.msk.bf16.mxu0 %vm481_vm1, %v3138_v42 }
  0x6b   : > { %2570 = vmatmul.mubr.msk.bf16.gmra.mrb[44].mxu1 %vm481_vm1, %v2920_v47 }
  0x6c   : > { %2678 = vmatmul.mubr.msk.bf16.gmra.mrb[12].mxu0 %vm481_vm1, %v3149_v43  ;;  %2573 = vmatprep.mubr.msk.bf16.mxu1 %vm481_vm1, %v2921_v48 }
  0x6d   : > { %2681 = vmatprep.mubr.msk.bf16.mxu0 %vm481_vm1, %v2917_v44 }
  0x73   : > { %2574 = vmatmul.mubr.msk.bf16.gmra.mrb[48].mxu1 %vm481_vm1, %v2922_v49 }
  0x74   : > { %2682 = vmatmul.mubr.msk.bf16.gmra.mrb[16].mxu0 %vm481_vm1, %v2918_v45  ;;  %2577 = vmatprep.mubr.msk.bf16.mxu1 %vm481_vm1, %v2923_v50 }
  0x75   : > { %2685 = vmatprep.mubr.msk.bf16.mxu0 %vm481_vm1, %v2919_v46 }
  0x7b   : > { %2578 = vmatmul.mubr.msk.bf16.gmra.mrb[52].mxu1 %vm481_vm1, %v2924_v51 }
  0x7c   : > { %2686 = vmatmul.mubr.msk.bf16.gmra.mrb[20].mxu0 %vm481_vm1, %v2920_v47  ;;  %2581 = vmatprep.mubr.msk.bf16.mxu1 %vm481_vm1, %v2925_v52 }
  0x7d   : > { %2689 = vmatprep.mubr.msk.bf16.mxu0 %vm481_vm1, %v2921_v48 }
  0x83   : > { %2582 = vmatmul.mubr.msk.bf16.gmra.mrb[56].mxu1 %vm481_vm1, %v2926_v53 }
  0x84   : > { %2690 = vmatmul.mubr.msk.bf16.gmra.mrb[24].mxu0 %vm481_vm1, %v2922_v49  ;;  %2585 = vmatprep.mubr.msk.bf16.mxu1 %vm481_vm1, %v2927_v54 }
  0x85   : > { %2693 = vmatprep.mubr.msk.bf16.mxu0 %vm481_vm1, %v2923_v50 }
  0x8b   : > { %2586 = vmatmul.mubr.msk.bf16.gmra.mrb[60].mxu1 %vm481_vm1, %v2928_v55 }
  0x8c   : > { %2694 = vmatmul.mubr.msk.bf16.gmra.mrb[28].mxu0 %vm481_vm1, %v2924_v51  ;;  %2627 = vmatprep.mubr.msk.bf16.mxu1 %vm481_vm1, %v3037_v18 }
  0x8d   : > { %2697 = vmatprep.mubr.msk.bf16.mxu0 %vm481_vm1, %v2925_v52 }
  0x93   : > { %2628 = vmatmul.mubr.msk.bf16.vlgmr.msra.gmra.mrb[32].mxu1 %vm481_vm1, %v3047_v20 }
  0x94   : > { %2698 = vmatmul.mubr.msk.bf16.gmra.mrb[32].mxu0 %vm481_vm1, %v2926_v53  ;;  %2631 = vmatprep.mubr.msk.bf16.mxu1 %vm481_vm1, %v3051_v22 }
  0x95   : > { %2701 = vmatprep.mubr.msk.bf16.mxu0 %vm481_vm1, %v2927_v54 }
  0x9b   : > { %2632 = vmatmul.mubr.msk.bf16.gmra.mrb[36].mxu1 %vm481_vm1, %v3061_v24 }
  0x9c   : > { %2702 = vmatmul.mubr.msk.bf16.gmra.mrb[36].mxu0 %vm481_vm1, %v2928_v55  ;;  %2635 = vmatprep.mubr.msk.bf16.mxu1 %vm481_vm1, %v3070_v28 }
  0x9d   : > { %2705 = vmatprep.mubr.msk.bf16.mxu0 %vm481_vm1, %v2929_v56 }
  0xa3   : > { %2636 = vmatmul.mubr.msk.bf16.gmra.mrb[40].mxu1 %vm481_vm1, %v3080_v30 }
  0xa4   : > { %2706 = vmatmul.mubr.msk.bf16.gmra.mrb[40].mxu0 %vm481_vm1, %v2930_v57  ;;  %2639 = vmatprep.mubr.msk.bf16.mxu1 %vm481_vm1, %v3084_v32 }
  0xa5   : > { %2709 = vmatprep.mubr.msk.bf16.mxu0 %vm481_vm1, %v2931_v58 }
  0xab   : > { %2640 = vmatmul.mubr.msk.bf16.gmra.mrb[44].mxu1 %vm481_vm1, %v3094_v34 }
  0xac   : > { %2710 = vmatmul.mubr.msk.bf16.gmra.mrb[44].mxu0 %vm481_vm1, %v2932_v59  ;;  %2643 = vmatprep.mubr.msk.bf16.mxu1 %vm481_vm1, %v3098_v36 }
  0xad   : > { %2713 = vmatprep.mubr.msk.bf16.mxu0 %vm481_vm1, %v2933_v60 }
  0xb3   : > { %2644 = vmatmul.mubr.msk.bf16.gmra.mrb[48].mxu1 %vm481_vm1, %v3108_v37 }
  0xb4   : > { %2714 = vmatmul.mubr.msk.bf16.gmra.mrb[48].mxu0 %vm481_vm1, %v2934_v61  ;;  %2647 = vmatprep.mubr.msk.bf16.mxu1 %vm481_vm1, %v3111_v38 }
  0xb5   : > { %2717 = vmatprep.mubr.msk.bf16.mxu0 %vm481_vm1, %v2935_v62 }
  0xbb   : > { %2648 = vmatmul.mubr.msk.bf16.gmra.mrb[52].mxu1 %vm481_vm1, %v3122_v39 }
  0xbc   : > { %2718 = vmatmul.mubr.msk.bf16.gmra.mrb[52].mxu0 %vm481_vm1, %v2936_v63  ;;  %2651 = vmatprep.mubr.msk.bf16.mxu1 %vm481_vm1, %v3125_v40 }
  0xbd   : > { %2721 = vmatprep.mubr.msk.bf16.mxu0 %vm481_vm1, %v2937_v0 }
  0xc3   : > { %2652 = vmatmul.mubr.msk.bf16.gmra.mrb[56].mxu1 %vm481_vm1, %v3135_v41 }
  0xc4   : > { %2722 = vmatmul.mubr.msk.bf16.gmra.mrb[56].mxu0 %vm481_vm1, %v2938_v1  ;;  %2655 = vmatprep.mubr.msk.bf16.mxu1 %vm481_vm1, %v3138_v42 }
  0xc5   : > { %2725 = vmatprep.mubr.msk.bf16.mxu0 %vm481_vm1, %v2939_v2 }
  0xcb   : > { %2656 = vmatmul.mubr.msk.bf16.gmra.mrb[60].mxu1 %vm481_vm1, %v3149_v43 }
  0xcc   : > { %2726 = vmatmul.mubr.msk.bf16.gmra.mrb[60].mxu0 %vm481_vm1, %v2940_v3 }
  0xe6   : > { %v2527_v4 = vpop.f32.mrb[0].mxu1 }
  0xe7   : > { %v616_v5 = vpop.f32.mrb[1].mxu1 }
  0xe8   : > { %v2528_v6 = vpop.f32.mrb[2].mxu1 }
  0xe9   : > { %v619_v7 = vpop.f32.mrb[3].mxu1 }
  0xee   : > { %v2531_v8 = vpop.f32.mrb[4].mxu1 }
  0xef   : > { %v632_v9 = vpop.f32.mrb[5].mxu1 }
  0xf0   : > { %v3255_v10 = vpop.f32.mrb[6].mxu1 }
  0xf1   : > { %v3257_v11 = vpop.f32.mrb[7].mxu1 }
  0xf6   : > { %v3259_v12 = vpop.f32.mrb[8].mxu1 }
  0xf7   : > { %v3261_v13 = vpop.f32.mrb[9].mxu1 }
  0xf8   : > { %v3263_v14 = vpop.f32.mrb[10].mxu1 }
  0xf9   : > { %v3265_v15 = vpop.f32.mrb[11].mxu1 }
  0xfe   : > { %v3267_v16 = vpop.f32.mrb[12].mxu1 }
  0xff   : > { %v3269_v17 = vpop.f32.mrb[13].mxu1 }
 0x100   : > { %v3271_v18 = vpop.f32.mrb[14].mxu1 }
 0x101   : > { %v3273_v19 = vpop.f32.mrb[15].mxu1 }
 0x106   : > { %v3275_v20 = vpop.f32.mrb[16].mxu1 }
 0x107   : > { %v3277_v21 = vpop.f32.mrb[17].mxu1 }
 0x108   : > { %v3279_v22 = vpop.f32.mrb[18].mxu1 }
 0x109   : > { %v3281_v23 = vpop.f32.mrb[19].mxu1 }
 0x10e   : > { %v3283_v24 = vpop.f32.mrb[20].mxu1 }
 0x10f   : > { %v3285_v25 = vpop.f32.mrb[21].mxu1 }
 0x110   : > { %v3287_v26 = vpop.f32.mrb[22].mxu1 }
 0x111   : > { %v3289_v27 = vpop.f32.mrb[23].mxu1 }
 0x116   : > { %v3291_v28 = vpop.f32.mrb[24].mxu1 }
 0x117   : > { %v3293_v29 = vpop.f32.mrb[25].mxu1 }
 0x118   : > { %v3295_v30 = vpop.f32.mrb[26].mxu1 }
 0x119   : > { %v3297_v31 = vpop.f32.mrb[27].mxu1 }
 0x11e   : > { %v3299_v32 = vpop.f32.mrb[28].mxu1 }
 0x11f   : > { %v3301_v33 = vpop.f32.mrb[29].mxu1 }
 0x120   : > { %v3303_v34 = vpop.f32.mrb[30].mxu1 }
 0x121   : > { %v3305_v35 = vpop.f32.mrb[31].mxu1 }
 0x127   : > { %v2667_v36 = vpop.f32.mrb[0].mxu0 }
 0x128   : > { %v2735_v37 = vadd.f32 %v2667_v36, %v2527_v4  ;;  %v1428_v38 = vpop.f32.mrb[1].mxu0 }
 0x129   : > { %v2736_v39 = vadd.f32 %v1428_v38, %v616_v5  ;;  %v2668_v40 = vpop.f32.mrb[2].mxu0 }
 0x12a   : > { %1750 = vst.msk [vmem:[%s3311_s14 + $0x10] sm:$0xff] %vm1747_vm2, %v2735_v37  ;;  %v2737_v41 = vadd.f32 %v2668_v40, %v2528_v6  ;;  %v1431_v42 = vpop.f32.mrb[3].mxu0  ;;  %v1949_v45 = vmul.f32 %v2735_v37, %v2735_v37  ;;  %v1815_v51 = vsel %vm1747_vm2, %v2735_v37, 0.0 }
 0x12b   : > { %1748 = vst.msk [vmem:[%s3311_s14] sm:$0xff] %vm1747_vm2, %v2736_v39  ;;  %v1947_v43 = vmul.f32 %v2736_v39, %v2736_v39  ;;  %v2738_v44 = vadd.f32 %v1431_v42, %v619_v7  ;;  %v1812_v46 = vsel %vm1747_vm2, %v2736_v39, 0.0 }
 0x12c   : > { %1751 = vst.msk [vmem:[%s3311_s14 + $0x18] sm:$0xff] %vm1747_vm2, %v2737_v41  ;;  %v1950_v49 = vmul.f32 %v2737_v41, %v2737_v41  ;;  %v2014_v59 = vsel %vm1747_vm2, %v1949_v45, 0.0  ;;  %v1817_v60 = vsel %vm1747_vm2, %v2737_v41, 0.0 }
 0x12d   : > { %1749 = vst.msk [vmem:[%s3311_s14 + $0x8] sm:$0xff] %vm1747_vm2, %v2738_v44  ;;  %v1813_v47 = vsel %vm1747_vm2, %v2738_v44, 0.0  ;;  %v1948_v48 = vmul.f32 %v2738_v44, %v2738_v44  ;;  %v2011_v52 = vsel %vm1747_vm2, %v1947_v43, 0.0 }
 0x12e   : > { %v1814_v50 = vadd.f32 %v1813_v47, %v1812_v46  ;;  %v2016_v63 = vsel %vm1747_vm2, %v1950_v49, 0.0 }
 0x12f   : > { %v2012_v53 = vsel %vm1747_vm2, %v1948_v48, 0.0  ;;  %v2671_v54 = vpop.f32.mrb[4].mxu0 }
 0x130   : > { %v1816_v55 = vadd.f32 %v1815_v51, %v1814_v50  ;;  %v2013_v56 = vadd.f32 %v2012_v53, %v2011_v52  ;;  %v2739_v57 = vadd.f32 %v2671_v54, %v2531_v8  ;;  %v1444_v58 = vpop.f32.mrb[5].mxu0 }
 0x131   : > { %v2740_v61 = vadd.f32 %v1444_v58, %v632_v9  ;;  %v2672_v62 = vpop.f32.mrb[6].mxu0 }
 0x132   : > { %v2015_v0 = vadd.f32 %v2014_v59, %v2013_v56  ;;  %1754 = vst.msk [vmem:[%s3311_s14 + $0x30] sm:$0xff] %vm1747_vm2, %v2739_v57  ;;  %v1818_v1 = vadd.f32 %v1817_v60, %v1816_v55  ;;  %v1447_v2 = vpop.f32.mrb[7].mxu0  ;;  %v2741_v5 = vadd.f32 %v2672_v62, %v3255_v10  ;;  %v1953_v37 = vmul.f32 %v2739_v57, %v2739_v57 }
 0x133   : > { %1752 = vst.msk [vmem:[%s3311_s14 + $0x20] sm:$0xff] %vm1747_vm2, %v2740_v61  ;;  %v1819_v3 = vsel %vm1747_vm2, %v2740_v61, 0.0  ;;  %v1951_v4 = vmul.f32 %v2740_v61, %v2740_v61  ;;  %v2742_v6 = vadd.f32 %v1447_v2, %v3257_v11  ;;  %v1823_v41 = vsel %vm1747_vm2, %v2739_v57, 0.0 }
 0x134   : > { %v1820_v7 = vadd.f32 %v1819_v3, %v1818_v1  ;;  %v2017_v8 = vadd.f32 %v2016_v63, %v2015_v0  ;;  %1755 = vst.msk [vmem:[%s3311_s14 + $0x38] sm:$0xff] %vm1747_vm2, %v2741_v5  ;;  %v1954_v11 = vmul.f32 %v2741_v5, %v2741_v5  ;;  %v1825_v46 = vsel %vm1747_vm2, %v2741_v5, 0.0 }
 0x135   : > { %v2018_v9 = vsel %vm1747_vm2, %v1951_v4, 0.0  ;;  %1753 = vst.msk [vmem:[%s3311_s14 + $0x28] sm:$0xff] %vm1747_vm2, %v2742_v6  ;;  %v1821_v36 = vsel %vm1747_vm2, %v2742_v6, 0.0  ;;  %v1952_v40 = vmul.f32 %v2742_v6, %v2742_v6  ;;  %v2022_v50 = vsel %vm1747_vm2, %v1953_v37, 0.0 }
 0x136   : > { %v2019_v38 = vadd.f32 %v2018_v9, %v2017_v8  ;;  %v1822_v39 = vadd.f32 %v1821_v36, %v1820_v7 }
 0x137   : > { %v2675_v10 = vpop.f32.mrb[8].mxu0  ;;  %v2020_v43 = vsel %vm1747_vm2, %v1952_v40, 0.0 }
 0x138   : > { %v1824_v42 = vadd.f32 %v1823_v41, %v1822_v39  ;;  %v2743_v44 = vadd.f32 %v2675_v10, %v3259_v12  ;;  %v1460_v45 = vpop.f32.mrb[9].mxu0  ;;  %v2021_v47 = vadd.f32 %v2020_v43, %v2019_v38 }
 0x139   : > { %v2744_v48 = vadd.f32 %v1460_v45, %v3261_v13  ;;  %v2676_v49 = vpop.f32.mrb[10].mxu0  ;;  %v2024_v13 = vsel %vm1747_vm2, %v1954_v11, 0.0 }
 0x13a   : > { %1758 = vst.msk [vmem:[%s3311_s14 + $0x50] sm:$0xff] %vm1747_vm2, %v2743_v44  ;;  %v1826_v51 = vadd.f32 %v1825_v46, %v1824_v42  ;;  %v2745_v52 = vadd.f32 %v2676_v49, %v3263_v14  ;;  %v1463_v53 = vpop.f32.mrb[11].mxu0  ;;  %v2023_v54 = vadd.f32 %v2022_v50, %v2021_v47  ;;  %v1957_v61 = vmul.f32 %v2743_v44, %v2743_v44 }
 0x13b   : > { %1756 = vst.msk [vmem:[%s3311_s14 + $0x40] sm:$0xff] %vm1747_vm2, %v2744_v48  ;;  %v1827_v12 = vsel %vm1747_vm2, %v2744_v48, 0.0  ;;  %v1955_v55 = vmul.f32 %v2744_v48, %v2744_v48  ;;  %v2746_v56 = vadd.f32 %v1463_v53, %v3265_v15  ;;  %v1831_v63 = vsel %vm1747_vm2, %v2743_v44, 0.0 }
 0x13c   : > { %v1828_v57 = vadd.f32 %v1827_v12, %v1826_v51  ;;  %1759 = vst.msk [vmem:[%s3311_s14 + $0x58] sm:$0xff] %vm1747_vm2, %v2745_v52  ;;  %v2025_v58 = vadd.f32 %v2024_v13, %v2023_v54  ;;  %v1958_v2 = vmul.f32 %v2745_v52, %v2745_v52  ;;  %v1833_v6 = vsel %vm1747_vm2, %v2745_v52, 0.0 }
 0x13d   : > { %v2026_v59 = vsel %vm1747_vm2, %v1955_v55, 0.0  ;;  %1757 = vst.msk [vmem:[%s3311_s14 + $0x48] sm:$0xff] %vm1747_vm2, %v2746_v56  ;;  %v1829_v14 = vsel %vm1747_vm2, %v2746_v56, 0.0  ;;  %v1956_v60 = vmul.f32 %v2746_v56, %v2746_v56  ;;  %v2030_v36 = vsel %vm1747_vm2, %v1957_v61, 0.0 }
 0x13e   : > { %v1830_v62 = vadd.f32 %v1829_v14, %v1828_v57  ;;  %v2027_v0 = vadd.f32 %v2026_v59, %v2025_v58 }
 0x13f   : > { %v2028_v15 = vsel %vm1747_vm2, %v1956_v60, 0.0  ;;  %v2679_v1 = vpop.f32.mrb[12].mxu0 }
 0x140   : > { %v1832_v3 = vadd.f32 %v1831_v63, %v1830_v62  ;;  %v2747_v4 = vadd.f32 %v2679_v1, %v3267_v16  ;;  %v1476_v5 = vpop.f32.mrb[13].mxu0  ;;  %v2029_v7 = vadd.f32 %v2028_v15, %v2027_v0 }
 0x141   : > { %v2748_v8 = vadd.f32 %v1476_v5, %v3269_v17  ;;  %v2680_v9 = vpop.f32.mrb[14].mxu0  ;;  %v2032_v17 = vsel %vm1747_vm2, %v1958_v2, 0.0 }
 0x142   : > { %1762 = vst.msk [vmem:[%s3311_s14 + $0x70] sm:$0xff] %vm1747_vm2, %v2747_v4  ;;  %v1834_v37 = vadd.f32 %v1833_v6, %v1832_v3  ;;  %v2749_v38 = vadd.f32 %v2680_v9, %v3271_v18  ;;  %v1479_v39 = vpop.f32.mrb[15].mxu0  ;;  %v2031_v40 = vadd.f32 %v2030_v36, %v2029_v7  ;;  %v1961_v45 = vmul.f32 %v2747_v4, %v2747_v4 }
 0x143   : > { %1760 = vst.msk [vmem:[%s3311_s14 + $0x60] sm:$0xff] %vm1747_vm2, %v2748_v8  ;;  %v1835_v16 = vsel %vm1747_vm2, %v2748_v8, 0.0  ;;  %v1959_v41 = vmul.f32 %v2748_v8, %v2748_v8  ;;  %v2750_v10 = vadd.f32 %v1479_v39, %v3273_v19  ;;  %v1839_v47 = vsel %vm1747_vm2, %v2747_v4, 0.0 }
 0x144   : > { %v1836_v11 = vadd.f32 %v1835_v16, %v1834_v37  ;;  %1763 = vst.msk [vmem:[%s3311_s14 + $0x78] sm:$0xff] %vm1747_vm2, %v2749_v38  ;;  %v2033_v42 = vadd.f32 %v2032_v17, %v2031_v40  ;;  %v1962_v50 = vmul.f32 %v2749_v38, %v2749_v38  ;;  %v1841_v54 = vsel %vm1747_vm2, %v2749_v38, 0.0 }
 0x145   : > { %v2034_v43 = vsel %vm1747_vm2, %v1959_v41, 0.0  ;;  %1761 = vst.msk [vmem:[%s3311_s14 + $0x68] sm:$0xff] %vm1747_vm2, %v2750_v10  ;;  %v1837_v18 = vsel %vm1747_vm2, %v2750_v10, 0.0  ;;  %v1960_v44 = vmul.f32 %v2750_v10, %v2750_v10  ;;  %v2038_v13 = vsel %vm1747_vm2, %v1961_v45, 0.0 }
 0x146   : > { %v1838_v46 = vadd.f32 %v1837_v18, %v1836_v11  ;;  %v2035_v48 = vadd.f32 %v2034_v43, %v2033_v42 }
 0x147   : > { %v2036_v19 = vsel %vm1747_vm2, %v1960_v44, 0.0  ;;  %v2683_v49 = vpop.f32.mrb[16].mxu0 }
 0x148   : > { %v1840_v51 = vadd.f32 %v1839_v47, %v1838_v46  ;;  %v2751_v52 = vadd.f32 %v2683_v49, %v3275_v20  ;;  %v1492_v53 = vpop.f32.mrb[17].mxu0  ;;  %v2037_v12 = vadd.f32 %v2036_v19, %v2035_v48 }
 0x149   : > { %v2752_v55 = vadd.f32 %v1492_v53, %v3277_v21  ;;  %v2684_v56 = vpop.f32.mrb[18].mxu0  ;;  %v2040_v21 = vsel %vm1747_vm2, %v1962_v50, 0.0 }
 0x14a   : > { %1766 = vst.msk [vmem:[%s3311_s14 + $0x90] sm:$0xff] %vm1747_vm2, %v2751_v52  ;;  %v1842_v57 = vadd.f32 %v1841_v54, %v1840_v51  ;;  %v2753_v58 = vadd.f32 %v2684_v56, %v3279_v22  ;;  %v1495_v59 = vpop.f32.mrb[19].mxu0  ;;  %v2039_v14 = vadd.f32 %v2038_v13, %v2037_v12  ;;  %v1965_v1 = vmul.f32 %v2751_v52, %v2751_v52 }
 0x14b   : > { %1764 = vst.msk [vmem:[%s3311_s14 + $0x80] sm:$0xff] %vm1747_vm2, %v2752_v55  ;;  %v1843_v20 = vsel %vm1747_vm2, %v2752_v55, 0.0  ;;  %v1963_v60 = vmul.f32 %v2752_v55, %v2752_v55  ;;  %v2754_v61 = vadd.f32 %v1495_v59, %v3281_v23  ;;  %v1847_v3 = vsel %vm1747_vm2, %v2751_v52, 0.0 }
 0x14c   : > { %v1844_v62 = vadd.f32 %v1843_v20, %v1842_v57  ;;  %1767 = vst.msk [vmem:[%s3311_s14 + $0x98] sm:$0xff] %vm1747_vm2, %v2753_v58  ;;  %v2041_v63 = vadd.f32 %v2040_v21, %v2039_v14  ;;  %v1966_v6 = vmul.f32 %v2753_v58, %v2753_v58  ;;  %v1849_v36 = vsel %vm1747_vm2, %v2753_v58, 0.0 }
 0x14d   : > { %v2042_v0 = vsel %vm1747_vm2, %v1963_v60, 0.0  ;;  %1765 = vst.msk [vmem:[%s3311_s14 + $0x88] sm:$0xff] %vm1747_vm2, %v2754_v61  ;;  %v1845_v22 = vsel %vm1747_vm2, %v2754_v61, 0.0  ;;  %v1964_v15 = vmul.f32 %v2754_v61, %v2754_v61  ;;  %v2046_v40 = vsel %vm1747_vm2, %v1965_v1, 0.0 }
 0x14e   : > { %v1846_v2 = vadd.f32 %v1845_v22, %v1844_v62  ;;  %v2043_v4 = vadd.f32 %v2042_v0, %v2041_v63 }
 0x14f   : > { %v2044_v23 = vsel %vm1747_vm2, %v1964_v15, 0.0  ;;  %v2687_v5 = vpop.f32.mrb[20].mxu0 }
 0x150   : > { %v1848_v7 = vadd.f32 %v1847_v3, %v1846_v2  ;;  %v2755_v8 = vadd.f32 %v2687_v5, %v3283_v24  ;;  %v1508_v9 = vpop.f32.mrb[21].mxu0  ;;  %v2045_v37 = vadd.f32 %v2044_v23, %v2043_v4 }
 0x151   : > { %v2756_v38 = vadd.f32 %v1508_v9, %v3285_v25  ;;  %v2688_v39 = vpop.f32.mrb[22].mxu0  ;;  %v2048_v25 = vsel %vm1747_vm2, %v1966_v6, 0.0 }
 0x152   : > { %1770 = vst.msk [vmem:[%s3311_s14 + $0xb0] sm:$0xff] %vm1747_vm2, %v2755_v8  ;;  %v1850_v16 = vadd.f32 %v1849_v36, %v1848_v7  ;;  %v2757_v41 = vadd.f32 %v2688_v39, %v3287_v26  ;;  %v1511_v10 = vpop.f32.mrb[23].mxu0  ;;  %v2047_v17 = vadd.f32 %v2046_v40, %v2045_v37  ;;  %v1969_v46 = vmul.f32 %v2755_v8, %v2755_v8 }
 0x153   : > { %1768 = vst.msk [vmem:[%s3311_s14 + $0xa0] sm:$0xff] %vm1747_vm2, %v2756_v38  ;;  %v1851_v24 = vsel %vm1747_vm2, %v2756_v38, 0.0  ;;  %v1967_v11 = vmul.f32 %v2756_v38, %v2756_v38  ;;  %v2758_v42 = vadd.f32 %v1511_v10, %v3289_v27  ;;  %v1855_v48 = vsel %vm1747_vm2, %v2755_v8, 0.0 }
 0x154   : > { %v1852_v43 = vadd.f32 %v1851_v24, %v1850_v16  ;;  %1771 = vst.msk [vmem:[%s3311_s14 + $0xb8] sm:$0xff] %vm1747_vm2, %v2757_v41  ;;  %v2049_v18 = vadd.f32 %v2048_v25, %v2047_v17  ;;  %v1970_v50 = vmul.f32 %v2757_v41, %v2757_v41  ;;  %v1857_v54 = vsel %vm1747_vm2, %v2757_v41, 0.0 }
 0x155   : > { %v2050_v44 = vsel %vm1747_vm2, %v1967_v11, 0.0  ;;  %1769 = vst.msk [vmem:[%s3311_s14 + $0xa8] sm:$0xff] %vm1747_vm2, %v2758_v42  ;;  %v1853_v26 = vsel %vm1747_vm2, %v2758_v42, 0.0  ;;  %v1968_v45 = vmul.f32 %v2758_v42, %v2758_v42  ;;  %v2054_v13 = vsel %vm1747_vm2, %v1969_v46, 0.0 }
 0x156   : > { %v1854_v47 = vadd.f32 %v1853_v26, %v1852_v43  ;;  %v2051_v19 = vadd.f32 %v2050_v44, %v2049_v18 }
 0x157   : > { %v2052_v27 = vsel %vm1747_vm2, %v1968_v45, 0.0  ;;  %v2691_v49 = vpop.f32.mrb[24].mxu0 }
 0x158   : > { %v1856_v51 = vadd.f32 %v1855_v48, %v1854_v47  ;;  %v2759_v52 = vadd.f32 %v2691_v49, %v3291_v28  ;;  %v1524_v53 = vpop.f32.mrb[25].mxu0  ;;  %v2053_v12 = vadd.f32 %v2052_v27, %v2051_v19 }
 0x159   : > { %v2760_v55 = vadd.f32 %v1524_v53, %v3293_v29  ;;  %v2692_v56 = vpop.f32.mrb[26].mxu0  ;;  %v2056_v29 = vsel %vm1747_vm2, %v1970_v50, 0.0 }
 0x15a   : > { %1774 = vst.msk [vmem:[%s3311_s14 + $0xd0] sm:$0xff] %vm1747_vm2, %v2759_v52  ;;  %v1858_v57 = vadd.f32 %v1857_v54, %v1856_v51  ;;  %v2761_v58 = vadd.f32 %v2692_v56, %v3295_v30  ;;  %v1527_v59 = vpop.f32.mrb[27].mxu0  ;;  %v2055_v14 = vadd.f32 %v2054_v13, %v2053_v12  ;;  %v1973_v0 = vmul.f32 %v2759_v52, %v2759_v52 }
 0x15b   : > { %1772 = vst.msk [vmem:[%s3311_s14 + $0xc0] sm:$0xff] %vm1747_vm2, %v2760_v55  ;;  %v1859_v28 = vsel %vm1747_vm2, %v2760_v55, 0.0  ;;  %v1971_v20 = vmul.f32 %v2760_v55, %v2760_v55  ;;  %v2762_v60 = vadd.f32 %v1527_v59, %v3297_v31  ;;  %v1863_v15 = vsel %vm1747_vm2, %v2759_v52, 0.0 }
 0x15c   : > { %v1860_v61 = vadd.f32 %v1859_v28, %v1858_v57  ;;  %1775 = vst.msk [vmem:[%s3311_s14 + $0xd8] sm:$0xff] %vm1747_vm2, %v2761_v58  ;;  %v2057_v21 = vadd.f32 %v2056_v29, %v2055_v14  ;;  %v1974_v3 = vmul.f32 %v2761_v58, %v2761_v58  ;;  %v1865_v6 = vsel %vm1747_vm2, %v2761_v58, 0.0 }
 0x15d   : > { %v2058_v62 = vsel %vm1747_vm2, %v1971_v20, 0.0  ;;  %1773 = vst.msk [vmem:[%s3311_s14 + $0xc8] sm:$0xff] %vm1747_vm2, %v2762_v60  ;;  %v1861_v30 = vsel %vm1747_vm2, %v2762_v60, 0.0  ;;  %v1972_v63 = vmul.f32 %v2762_v60, %v2762_v60  ;;  %v2062_v36 = vsel %vm1747_vm2, %v1973_v0, 0.0 }
 0x15e   : > { %v1862_v22 = vadd.f32 %v1861_v30, %v1860_v61  ;;  %v2059_v1 = vadd.f32 %v2058_v62, %v2057_v21 }
 0x15f   : > { %v2060_v31 = vsel %vm1747_vm2, %v1972_v63, 0.0  ;;  %v2695_v2 = vpop.f32.mrb[28].mxu0 }
 0x160   : > { %v1864_v4 = vadd.f32 %v1863_v15, %v1862_v22  ;;  %v2763_v23 = vadd.f32 %v2695_v2, %v3299_v32  ;;  %v1540_v5 = vpop.f32.mrb[29].mxu0  ;;  %v2061_v7 = vadd.f32 %v2060_v31, %v2059_v1 }
 0x161   : > { %v2764_v8 = vadd.f32 %v1540_v5, %v3301_v33  ;;  %v2696_v9 = vpop.f32.mrb[30].mxu0  ;;  %v2064_v33 = vsel %vm1747_vm2, %v1974_v3, 0.0 }
 0x162   : > { %1778 = vst.msk [vmem:[%s3311_s14 + $0xf0] sm:$0xff] %vm1747_vm2, %v2763_v23  ;;  %v1866_v37 = vadd.f32 %v1865_v6, %v1864_v4  ;;  %v2765_v38 = vadd.f32 %v2696_v9, %v3303_v34  ;;  %v1543_v39 = vpop.f32.mrb[31].mxu0  ;;  %v2063_v40 = vadd.f32 %v2062_v36, %v2061_v7  ;;  %v1977_v42 = vmul.f32 %v2763_v23, %v2763_v23 }
 0x163   : > { %1776 = vst.msk [vmem:[%s3311_s14 + $0xe0] sm:$0xff] %vm1747_vm2, %v2764_v8  ;;  %v1867_v32 = vsel %vm1747_vm2, %v2764_v8, 0.0  ;;  %v1975_v16 = vmul.f32 %v2764_v8, %v2764_v8  ;;  %v2766_v41 = vadd.f32 %v1543_v39, %v3305_v35  ;;  %v1871_v18 = vsel %vm1747_vm2, %v2763_v23, 0.0 }
 0x164   : > { %v1868_v10 = vadd.f32 %v1867_v32, %v1866_v37  ;;  %1779 = vst.msk [vmem:[%s3311_s14 + $0xf8] sm:$0xff] %vm1747_vm2, %v2765_v38  ;;  %v2065_v17 = vadd.f32 %v2064_v33, %v2063_v40  ;;  %v1978_v46 = vmul.f32 %v2765_v38, %v2765_v38  ;;  %v1873_v49 = vsel %vm1747_vm2, %v2765_v38, 0.0 }
 0x165   : > { %v2066_v24 = vsel %vm1747_vm2, %v1975_v16, 0.0  ;;  %1777 = vst.msk [vmem:[%s3311_s14 + $0xe8] sm:$0xff] %vm1747_vm2, %v2766_v41  ;;  %v1869_v34 = vsel %vm1747_vm2, %v2766_v41, 0.0  ;;  %v1976_v11 = vmul.f32 %v2766_v41, %v2766_v41  ;;  %v2070_v54 = vsel %vm1747_vm2, %v1977_v42, 0.0 }
 0x166   : > { %v1870_v25 = vadd.f32 %v1869_v34, %v1868_v10  ;;  %v2629_v43 = vpop.f32.mrb[32].mxu1  ;;  %v2067_v35 = vadd.f32 %v2066_v24, %v2065_v17  ;;  %v2072_v14 = vsel %vm1747_vm2, %v1978_v46, 0.0 }
 0x167   : > { %v2068_v44 = vsel %vm1747_vm2, %v1976_v11, 0.0  ;;  %v2699_v26 = vpop.f32.mrb[32].mxu0  ;;  %v1147_v45 = vpop.f32.mrb[33].mxu1 }
 0x168   : > { %v1872_v47 = vadd.f32 %v1871_v18, %v1870_v25  ;;  %v2767_v48 = vadd.f32 %v2699_v26, %v2629_v43  ;;  %v1556_v19 = vpop.f32.mrb[33].mxu0  ;;  %v2630_v27 = vpop.f32.mrb[34].mxu1  ;;  %v2069_v50 = vadd.f32 %v2068_v44, %v2067_v35 }
 0x169   : > { %v2768_v51 = vadd.f32 %v1556_v19, %v1147_v45  ;;  %v2700_v52 = vpop.f32.mrb[34].mxu0  ;;  %v1150_v53 = vpop.f32.mrb[35].mxu1 }
 0x16a   : > { %1782 = vst.msk [vmem:[%s3311_s14 + $0x110] sm:$0xff] %vm1747_vm2, %v2767_v48  ;;  %v1874_v12 = vadd.f32 %v1873_v49, %v1872_v47  ;;  %v2769_v55 = vadd.f32 %v2700_v52, %v2630_v27  ;;  %v1559_v56 = vpop.f32.mrb[35].mxu0  ;;  %v2071_v13 = vadd.f32 %v2070_v54, %v2069_v50  ;;  %v1981_v21 = vmul.f32 %v2767_v48, %v2767_v48 }
 0x16b   : > { %1780 = vst.msk [vmem:[%s3311_s14 + $0x100] sm:$0xff] %vm1747_vm2, %v2768_v51  ;;  %v1875_v57 = vsel %vm1747_vm2, %v2768_v51, 0.0  ;;  %v1979_v58 = vmul.f32 %v2768_v51, %v2768_v51  ;;  %v2770_v59 = vadd.f32 %v1559_v56, %v1150_v53  ;;  %v1879_v63 = vsel %vm1747_vm2, %v2767_v48, 0.0 }
 0x16c   : > { %v1876_v28 = vadd.f32 %v1875_v57, %v1874_v12  ;;  %1783 = vst.msk [vmem:[%s3311_s14 + $0x118] sm:$0xff] %vm1747_vm2, %v2769_v55  ;;  %v2073_v20 = vadd.f32 %v2072_v14, %v2071_v13  ;;  %v1982_v31 = vmul.f32 %v2769_v55, %v2769_v55  ;;  %v1881_v5 = vsel %vm1747_vm2, %v2769_v55, 0.0 }
 0x16d   : > { %v2074_v60 = vsel %vm1747_vm2, %v1979_v58, 0.0  ;;  %1781 = vst.msk [vmem:[%s3311_s14 + $0x108] sm:$0xff] %vm1747_vm2, %v2770_v59  ;;  %v1877_v29 = vsel %vm1747_vm2, %v2770_v59, 0.0  ;;  %v1980_v61 = vmul.f32 %v2770_v59, %v2770_v59  ;;  %v2078_v36 = vsel %vm1747_vm2, %v1981_v21, 0.0 }
 0x16e   : > { %v1878_v62 = vadd.f32 %v1877_v29, %v1876_v28  ;;  %v2633_v30 = vpop.f32.mrb[36].mxu1  ;;  %v2075_v0 = vadd.f32 %v2074_v60, %v2073_v20  ;;  %v2080_v33 = vsel %vm1747_vm2, %v1982_v31, 0.0 }
 0x16f   : > { %v2076_v22 = vsel %vm1747_vm2, %v1980_v61, 0.0  ;;  %v2703_v15 = vpop.f32.mrb[36].mxu0  ;;  %v1163_v1 = vpop.f32.mrb[37].mxu1 }
 0x170   : > { %v1880_v2 = vadd.f32 %v1879_v63, %v1878_v62  ;;  %v2771_v3 = vadd.f32 %v2703_v15, %v2633_v30  ;;  %v1572_v4 = vpop.f32.mrb[37].mxu0  ;;  %v2634_v23 = vpop.f32.mrb[38].mxu1  ;;  %v2077_v6 = vadd.f32 %v2076_v22, %v2075_v0 }
 0x171   : > { %v2772_v7 = vadd.f32 %v1572_v4, %v1163_v1  ;;  %v2704_v8 = vpop.f32.mrb[38].mxu0  ;;  %v1166_v9 = vpop.f32.mrb[39].mxu1 }
 0x172   : > { %1786 = vst.msk [vmem:[%s3311_s14 + $0x130] sm:$0xff] %vm1747_vm2, %v2771_v3  ;;  %v1882_v37 = vadd.f32 %v1881_v5, %v1880_v2  ;;  %v2773_v38 = vadd.f32 %v2704_v8, %v2634_v23  ;;  %v1575_v39 = vpop.f32.mrb[39].mxu0  ;;  %v2079_v40 = vadd.f32 %v2078_v36, %v2077_v6  ;;  %v1985_v42 = vmul.f32 %v2771_v3, %v2771_v3 }
 0x173   : > { %1784 = vst.msk [vmem:[%s3311_s14 + $0x120] sm:$0xff] %vm1747_vm2, %v2772_v7  ;;  %v1883_v32 = vsel %vm1747_vm2, %v2772_v7, 0.0  ;;  %v1983_v16 = vmul.f32 %v2772_v7, %v2772_v7  ;;  %v2774_v41 = vadd.f32 %v1575_v39, %v1166_v9  ;;  %v1887_v18 = vsel %vm1747_vm2, %v2771_v3, 0.0 }
 0x174   : > { %v1884_v10 = vadd.f32 %v1883_v32, %v1882_v37  ;;  %1787 = vst.msk [vmem:[%s3311_s14 + $0x138] sm:$0xff] %vm1747_vm2, %v2773_v38  ;;  %v2081_v17 = vadd.f32 %v2080_v33, %v2079_v40  ;;  %v1986_v46 = vmul.f32 %v2773_v38, %v2773_v38  ;;  %v1889_v49 = vsel %vm1747_vm2, %v2773_v38, 0.0 }
 0x175   : > { %v2082_v24 = vsel %vm1747_vm2, %v1983_v16, 0.0  ;;  %1785 = vst.msk [vmem:[%s3311_s14 + $0x128] sm:$0xff] %vm1747_vm2, %v2774_v41  ;;  %v1885_v34 = vsel %vm1747_vm2, %v2774_v41, 0.0  ;;  %v1984_v11 = vmul.f32 %v2774_v41, %v2774_v41  ;;  %v2086_v54 = vsel %vm1747_vm2, %v1985_v42, 0.0 }
 0x176   : > { %v1886_v25 = vadd.f32 %v1885_v34, %v1884_v10  ;;  %v2637_v43 = vpop.f32.mrb[40].mxu1  ;;  %v2083_v35 = vadd.f32 %v2082_v24, %v2081_v17  ;;  %v2088_v14 = vsel %vm1747_vm2, %v1986_v46, 0.0 }
 0x177   : > { %v2084_v44 = vsel %vm1747_vm2, %v1984_v11, 0.0  ;;  %v2707_v26 = vpop.f32.mrb[40].mxu0  ;;  %v1179_v45 = vpop.f32.mrb[41].mxu1 }
 0x178   : > { %v1888_v47 = vadd.f32 %v1887_v18, %v1886_v25  ;;  %v2775_v48 = vadd.f32 %v2707_v26, %v2637_v43  ;;  %v1588_v19 = vpop.f32.mrb[41].mxu0  ;;  %v2638_v27 = vpop.f32.mrb[42].mxu1  ;;  %v2085_v50 = vadd.f32 %v2084_v44, %v2083_v35 }
 0x179   : > { %v2776_v51 = vadd.f32 %v1588_v19, %v1179_v45  ;;  %v2708_v52 = vpop.f32.mrb[42].mxu0  ;;  %v1182_v53 = vpop.f32.mrb[43].mxu1 }
 0x17a   : > { %1790 = vst.msk [vmem:[%s3311_s14 + $0x150] sm:$0xff] %vm1747_vm2, %v2775_v48  ;;  %v1890_v12 = vadd.f32 %v1889_v49, %v1888_v47  ;;  %v2777_v55 = vadd.f32 %v2708_v52, %v2638_v27  ;;  %v1591_v56 = vpop.f32.mrb[43].mxu0  ;;  %v2087_v13 = vadd.f32 %v2086_v54, %v2085_v50  ;;  %v1989_v21 = vmul.f32 %v2775_v48, %v2775_v48 }
 0x17b   : > { %1788 = vst.msk [vmem:[%s3311_s14 + $0x140] sm:$0xff] %vm1747_vm2, %v2776_v51  ;;  %v1891_v57 = vsel %vm1747_vm2, %v2776_v51, 0.0  ;;  %v1987_v58 = vmul.f32 %v2776_v51, %v2776_v51  ;;  %v2778_v59 = vadd.f32 %v1591_v56, %v1182_v53  ;;  %v1895_v63 = vsel %vm1747_vm2, %v2775_v48, 0.0 }
 0x17c   : > { %v1892_v28 = vadd.f32 %v1891_v57, %v1890_v12  ;;  %1791 = vst.msk [vmem:[%s3311_s14 + $0x158] sm:$0xff] %vm1747_vm2, %v2777_v55  ;;  %v2089_v20 = vadd.f32 %v2088_v14, %v2087_v13  ;;  %v1990_v31 = vmul.f32 %v2777_v55, %v2777_v55  ;;  %v1897_v5 = vsel %vm1747_vm2, %v2777_v55, 0.0 }
 0x17d   : > { %v2090_v60 = vsel %vm1747_vm2, %v1987_v58, 0.0  ;;  %1789 = vst.msk [vmem:[%s3311_s14 + $0x148] sm:$0xff] %vm1747_vm2, %v2778_v59  ;;  %v1893_v29 = vsel %vm1747_vm2, %v2778_v59, 0.0  ;;  %v1988_v61 = vmul.f32 %v2778_v59, %v2778_v59  ;;  %v2094_v36 = vsel %vm1747_vm2, %v1989_v21, 0.0 }
 0x17e   : > { %v1894_v62 = vadd.f32 %v1893_v29, %v1892_v28  ;;  %v2641_v30 = vpop.f32.mrb[44].mxu1  ;;  %v2091_v0 = vadd.f32 %v2090_v60, %v2089_v20  ;;  %v2096_v33 = vsel %vm1747_vm2, %v1990_v31, 0.0 }
 0x17f   : > { %v2092_v22 = vsel %vm1747_vm2, %v1988_v61, 0.0  ;;  %v2711_v15 = vpop.f32.mrb[44].mxu0  ;;  %v1195_v1 = vpop.f32.mrb[45].mxu1 }
 0x180   : > { %v1896_v2 = vadd.f32 %v1895_v63, %v1894_v62  ;;  %v2779_v3 = vadd.f32 %v2711_v15, %v2641_v30  ;;  %v1604_v4 = vpop.f32.mrb[45].mxu0  ;;  %v2642_v23 = vpop.f32.mrb[46].mxu1  ;;  %v2093_v6 = vadd.f32 %v2092_v22, %v2091_v0 }
 0x181   : > { %v2780_v7 = vadd.f32 %v1604_v4, %v1195_v1  ;;  %v2712_v8 = vpop.f32.mrb[46].mxu0  ;;  %v1198_v9 = vpop.f32.mrb[47].mxu1 }
 0x182   : > { %1794 = vst.msk [vmem:[%s3311_s14 + $0x170] sm:$0xff] %vm1747_vm2, %v2779_v3  ;;  %v1898_v37 = vadd.f32 %v1897_v5, %v1896_v2  ;;  %v2781_v38 = vadd.f32 %v2712_v8, %v2642_v23  ;;  %v1607_v39 = vpop.f32.mrb[47].mxu0  ;;  %v2095_v40 = vadd.f32 %v2094_v36, %v2093_v6  ;;  %v1993_v42 = vmul.f32 %v2779_v3, %v2779_v3 }
 0x183   : > { %1792 = vst.msk [vmem:[%s3311_s14 + $0x160] sm:$0xff] %vm1747_vm2, %v2780_v7  ;;  %v1899_v32 = vsel %vm1747_vm2, %v2780_v7, 0.0  ;;  %v1991_v16 = vmul.f32 %v2780_v7, %v2780_v7  ;;  %v2782_v41 = vadd.f32 %v1607_v39, %v1198_v9  ;;  %v1903_v18 = vsel %vm1747_vm2, %v2779_v3, 0.0 }
 0x184   : > { %v1900_v10 = vadd.f32 %v1899_v32, %v1898_v37  ;;  %1795 = vst.msk [vmem:[%s3311_s14 + $0x178] sm:$0xff] %vm1747_vm2, %v2781_v38  ;;  %v2097_v17 = vadd.f32 %v2096_v33, %v2095_v40  ;;  %v1994_v46 = vmul.f32 %v2781_v38, %v2781_v38  ;;  %v1905_v49 = vsel %vm1747_vm2, %v2781_v38, 0.0 }
 0x185   : > { %v2098_v24 = vsel %vm1747_vm2, %v1991_v16, 0.0  ;;  %1793 = vst.msk [vmem:[%s3311_s14 + $0x168] sm:$0xff] %vm1747_vm2, %v2782_v41  ;;  %v1901_v34 = vsel %vm1747_vm2, %v2782_v41, 0.0  ;;  %v1992_v11 = vmul.f32 %v2782_v41, %v2782_v41  ;;  %v2102_v54 = vsel %vm1747_vm2, %v1993_v42, 0.0 }
 0x186   : > { %v1902_v25 = vadd.f32 %v1901_v34, %v1900_v10  ;;  %v2645_v43 = vpop.f32.mrb[48].mxu1  ;;  %v2099_v35 = vadd.f32 %v2098_v24, %v2097_v17  ;;  %v2104_v14 = vsel %vm1747_vm2, %v1994_v46, 0.0 }
 0x187   : > { %v2100_v44 = vsel %vm1747_vm2, %v1992_v11, 0.0  ;;  %v2715_v26 = vpop.f32.mrb[48].mxu0  ;;  %v1211_v45 = vpop.f32.mrb[49].mxu1 }
 0x188   : > { %v1904_v47 = vadd.f32 %v1903_v18, %v1902_v25  ;;  %v2783_v48 = vadd.f32 %v2715_v26, %v2645_v43  ;;  %v1620_v19 = vpop.f32.mrb[49].mxu0  ;;  %v2646_v27 = vpop.f32.mrb[50].mxu1  ;;  %v2101_v50 = vadd.f32 %v2100_v44, %v2099_v35 }
 0x189   : > { %v2784_v51 = vadd.f32 %v1620_v19, %v1211_v45  ;;  %v2716_v52 = vpop.f32.mrb[50].mxu0  ;;  %v1214_v53 = vpop.f32.mrb[51].mxu1 }
 0x18a   : > { %1798 = vst.msk [vmem:[%s3311_s14 + $0x190] sm:$0xff] %vm1747_vm2, %v2783_v48  ;;  %v1906_v12 = vadd.f32 %v1905_v49, %v1904_v47  ;;  %v2785_v55 = vadd.f32 %v2716_v52, %v2646_v27  ;;  %v1623_v56 = vpop.f32.mrb[51].mxu0  ;;  %v2103_v13 = vadd.f32 %v2102_v54, %v2101_v50  ;;  %v1997_v21 = vmul.f32 %v2783_v48, %v2783_v48 }
 0x18b   : > { %1796 = vst.msk [vmem:[%s3311_s14 + $0x180] sm:$0xff] %vm1747_vm2, %v2784_v51  ;;  %v1907_v57 = vsel %vm1747_vm2, %v2784_v51, 0.0  ;;  %v1995_v58 = vmul.f32 %v2784_v51, %v2784_v51  ;;  %v2786_v59 = vadd.f32 %v1623_v56, %v1214_v53  ;;  %v1911_v63 = vsel %vm1747_vm2, %v2783_v48, 0.0 }
 0x18c   : > { %v1908_v28 = vadd.f32 %v1907_v57, %v1906_v12  ;;  %1799 = vst.msk [vmem:[%s3311_s14 + $0x198] sm:$0xff] %vm1747_vm2, %v2785_v55  ;;  %v2105_v20 = vadd.f32 %v2104_v14, %v2103_v13  ;;  %v1998_v31 = vmul.f32 %v2785_v55, %v2785_v55  ;;  %v1913_v5 = vsel %vm1747_vm2, %v2785_v55, 0.0 }
 0x18d   : > { %v2106_v60 = vsel %vm1747_vm2, %v1995_v58, 0.0  ;;  %1797 = vst.msk [vmem:[%s3311_s14 + $0x188] sm:$0xff] %vm1747_vm2, %v2786_v59  ;;  %v1909_v29 = vsel %vm1747_vm2, %v2786_v59, 0.0  ;;  %v1996_v61 = vmul.f32 %v2786_v59, %v2786_v59  ;;  %v2110_v36 = vsel %vm1747_vm2, %v1997_v21, 0.0 }
 0x18e   : > { %v1910_v62 = vadd.f32 %v1909_v29, %v1908_v28  ;;  %v2649_v30 = vpop.f32.mrb[52].mxu1  ;;  %v2107_v0 = vadd.f32 %v2106_v60, %v2105_v20  ;;  %v2112_v33 = vsel %vm1747_vm2, %v1998_v31, 0.0 }
 0x18f   : > { %v2108_v22 = vsel %vm1747_vm2, %v1996_v61, 0.0  ;;  %v2719_v15 = vpop.f32.mrb[52].mxu0  ;;  %v1227_v1 = vpop.f32.mrb[53].mxu1 }
 0x190   : > { %v1912_v2 = vadd.f32 %v1911_v63, %v1910_v62  ;;  %v2787_v3 = vadd.f32 %v2719_v15, %v2649_v30  ;;  %v1636_v4 = vpop.f32.mrb[53].mxu0  ;;  %v2650_v23 = vpop.f32.mrb[54].mxu1  ;;  %v2109_v6 = vadd.f32 %v2108_v22, %v2107_v0 }
 0x191   : > { %v2788_v7 = vadd.f32 %v1636_v4, %v1227_v1  ;;  %v2720_v8 = vpop.f32.mrb[54].mxu0  ;;  %v1230_v9 = vpop.f32.mrb[55].mxu1 }
 0x192   : > { %1802 = vst.msk [vmem:[%s3311_s14 + $0x1b0] sm:$0xff] %vm1747_vm2, %v2787_v3  ;;  %v1914_v37 = vadd.f32 %v1913_v5, %v1912_v2  ;;  %v2789_v38 = vadd.f32 %v2720_v8, %v2650_v23  ;;  %v1639_v39 = vpop.f32.mrb[55].mxu0  ;;  %v2111_v40 = vadd.f32 %v2110_v36, %v2109_v6  ;;  %v2001_v42 = vmul.f32 %v2787_v3, %v2787_v3 }
 0x193   : > { %1800 = vst.msk [vmem:[%s3311_s14 + $0x1a0] sm:$0xff] %vm1747_vm2, %v2788_v7  ;;  %v1915_v32 = vsel %vm1747_vm2, %v2788_v7, 0.0  ;;  %v1999_v16 = vmul.f32 %v2788_v7, %v2788_v7  ;;  %v2790_v41 = vadd.f32 %v1639_v39, %v1230_v9  ;;  %v1919_v18 = vsel %vm1747_vm2, %v2787_v3, 0.0 }
 0x194   : > { %v1916_v10 = vadd.f32 %v1915_v32, %v1914_v37  ;;  %1803 = vst.msk [vmem:[%s3311_s14 + $0x1b8] sm:$0xff] %vm1747_vm2, %v2789_v38  ;;  %v2113_v17 = vadd.f32 %v2112_v33, %v2111_v40  ;;  %v2002_v46 = vmul.f32 %v2789_v38, %v2789_v38  ;;  %v1921_v49 = vsel %vm1747_vm2, %v2789_v38, 0.0 }
 0x195   : > { %v2114_v24 = vsel %vm1747_vm2, %v1999_v16, 0.0  ;;  %1801 = vst.msk [vmem:[%s3311_s14 + $0x1a8] sm:$0xff] %vm1747_vm2, %v2790_v41  ;;  %v1917_v34 = vsel %vm1747_vm2, %v2790_v41, 0.0  ;;  %v2000_v11 = vmul.f32 %v2790_v41, %v2790_v41  ;;  %v2118_v54 = vsel %vm1747_vm2, %v2001_v42, 0.0 }
 0x196   : > { %v1918_v25 = vadd.f32 %v1917_v34, %v1916_v10  ;;  %v2653_v43 = vpop.f32.mrb[56].mxu1  ;;  %v2115_v35 = vadd.f32 %v2114_v24, %v2113_v17  ;;  %v2120_v14 = vsel %vm1747_vm2, %v2002_v46, 0.0 }
 0x197   : > { %v2116_v44 = vsel %vm1747_vm2, %v2000_v11, 0.0  ;;  %v2723_v26 = vpop.f32.mrb[56].mxu0  ;;  %v1243_v45 = vpop.f32.mrb[57].mxu1 }
 0x198   : > { %v1920_v47 = vadd.f32 %v1919_v18, %v1918_v25  ;;  %v2791_v48 = vadd.f32 %v2723_v26, %v2653_v43  ;;  %v1652_v19 = vpop.f32.mrb[57].mxu0  ;;  %v2654_v27 = vpop.f32.mrb[58].mxu1  ;;  %v2117_v50 = vadd.f32 %v2116_v44, %v2115_v35 }
 0x199   : > { %v2792_v51 = vadd.f32 %v1652_v19, %v1243_v45  ;;  %v2724_v52 = vpop.f32.mrb[58].mxu0  ;;  %v1246_v53 = vpop.f32.mrb[59].mxu1 }
 0x19a   : > { %1806 = vst.msk [vmem:[%s3311_s14 + $0x1d0] sm:$0xff] %vm1747_vm2, %v2791_v48  ;;  %v1922_v12 = vadd.f32 %v1921_v49, %v1920_v47  ;;  %v2793_v55 = vadd.f32 %v2724_v52, %v2654_v27  ;;  %v1655_v56 = vpop.f32.mrb[59].mxu0  ;;  %v2119_v13 = vadd.f32 %v2118_v54, %v2117_v50  ;;  %v2005_v21 = vmul.f32 %v2791_v48, %v2791_v48 }
 0x19b   : > { %1804 = vst.msk [vmem:[%s3311_s14 + $0x1c0] sm:$0xff] %vm1747_vm2, %v2792_v51  ;;  %v1923_v57 = vsel %vm1747_vm2, %v2792_v51, 0.0  ;;  %v2003_v58 = vmul.f32 %v2792_v51, %v2792_v51  ;;  %v2794_v59 = vadd.f32 %v1655_v56, %v1246_v53  ;;  %v1927_v63 = vsel %vm1747_vm2, %v2791_v48, 0.0 }
 0x19c   : > { %v1924_v28 = vadd.f32 %v1923_v57, %v1922_v12  ;;  %1807 = vst.msk [vmem:[%s3311_s14 + $0x1d8] sm:$0xff] %vm1747_vm2, %v2793_v55  ;;  %v2121_v20 = vadd.f32 %v2120_v14, %v2119_v13  ;;  %v2006_v31 = vmul.f32 %v2793_v55, %v2793_v55  ;;  %v1929_v5 = vsel %vm1747_vm2, %v2793_v55, 0.0 }
 0x19d   : > { %v2122_v60 = vsel %vm1747_vm2, %v2003_v58, 0.0  ;;  %1805 = vst.msk [vmem:[%s3311_s14 + $0x1c8] sm:$0xff] %vm1747_vm2, %v2794_v59  ;;  %v1925_v29 = vsel %vm1747_vm2, %v2794_v59, 0.0  ;;  %v2004_v61 = vmul.f32 %v2794_v59, %v2794_v59  ;;  %v2126_v36 = vsel %vm1747_vm2, %v2005_v21, 0.0 }
 0x19e   : > { %v1926_v62 = vadd.f32 %v1925_v29, %v1924_v28  ;;  %v2657_v30 = vpop.f32.mrb[60].mxu1  ;;  %v2123_v0 = vadd.f32 %v2122_v60, %v2121_v20  ;;  %v2128_v33 = vsel %vm1747_vm2, %v2006_v31, 0.0 }
 0x19f   : > { %v2124_v22 = vsel %vm1747_vm2, %v2004_v61, 0.0  ;;  %v2727_v15 = vpop.f32.mrb[60].mxu0  ;;  %v1259_v1 = vpop.f32.mrb[61].mxu1 }
 0x1a0   : > { %v1928_v2 = vadd.f32 %v1927_v63, %v1926_v62  ;;  %v2795_v3 = vadd.f32 %v2727_v15, %v2657_v30  ;;  %v1668_v4 = vpop.f32.mrb[61].mxu0  ;;  %v2658_v23 = vpop.f32.mrb[62].mxu1  ;;  %v2125_v6 = vadd.f32 %v2124_v22, %v2123_v0 }
 0x1a1   : > { %v2796_v7 = vadd.f32 %v1668_v4, %v1259_v1  ;;  %v2728_v8 = vpop.f32.mrb[62].mxu0  ;;  %v1262_v9 = vpop.f32.mrb[63].mxu1 }
 0x1a2   : > { %1810 = vst.msk [vmem:[%s3311_s14 + $0x1f0] sm:$0xff] %vm1747_vm2, %v2795_v3  ;;  %v1930_v37 = vadd.f32 %v1929_v5, %v1928_v2  ;;  %v2797_v38 = vadd.f32 %v2728_v8, %v2658_v23  ;;  %v1671_v39 = vpop.f32.mrb[63].mxu0  ;;  %v2127_v40 = vadd.f32 %v2126_v36, %v2125_v6  ;;  %v2009_v42 = vmul.f32 %v2795_v3, %v2795_v3 }
 0x1a3   : > { %1808 = vst.msk [vmem:[%s3311_s14 + $0x1e0] sm:$0xff] %vm1747_vm2, %v2796_v7  ;;  %v1931_v32 = vsel %vm1747_vm2, %v2796_v7, 0.0  ;;  %v2007_v16 = vmul.f32 %v2796_v7, %v2796_v7  ;;  %v2798_v41 = vadd.f32 %v1671_v39, %v1262_v9  ;;  %v1935_v43 = vsel %vm1747_vm2, %v2795_v3, 0.0 }
 0x1a4   : > { %v1932_v10 = vadd.f32 %v1931_v32, %v1930_v37  ;;  %1811 = vst.msk [vmem:[%s3311_s14 + $0x1f8] sm:$0xff] %vm1747_vm2, %v2797_v38  ;;  %v2129_v17 = vadd.f32 %v2128_v33, %v2127_v40  ;;  %v2010_v44 = vmul.f32 %v2797_v38, %v2797_v38  ;;  %v1937_v45 = vsel %vm1747_vm2, %v2797_v38, 0.0 }
 0x1a5   : > { %v2130_v24 = vsel %vm1747_vm2, %v2007_v16, 0.0  ;;  %1809 = vst.msk [vmem:[%s3311_s14 + $0x1e8] sm:$0xff] %vm1747_vm2, %v2798_v41  ;;  %v1933_v34 = vsel %vm1747_vm2, %v2798_v41, 0.0  ;;  %v2008_v11 = vmul.f32 %v2798_v41, %v2798_v41  ;;  %v2134_v47 = vsel %vm1747_vm2, %v2009_v42, 0.0 }
 0x1a6   : > { %v1934_v25 = vadd.f32 %v1933_v34, %v1932_v10  ;;  %v2131_v18 = vadd.f32 %v2130_v24, %v2129_v17  ;;  %v2136_v27 = vsel %vm1747_vm2, %v2010_v44, 0.0 }
 0x1a7   : > { %v2132_v35 = vsel %vm1747_vm2, %v2008_v11, 0.0 }
 0x1a8   : > { %v1936_v26 = vadd.f32 %v1935_v43, %v1934_v25  ;;  %v2133_v46 = vadd.f32 %v2132_v35, %v2131_v18 }
 0x1aa   : > { %v1938_v48 = vadd.f32 %v1937_v45, %v1936_v26  ;;  %v2135_v19 = vadd.f32 %v2134_v47, %v2133_v46 }
 0x1ac   : > { %v1939_v49 = vrot.slane %v1938_v48, 4  ;;  %v2137_v50 = vadd.f32 %v2136_v27, %v2135_v19 }
 0x1ae   : > { %v1940_v51 = vadd.f32 %v1939_v49, %v1938_v48  ;;  %v2138_v52 = vrot.slane %v2137_v50, 4 }
 0x1b0   : > { %v1941_v53 = vrot.slane %v1940_v51, 2  ;;  %v2139_v54 = vadd.f32 %v2138_v52, %v2137_v50 }
 0x1b2   : > { %v1942_v12 = vadd.f32 %v1941_v53, %v1940_v51  ;;  %v2140_v55 = vrot.slane %v2139_v54, 2 }
 0x1b4   : > { %v1943_v56 = vrot.slane %v1942_v12, 1  ;;  %v2141_v13 = vadd.f32 %v2140_v55, %v2139_v54 }
 0x1b6   : > { %v1944_v57 = vadd.f32 %v1943_v56, %v1942_v12  ;;  %v2142_v58 = vrot.slane %v2141_v13, 1 }
 0x1b8   : > { %1946 = vst.msk [vmem:[%s181_s18] sm:$0x1] %vm1945_vm3, %v1944_v57  ;;  %v2143_v59 = vadd.f32 %v2142_v58, %v2141_v13 }
 0x1ba   : > { %2144 = vst.msk [vmem:[%s181_s18 + $0x1] sm:$0x1] %vm1945_vm3, %v2143_v59 }
 0x1bb PF: > { %s14_s12 = sadd.s32 1, %s2947_s12  }
 0x1bc   : > { %p11_p4 = scmp.ge.s32.totalorder %s14_s12, 4  }
 0x1be   :  { %13 = sbr.rel (!%p11_p4) target bundleno = 1 (0x1), region = 72 }

// kernel: tile.103
= control target key start
LH: loop header
LB: loop body
LE: loop exit
PB: predicated region body
PF: predicated region fallthrough
CT: control target
= control target key end

     0   :  { %s64_s0 = inlined_call_operand.vmem [shape: f32[4], index: 0, kind: input, shape index: {}]   ;;  %s65_s1 = inlined_call_operand.vmem [shape: f32[64,4], index: 1, kind: output, shape index: {}]  }
   0x1   :  { %v4_v0 = vld [vmem:[%s64_s0] ss:$0 sm:$0xff] }
   0x2   :  { %5 = vst [vmem:[%s65_s1] sm:$0xff] %v4_v0  ;;  %20 = vst [vmem:[%s65_s1 + $0x8] sm:$0xff] %v4_v0 }
   0x3   :  { %21 = vst [vmem:[%s65_s1 + $0x10] sm:$0xff] %v4_v0  ;;  %22 = vst [vmem:[%s65_s1 + $0x18] sm:$0xff] %v4_v0 }
   0x4   :  { %23 = vst [vmem:[%s65_s1 + $0x20] sm:$0xff] %v4_v0  ;;  %24 = vst [vmem:[%s65_s1 + $0x28] sm:$0xff] %v4_v0 }
   0x5   :  { %25 = vst [vmem:[%s65_s1 + $0x30] sm:$0xff] %v4_v0  ;;  %26 = vst [vmem:[%s65_s1 + $0x38] sm:$0xff] %v4_v0 }

// kernel: tile.104
= control target key start
LH: loop header
LB: loop body
LE: loop exit
PB: predicated region body
PF: predicated region fallthrough
CT: control target
= control target key end

     0   :  { %vm5_vm0 = vcmask 1041409   ;;  %s425_s14 = smov 124   ;;  %s426_s21 = smov 116   ;;  %vm7_vm1 = vcmask 31744   ;;  %vm17_vm2 = vcmask 1048544   ;;  %vm27_vm3 = vcmask 1015744   ;;  %s696_s0 = inlined_call_operand.vmem [shape: f32[64,4], index: 0, kind: input, shape index: {}]   ;;  %s697_s1 = inlined_call_operand.vmem [shape: f32[1,256], index: 1, kind: output, shape index: {}]  }
   0x1   :  { %v331_v0 = vld [vmem:[%s696_s0 + $0x1f] sm:$0x1]   ;;  %v335_v3 = vld [vmem:[%s696_s0 + $0x1d] sm:$0x1]   ;;  %v333_v6 = vld [vmem:[%s696_s0 + $0x1e] sm:$0x1]  }
   0x2   :  { %v332_v1 = vld [vmem:[%s696_s0 + $0x3e] sm:$0x2]   ;;  %v336_v4 = vld [vmem:[%s696_s0 + $0x3c] sm:$0x2]   ;;  %v334_v7 = vld [vmem:[%s696_s0 + $0x3d] sm:$0x2]  }
   0x3   :  { %v14_v2 = vsel %vm5_vm0, %v332_v1, %v331_v0  ;;  %v34_v5 = vsel %vm5_vm0, %v336_v4, %v335_v3  ;;  %v337_v8 = vld [vmem:[%s696_s0 + $0x1c] sm:$0x1]   ;;  %v24_v9 = vsel %vm5_vm0, %v334_v7, %v333_v6  ;;  %v339_v12 = vld [vmem:[%s696_s0 + $0x1b] sm:$0x1]   ;;  %v341_v14 = vld [vmem:[%s696_s0 + $0x1a] sm:$0x1]  }
   0x4   :  { %15 = vrot.lane.b32.xlu0 %v14_v2, %s425_s14  ;;  %35 = vrot.lane.b32.xlu1 %v34_v5, %s426_s21  ;;  %v338_v10 = vld [vmem:[%s696_s0 + $0x3b] sm:$0x2]   ;;  %v340_v13 = vld [vmem:[%s696_s0 + $0x3a] sm:$0x2]   ;;  %s427_s3 = smov 120   ;;  %s428_s4 = smov 112  }
   0x5   :  { %v44_v11 = vsel %vm5_vm0, %v338_v10, %v337_v8  ;;  %v342_v15 = vld [vmem:[%s696_s0 + $0x39] sm:$0x2]   ;;  %v54_v16 = vsel %vm5_vm0, %v340_v13, %v339_v12  ;;  %v343_v18 = vld [vmem:[%s696_s0 + $0x19] sm:$0x1]   ;;  %v345_v20 = vld [vmem:[%s696_s0 + $0x18] sm:$0x1]  }
   0x6   :  { %v64_v17 = vsel %vm5_vm0, %v342_v15, %v341_v14  ;;  %v344_v19 = vld [vmem:[%s696_s0 + $0x38] sm:$0x2]   ;;  %v346_v21 = vld [vmem:[%s696_s0 + $0x37] sm:$0x2]   ;;  %s429_s13 = smov 108   ;;  %s430_s14 = smov 104  }
   0x7   :  { %v74_v22 = vsel %vm5_vm0, %v344_v19, %v343_v18  ;;  %v84_v23 = vsel %vm5_vm0, %v346_v21, %v345_v20  ;;  %v347_v24 = vld [vmem:[%s696_s0 + $0x17] sm:$0x1]   ;;  %v349_v26 = vld [vmem:[%s696_s0 + $0x16] sm:$0x1]   ;;  %s431_s23 = smov 100   ;;  %s432_s24 = smov 96  }
   0x8   :  { %25 = vrot.lane.b32.xlu0 %v24_v9, %s427_s3  ;;  %45 = vrot.lane.b32.xlu1 %v44_v11, %s428_s4  ;;  %v348_v25 = vld [vmem:[%s696_s0 + $0x36] sm:$0x2]   ;;  %v350_v27 = vld [vmem:[%s696_s0 + $0x35] sm:$0x2]   ;;  %s433_s4 = smov 92   ;;  %s434_s5 = smov 88  }
   0x9   :  { %v94_v28 = vsel %vm5_vm0, %v348_v25, %v347_v24  ;;  %v104_v29 = vsel %vm5_vm0, %v350_v27, %v349_v26  ;;  %v351_v30 = vld [vmem:[%s696_s0 + $0x15] sm:$0x1]   ;;  %v353_v32 = vld [vmem:[%s696_s0 + $0x14] sm:$0x1]   ;;  %v355_v36 = vld [vmem:[%s696_s0 + $0x13] sm:$0x1]  }
   0xa   :  { %v352_v31 = vld [vmem:[%s696_s0 + $0x34] sm:$0x2]   ;;  %v354_v33 = vld [vmem:[%s696_s0 + $0x33] sm:$0x2]   ;;  %v356_v37 = vld [vmem:[%s696_s0 + $0x32] sm:$0x2]  }
   0xb   :  { %v114_v34 = vsel %vm5_vm0, %v352_v31, %v351_v30  ;;  %v124_v35 = vsel %vm5_vm0, %v354_v33, %v353_v32  ;;  %v357_v38 = vld [vmem:[%s696_s0 + $0x12] sm:$0x1]   ;;  %s436_s15 = smov 80   ;;  %v134_v40 = vsel %vm5_vm0, %v356_v37, %v355_v36  ;;  %v359_v42 = vld [vmem:[%s696_s0 + $0x11] sm:$0x1]   ;;  %s438_s29 = smov 72  }
   0xc   :  { %55 = vrot.lane.b32.xlu0 %v54_v16, %s429_s13  ;;  %65 = vrot.lane.b32.xlu1 %v64_v17, %s430_s14  ;;  %v358_v39 = vld [vmem:[%s696_s0 + $0x31] sm:$0x2]   ;;  %s435_s14 = smov 84   ;;  %v360_v43 = vld [vmem:[%s696_s0 + $0x30] sm:$0x2]   ;;  %s439_s9 = smov 68  }
   0xd   :  { %v144_v41 = vsel %vm5_vm0, %v358_v39, %v357_v38  ;;  %v361_v44 = vld [vmem:[%s696_s0 + $0x10] sm:$0x1]   ;;  %v2_v46 = vld [vmem:[%s696_s0] sm:$0x1]   ;;  %v154_v48 = vsel %vm5_vm0, %v360_v43, %v359_v42  ;;  %v363_v51 = vld [vmem:[%s696_s0 + $0xf] sm:$0x1]  }
   0xe   :  { %v362_v45 = vld [vmem:[%s696_s0 + $0x2f] sm:$0x2]   ;;  %v330_v47 = vld [vmem:[%s696_s0 + $0x1f] sm:$0x2]   ;;  %v364_v52 = vld [vmem:[%s696_s0 + $0x2e] sm:$0x2]  }
   0xf   :  { %v6_v49 = vsel %vm5_vm0, %v330_v47, %v2_v46  ;;  %v164_v50 = vsel %vm5_vm0, %v362_v45, %v361_v44  ;;  %v365_v53 = vld [vmem:[%s696_s0 + $0xe] sm:$0x1]   ;;  %s440_s10 = smov 64   ;;  %v174_v55 = vsel %vm5_vm0, %v364_v52, %v363_v51  ;;  %v367_v57 = vld [vmem:[%s696_s0 + $0xd] sm:$0x1]   ;;  %s441_s19 = smov 60  }
  0x10   :  { %75 = vrot.lane.b32.xlu0 %v74_v22, %s431_s23  ;;  %85 = vrot.lane.b32.xlu1 %v84_v23, %s432_s24  ;;  %s437_s24 = smov 76   ;;  %8 = vst.msk [vmem:[#allocation0] ss:$8 sm:$0x3] %vm7_vm1, %v6_v49   ;;  %v366_v54 = vld [vmem:[%s696_s0 + $0x2d] sm:$0x2]  }
  0x11   :  { %v184_v56 = vsel %vm5_vm0, %v366_v54, %v365_v53  ;;  %v368_v58 = vld [vmem:[%s696_s0 + $0x2c] sm:$0x2]   ;;  %v369_v59 = vld [vmem:[%s696_s0 + $0xc] sm:$0x1]   ;;  %s442_s20 = smov 56   ;;  %s444_s30 = smov 48  }
  0x12   :  { %v370_v60 = vld [vmem:[%s696_s0 + $0x2b] sm:$0x2]   ;;  %v194_v61 = vsel %vm5_vm0, %v368_v58, %v367_v57  ;;  %v371_v63 = vld [vmem:[%s696_s0 + $0xb] sm:$0x1]   ;;  %v373_v1 = vld [vmem:[%s696_s0 + $0xa] sm:$0x1]  }
  0x13   :  { %v204_v62 = vsel %vm5_vm0, %v370_v60, %v369_v59  ;;  %v372_v0 = vld [vmem:[%s696_s0 + $0x2a] sm:$0x2]   ;;  %v374_v2 = vld [vmem:[%s696_s0 + $0x29] sm:$0x2]   ;;  %v375_v5 = vld [vmem:[%s696_s0 + $0x9] sm:$0x1]  }
  0x14   :  { %95 = vrot.lane.b32.xlu0 %v94_v28, %s433_s4  ;;  %105 = vrot.lane.b32.xlu1 %v104_v29, %s434_s5  ;;  %v214_v3 = vsel %vm5_vm0, %v372_v0, %v371_v63  ;;  %v224_v4 = vsel %vm5_vm0, %v374_v2, %v373_v1  ;;  %v376_v6 = vld [vmem:[%s696_s0 + $0x28] sm:$0x2]   ;;  %v377_v7 = vld [vmem:[%s696_s0 + $0x8] sm:$0x1]   ;;  %s446_s11 = smov 40   ;;  %s448_s21 = smov 32  }
  0x15   :  { %v378_v8 = vld [vmem:[%s696_s0 + $0x27] sm:$0x2]   ;;  %v234_v9 = vsel %vm5_vm0, %v376_v6, %v375_v5  ;;  %v379_v11 = vld [vmem:[%s696_s0 + $0x7] sm:$0x1]   ;;  %v381_v13 = vld [vmem:[%s696_s0 + $0x6] sm:$0x1]  }
  0x16   :  { %v244_v10 = vsel %vm5_vm0, %v378_v8, %v377_v7  ;;  %v380_v12 = vld [vmem:[%s696_s0 + $0x26] sm:$0x2]   ;;  %v382_v14 = vld [vmem:[%s696_s0 + $0x25] sm:$0x2]   ;;  %v383_v17 = vld [vmem:[%s696_s0 + $0x5] sm:$0x1]  }
  0x17   :  { %v254_v15 = vsel %vm5_vm0, %v380_v12, %v379_v11  ;;  %v264_v16 = vsel %vm5_vm0, %v382_v14, %v381_v13  ;;  %v384_v18 = vld [vmem:[%s696_s0 + $0x24] sm:$0x2]   ;;  %v385_v19 = vld [vmem:[%s696_s0 + $0x4] sm:$0x1]   ;;  %s450_s2 = smov 24   ;;  %s452_s12 = smov 16  }
  0x18   :  { %115 = vrot.lane.b32.xlu0 %v114_v34, %s435_s14  ;;  %125 = vrot.lane.b32.xlu1 %v124_v35, %s436_s15  ;;  %v386_v20 = vld [vmem:[%s696_s0 + $0x23] sm:$0x2]   ;;  %v274_v21 = vsel %vm5_vm0, %v384_v18, %v383_v17  ;;  %v387_v23 = vld [vmem:[%s696_s0 + $0x3] sm:$0x1]   ;;  %s454_s17 = smov 8   ;;  %s455_s18 = smov 4  }
  0x19   :  { %v284_v22 = vsel %vm5_vm0, %v386_v20, %v385_v19  ;;  %v388_v24 = vld [vmem:[%s696_s0 + $0x22] sm:$0x2]   ;;  %v389_v25 = vld [vmem:[%s696_s0 + $0x2] sm:$0x1]   ;;  %v391_v29 = vld [vmem:[%s696_s0 + $0x1] sm:$0x1]  }
  0x1a   :  { %v390_v26 = vld [vmem:[%s696_s0 + $0x21] sm:$0x2]   ;;  %v294_v27 = vsel %vm5_vm0, %v388_v24, %v387_v23  ;;  %v392_v30 = vld [vmem:[%s696_s0 + $0x20] sm:$0x2]   ;;  %s453_s0 = smov 12   ;;  %vm37_vm4 = vcmask 982944  }
  0x1b   :  { %v304_v28 = vsel %vm5_vm0, %v390_v26, %v389_v25  ;;  %v314_v31 = vsel %vm5_vm0, %v392_v30, %v391_v29  ;;  %vm47_vm5 = vcmask 950144   ;;  %vm57_vm6 = vcmask 917344  }
  0x1c   :  { %135 = vrot.lane.b32.xlu0 %v134_v40, %s437_s24  ;;  %145 = vrot.lane.b32.xlu1 %v144_v41, %s438_s29  ;;  %s443_s29 = smov 52   ;;  %vm67_vm7 = vcmask 884544   ;;  %vm77_vm8 = vcmask 851744   ;;  %vm87_vm9 = vcmask 818944   ;;  %vm97_vm10 = vcmask 786144  }
  0x1d   :  { %vm107_vm11 = vcmask 753344   ;;  %vm117_vm12 = vcmask 720544   ;;  %vm127_vm13 = vcmask 687744   ;;  %vm137_vm14 = vcmask 654944  }
  0x1e   :  { %vm147_vm15 = vcmask 622144   ;;  %vm157_vm0 = vcmask 589344   ;;  %vm167_vm1 = vcmask 556544  }
  0x20   :  { %155 = vrot.lane.b32.xlu0 %v154_v48, %s439_s9  ;;  %165 = vrot.lane.b32.xlu1 %v164_v50, %s440_s10  ;;  %s445_s10 = smov 44  }
  0x24   :  { %175 = vrot.lane.b32.xlu0 %v174_v55, %s441_s19  ;;  %185 = vrot.lane.b32.xlu1 %v184_v56, %s442_s20  ;;  %s447_s20 = smov 36  }
  0x28   :  { %195 = vrot.lane.b32.xlu0 %v194_v61, %s443_s29  ;;  %205 = vrot.lane.b32.xlu1 %v204_v62, %s444_s30  ;;  %s449_s30 = smov 28  }
  0x2c   :  { %215 = vrot.lane.b32.xlu0 %v214_v3, %s445_s10  ;;  %225 = vrot.lane.b32.xlu1 %v224_v4, %s446_s11  ;;  %s451_s11 = smov 20  }
  0x30   :  { %235 = vrot.lane.b32.xlu0 %v234_v9, %s447_s20  ;;  %245 = vrot.lane.b32.xlu1 %v244_v10, %s448_s21 }
  0x34   :  { %255 = vrot.lane.b32.xlu0 %v254_v15, %s449_s30  ;;  %265 = vrot.lane.b32.xlu1 %v264_v16, %s450_s2 }
  0x38   :  { %275 = vrot.lane.b32.xlu0 %v274_v21, %s451_s11  ;;  %285 = vrot.lane.b32.xlu1 %v284_v22, %s452_s12 }
  0x3c   :  { %295 = vrot.lane.b32.xlu0 %v294_v27, %s453_s0  ;;  %305 = vrot.lane.b32.xlu1 %v304_v28, %s454_s17 }
  0x40   :  { %315 = vrot.lane.b32.xlu0 %v314_v31, %s455_s18 }
  0x76   :  { %v16_v32 = vpop.permute.xlu0 %15   ;;  %v36_v33 = vpop.permute.xlu1 %35  }
  0x77   :  { %18 = vst.msk [vmem:[#allocation0] ss:$8 sm:$0x3] %vm17_vm2, %v16_v32   ;;  %vm177_vm2 = vcmask 523744  }
  0x7a   :  { %v26_v34 = vpop.permute.xlu0 %25   ;;  %v46_v35 = vpop.permute.xlu1 %45  }
  0x7b   :  { %28 = vst.msk [vmem:[#allocation0] ss:$8 sm:$0x3] %vm27_vm3, %v26_v34   ;;  %vm187_vm3 = vcmask 490944  }
  0x7c   :  { %38 = vst.msk [vmem:[#allocation0] ss:$8 sm:$0x3] %vm37_vm4, %v36_v33   ;;  %vm197_vm4 = vcmask 458144  }
  0x7d   :  { %48 = vst.msk [vmem:[#allocation0] ss:$8 sm:$0x3] %vm47_vm5, %v46_v35   ;;  %vm207_vm5 = vcmask 425344  }
  0x7e   :  { %v56_v36 = vpop.permute.xlu0 %55   ;;  %v66_v37 = vpop.permute.xlu1 %65  }
  0x7f   :  { %58 = vst.msk [vmem:[#allocation0] ss:$8 sm:$0x3] %vm57_vm6, %v56_v36   ;;  %vm217_vm6 = vcmask 392544  }
  0x80   :  { %68 = vst.msk [vmem:[#allocation0] ss:$8 sm:$0x3] %vm67_vm7, %v66_v37   ;;  %vm227_vm7 = vcmask 359744  }
  0x82   :  { %v76_v38 = vpop.permute.xlu0 %75   ;;  %v86_v39 = vpop.permute.xlu1 %85  }
  0x83   :  { %78 = vst.msk [vmem:[#allocation0] ss:$8 sm:$0x3] %vm77_vm8, %v76_v38   ;;  %vm237_vm8 = vcmask 326944  }
  0x84   :  { %88 = vst.msk [vmem:[#allocation0] ss:$8 sm:$0x3] %vm87_vm9, %v86_v39   ;;  %vm247_vm9 = vcmask 294144  }
  0x86   :  { %v96_v40 = vpop.permute.xlu0 %95   ;;  %v106_v41 = vpop.permute.xlu1 %105  }
  0x87   :  { %98 = vst.msk [vmem:[#allocation0] ss:$8 sm:$0x3] %vm97_vm10, %v96_v40   ;;  %vm257_vm10 = vcmask 261344  }
  0x88   :  { %108 = vst.msk [vmem:[#allocation0] ss:$8 sm:$0x3] %vm107_vm11, %v106_v41   ;;  %vm267_vm11 = vcmask 228544  }
  0x8a   :  { %v116_v42 = vpop.permute.xlu0 %115   ;;  %v126_v43 = vpop.permute.xlu1 %125  }
  0x8b   :  { %118 = vst.msk [vmem:[#allocation0] ss:$8 sm:$0x3] %vm117_vm12, %v116_v42   ;;  %vm277_vm12 = vcmask 195744  }
  0x8c   :  { %128 = vst.msk [vmem:[#allocation0] ss:$8 sm:$0x3] %vm127_vm13, %v126_v43   ;;  %vm287_vm13 = vcmask 162944  }
  0x8e   :  { %v136_v44 = vpop.permute.xlu0 %135   ;;  %v146_v45 = vpop.permute.xlu1 %145  }
  0x8f   :  { %138 = vst.msk [vmem:[#allocation0] ss:$8 sm:$0x3] %vm137_vm14, %v136_v44   ;;  %vm297_vm14 = vcmask 130144  }
  0x90   :  { %148 = vst.msk [vmem:[#allocation0] ss:$8 sm:$0x3] %vm147_vm15, %v146_v45   ;;  %vm307_vm15 = vcmask 97344  }
  0x92   :  { %v156_v46 = vpop.permute.xlu0 %155   ;;  %v166_v47 = vpop.permute.xlu1 %165  }
  0x93   :  { %158 = vst.msk [vmem:[#allocation0] ss:$8 sm:$0x3] %vm157_vm0, %v156_v46   ;;  %vm317_vm0 = vcmask 64544  }
  0x94   :  { %168 = vst.msk [vmem:[#allocation0] ss:$8 sm:$0x3] %vm167_vm1, %v166_v47  }
  0x96   :  { %v176_v48 = vpop.permute.xlu0 %175   ;;  %v186_v49 = vpop.permute.xlu1 %185  }
  0x97   :  { %178 = vst.msk [vmem:[#allocation0] ss:$8 sm:$0x3] %vm177_vm2, %v176_v48  }
  0x98   :  { %188 = vst.msk [vmem:[#allocation0] ss:$8 sm:$0x3] %vm187_vm3, %v186_v49  }
  0x9a   :  { %v196_v50 = vpop.permute.xlu0 %195   ;;  %v206_v51 = vpop.permute.xlu1 %205  }
  0x9b   :  { %198 = vst.msk [vmem:[#allocation0] ss:$8 sm:$0x3] %vm197_vm4, %v196_v50  }
  0x9c   :  { %208 = vst.msk [vmem:[#allocation0] ss:$8 sm:$0x3] %vm207_vm5, %v206_v51  }
  0x9e   :  { %v216_v52 = vpop.permute.xlu0 %215   ;;  %v226_v53 = vpop.permute.xlu1 %225  }
  0x9f   :  { %218 = vst.msk [vmem:[#allocation0] ss:$8 sm:$0x3] %vm217_vm6, %v216_v52  }
  0xa0   :  { %228 = vst.msk [vmem:[#allocation0] ss:$8 sm:$0x3] %vm227_vm7, %v226_v53  }
  0xa2   :  { %v236_v54 = vpop.permute.xlu0 %235   ;;  %v246_v55 = vpop.permute.xlu1 %245  }
  0xa3   :  { %238 = vst.msk [vmem:[#allocation0] ss:$8 sm:$0x3] %vm237_vm8, %v236_v54  }
  0xa4   :  { %248 = vst.msk [vmem:[#allocation0] ss:$8 sm:$0x3] %vm247_vm9, %v246_v55  }
  0xa6   :  { %v256_v56 = vpop.permute.xlu0 %255   ;;  %v266_v57 = vpop.permute.xlu1 %265  }
  0xa7   :  { %258 = vst.msk [vmem:[#allocation0] ss:$8 sm:$0x3] %vm257_vm10, %v256_v56  }
  0xa8   :  { %268 = vst.msk [vmem:[#allocation0] ss:$8 sm:$0x3] %vm267_vm11, %v266_v57  }
  0xaa   :  { %v276_v58 = vpop.permute.xlu0 %275   ;;  %v286_v59 = vpop.permute.xlu1 %285  }
  0xab   :  { %278 = vst.msk [vmem:[#allocation0] ss:$8 sm:$0x3] %vm277_vm12, %v276_v58  }
  0xac   :  { %288 = vst.msk [vmem:[#allocation0] ss:$8 sm:$0x3] %vm287_vm13, %v286_v59  }
  0xae   :  { %v296_v60 = vpop.permute.xlu0 %295   ;;  %v306_v61 = vpop.permute.xlu1 %305  }
  0xaf   :  { %298 = vst.msk [vmem:[#allocation0] ss:$8 sm:$0x3] %vm297_vm14, %v296_v60  }
  0xb0   :  { %308 = vst.msk [vmem:[#allocation0] ss:$8 sm:$0x3] %vm307_vm15, %v306_v61  }
  0xb2   :  { %v316_v62 = vpop.permute.xlu0 %315  }
  0xb3   :  { %318 = vst.msk [vmem:[#allocation0] ss:$8 sm:$0x3] %vm317_vm0, %v316_v62  }
  0xba   :  { %v322_v63 = vld [vmem:[#allocation0] sm:$0x1]  ;;  %v326_v0 = vld [vmem:[#allocation0 + $0x8] sm:$0x1] }
  0xbb   :  { %324 = vst [vmem:[%s697_s1] sm:$0x1] %v322_v63  ;;  %393 = vst [vmem:[%s697_s1 + $0x1] sm:$0x1] %v326_v0 }

// kernel: down_forward.21
= control target key start
LH: loop header
LB: loop body
LE: loop exit
PB: predicated region body
PF: predicated region fallthrough
CT: control target
= control target key end

     0   :  { %s423_s12 = smov 0   ;;  %s425_s13 = smov 0   ;;  %s462_s0 = inlined_call_operand.vmem [shape: f32[2,8,256], index: 0, kind: input, shape index: {}]   ;;  %s463_s1 = inlined_call_operand.vmem [shape: f32[1,256], index: 1, kind: input, shape index: {}]   ;;  %s464_s2 = inlined_call_operand.vmem [shape: f32[1,256], index: 2, kind: input, shape index: {}]   ;;  %s465_s3 = inlined_call_operand.vmem [shape: bf16[2,8,256], index: 3, kind: output, shape index: {}]  }
   0x1   :  { %s427_s14 = smov 0  }
   0x2 LB: > { %s25_s15 = sadd.s32 1, %s397_s13  ;;  %p344_p0 = scmp.ge.s32.totalorder %s401_s14, 1  ;;  %s401_s14 = sphi %s427_s14, %s13_s14   ;;  %s397_s13 = sphi %s425_s13, %s467_s13   ;;  %s393_s12 = sphi %s423_s12, %s466_s12  }
   0x3   : > { %p27_p1 = scmp.ge.s32.totalorder %s25_s15, 2  ;;  %p157_p2 = scmp.lt.s32.totalorder %s401_s14, 3 }
   0x5   : > { %s469_s15 = smov (%p27_p1, %s25_s15), 0  ;;  %p158_p3 = pnand %p344_p0, %p157_p2 }
   0x6   : > { %p189_p4 = scmp.lt.s32.totalorder (!%p158_p3), %s393_s12, 1  ;;  %v211_v0 = vlaneseq (!%p158_p3)  ;;  %v209_v2 = vld [vmem:[%s463_s1] sm:$0x3] (!%p158_p3) }
   0x7   : > { %161 = sbr.rel (%p158_p3) target bundleno = 27 (0x1b), region = 32  ;;  %v223_v3 = vld [vmem:[%s464_s2] sm:$0x3] (!%p158_p3) }
   0x8   : > { %v212_v1 = vshrl.u32 (!%p158_p3), %v211_v0, 7 }
   0xa   : > { %v213_v4 = vsub.s32 (!%p158_p3), 0, %v212_v1  ;;  %v217_v5 = vsub.s32 (!%p158_p3), 1, %v212_v1 }
   0xc   : > { %v214_v8 = vrot.slane (!%p158_p3), %v209_v2, %v213_v4  ;;  %v218_v9 = vrot.slane (!%p158_p3), %v209_v2, %v217_v5  ;;  %v228_v10 = vrot.slane (!%p158_p3), %v223_v3, %v213_v4  ;;  %v232_v11 = vrot.slane (!%p158_p3), %v223_v3, %v217_v5 }
   0xe   : > { %s471_s12 = smov (!%p189_p4, %s393_s12), 1 }
   0xf   : > { %s352_s20 = sshll.u32 %s471_s12, 4  ;;  %s353_s24 = sshll.u32 %s471_s12, 3 }
  0x10   : > { %s197_s23 = scalar_lea.vmem %s462_s0, %s352_s20  ;;  %s206_s27 = scalar_lea.vmem %s465_s3, %s353_s24 }
  0x11   : > { %v207_v6 = vld [vmem:[%s197_s23] sm:$0xff]  ;;  %v208_v7 = vld [vmem:[%s197_s23 + $0x8] sm:$0xff] }
  0x12   : > { %v221_v12 = vmul.f32 %v214_v8, %v207_v6  ;;  %v222_v13 = vmul.f32 %v218_v9, %v208_v7 }
  0x14   : > { %v235_v14 = vadd.f32 %v228_v10, %v221_v12  ;;  %v236_v15 = vadd.f32 %v232_v11, %v222_v13 }
  0x16   : > { %v237_v16 = vmax.f32 %v235_v14, 0.0  ;;  %v238_v17 = vmax.f32 %v236_v15, 0.0 }
  0x18   : > { %v354_v18 = vpack.c.bf16 %v238_v17, %v237_v16 }
  0x1a   : > { %247 = vst [vmem:[%s206_s27] sm:$0xff] %v354_v18 }
  0x1b PF: > { %s13_s14 = sadd.s32 1, %s401_s14   ;;  %s466_s12 = smov %s397_s13 }
  0x1c   : > { %p10_p5 = scmp.ge.s32.totalorder %s13_s14, 4   ;;  %s467_s13 = smov %s469_s15 }
  0x1e   :  { %12 = sbr.rel (!%p10_p5) target bundleno = 2 (0x2), region = 62 }

// kernel: down_forward.23
= control target key start
LH: loop header
LB: loop body
LE: loop exit
PB: predicated region body
PF: predicated region fallthrough
CT: control target
= control target key end

     0   :  { %s414_s12 = smov 0   ;;  %s416_s13 = smov 0   ;;  %s453_s0 = inlined_call_operand.vmem [shape: f32[2,8,256], index: 0, kind: input, shape index: {}]   ;;  %s454_s1 = inlined_call_operand.vmem [shape: f32[1,256], index: 1, kind: input, shape index: {}]   ;;  %s455_s2 = inlined_call_operand.vmem [shape: f32[1,256], index: 2, kind: input, shape index: {}]   ;;  %s456_s3 = inlined_call_operand.vmem [shape: f32[2,8,256], index: 3, kind: output, shape index: {}]  }
   0x1   :  { %s418_s14 = smov 0  }
   0x2 LB: > { %s25_s15 = sadd.s32 1, %s388_s13  ;;  %p337_p0 = scmp.ge.s32.totalorder %s392_s14, 1  ;;  %s392_s14 = sphi %s418_s14, %s13_s14   ;;  %s388_s13 = sphi %s416_s13, %s458_s13   ;;  %s384_s12 = sphi %s414_s12, %s457_s12  }
   0x3   : > { %p27_p1 = scmp.ge.s32.totalorder %s25_s15, 2  ;;  %p157_p2 = scmp.lt.s32.totalorder %s392_s14, 3 }
   0x5   : > { %s460_s15 = smov (%p27_p1, %s25_s15), 0  ;;  %p158_p3 = pnand %p337_p0, %p157_p2 }
   0x6   : > { %p189_p4 = scmp.lt.s32.totalorder (!%p158_p3), %s384_s12, 1  ;;  %v211_v0 = vlaneseq (!%p158_p3)  ;;  %v209_v2 = vld [vmem:[%s454_s1] sm:$0x3] (!%p158_p3) }
   0x7   : > { %161 = sbr.rel (%p158_p3) target bundleno = 25 (0x19), region = 32  ;;  %v223_v3 = vld [vmem:[%s455_s2] sm:$0x3] (!%p158_p3) }
   0x8   : > { %v212_v1 = vshrl.u32 (!%p158_p3), %v211_v0, 7 }
   0xa   : > { %v213_v4 = vsub.s32 (!%p158_p3), 0, %v212_v1  ;;  %v217_v5 = vsub.s32 (!%p158_p3), 1, %v212_v1 }
   0xc   : > { %v214_v8 = vrot.slane (!%p158_p3), %v209_v2, %v213_v4  ;;  %v228_v9 = vrot.slane (!%p158_p3), %v223_v3, %v213_v4  ;;  %v218_v10 = vrot.slane (!%p158_p3), %v209_v2, %v217_v5  ;;  %v232_v11 = vrot.slane (!%p158_p3), %v223_v3, %v217_v5 }
   0xe   : > { %s462_s12 = smov (!%p189_p4, %s384_s12), 1 }
   0xf   : > { %s344_s20 = sshll.u32 %s462_s12, 4 }
  0x10   : > { %s197_s23 = scalar_lea.vmem %s453_s0, %s344_s20  ;;  %s206_s26 = scalar_lea.vmem %s456_s3, %s344_s20 }
  0x11   : > { %v207_v6 = vld [vmem:[%s197_s23] sm:$0xff]  ;;  %v208_v7 = vld [vmem:[%s197_s23 + $0x8] sm:$0xff] }
  0x12   : > { %v221_v12 = vmul.f32 %v214_v8, %v207_v6  ;;  %v222_v13 = vmul.f32 %v218_v10, %v208_v7 }
  0x14   : > { %v235_v14 = vadd.f32 %v228_v9, %v221_v12  ;;  %v236_v15 = vadd.f32 %v232_v11, %v222_v13 }
  0x16   : > { %v237_v16 = vmax.f32 %v235_v14, 0.0  ;;  %v238_v17 = vmax.f32 %v236_v15, 0.0 }
  0x18   : > { %239 = vst [vmem:[%s206_s26] sm:$0xff] %v237_v16  ;;  %240 = vst [vmem:[%s206_s26 + $0x8] sm:$0xff] %v238_v17 }
  0x19 PF: > { %s13_s14 = sadd.s32 1, %s392_s14   ;;  %s457_s12 = smov %s388_s13 }
  0x1a   : > { %p10_p5 = scmp.ge.s32.totalorder %s13_s14, 4   ;;  %s458_s13 = smov %s460_s15 }
  0x1c   :  { %12 = sbr.rel (!%p10_p5) target bundleno = 2 (0x2), region = 62 }

// kernel: down_forward.16
= control target key start
LH: loop header
LB: loop body
LE: loop exit
PB: predicated region body
PF: predicated region fallthrough
CT: control target
= control target key end

     0   :  { %s2873_s12 = smov 0   ;;  %s3494_s0 = inlined_call_operand.vmem [shape: bf16[2,12,64,36], index: 0, kind: input, shape index: {}]   ;;  %s3495_s1 = inlined_call_operand.vmem [shape: bf16[3,36,4], index: 1, kind: input, shape index: {}]   ;;  %s3496_s2 = inlined_call_operand.vmem [shape: f32[2,512,4], index: 2, kind: output, shape index: {0}]   ;;  %s3497_s3 = inlined_call_operand.vmem [shape: f32[2,2,4], index: 3, kind: output, shape index: {1}]  }
   0x1 LB: > { %s2151_s13 = sadd.s32 4294967295, %s2851_s12   ;;  %p2155_p0 = scmp.ge.s32.totalorder %s2851_s12, 1  ;;  %s2851_s12 = sphi %s2873_s12, %s14_s12  }
   0x2   : > { %p140_p1 = scmp.lt.s32.totalorder %s2851_s12, 3 }
   0x4   : > { %p141_p2 = pnand %p2155_p0, %p140_p1 }
   0x5   : > { %v2788_v0 = vld [vmem:[%s3495_s1 + $0x14] sm:$0xff] (!%p141_p2)   ;;  %v2789_v1 = vld [vmem:[%s3495_s1] sm:$0xff] (!%p141_p2)   ;;  %p168_p3 = scmp.lt.s32.totalorder (!%p141_p2), %s2151_s13, 1  ;;  %v2791_v3 = vld [vmem:[%s3495_s1 + $0x8] sm:$0xff] (!%p141_p2)   ;;  %vm562_vm0 = vcmask (!%p141_p2), 1041408   ;;  %vm465_vm1 = vcmask (!%p141_p2), 293888  }
   0x6   : > { %144 = sbr.rel (%p141_p2) target bundleno = 443 (0x1bb), region = 28  ;;  %2431 = vmatprep.subr.bf16.mxu1 (!%p141_p2), %v2788_v0  ;;  %v2790_v2 = vld [vmem:[%s3495_s1 + $0x1c] sm:$0xff] (!%p141_p2)   ;;  %2501 = vmatprep.subr.bf16.mxu0 (!%p141_p2), %v2789_v1  ;;  %v2792_v4 = vld [vmem:[%s3495_s1 + $0x24] ss:$0 sps:$4 sm:$0x33] (!%p141_p2)   ;;  %v2798_v6 = vld [vmem:[%s3495_s1 + $0x28] sm:$0xff] (!%p141_p2)  }
   0x7   : > { %2432 = vmatpush3.bf16.msra.mxu1 (!%p141_p2), %v2788_v0  ;;  %2502 = vmatpush3.bf16.msra.mxu0 (!%p141_p2), %v2789_v1  ;;  %v2793_v5 = vld [vmem:[%s3495_s1 + $0x10] ss:$0 sps:$4 sm:$0x33] (!%p141_p2)   ;;  %v564_v7 = vsel (!%p141_p2), %vm562_vm0, %v2792_v4, 0  ;;  %vm1667_vm2 = vcmask (!%p141_p2), 31744   ;;  %vm1865_vm3 = vcmask (!%p141_p2), 24576  }
   0x8   : > { %2433 = vmatprep.subr.bf16.mxu1 (!%p141_p2), %v2790_v2  ;;  %2503 = vmatprep.subr.bf16.mxu0 (!%p141_p2), %v2791_v3  ;;  %v935_v9 = vsel (!%p141_p2), %vm562_vm0, %v2793_v5, 0  ;;  %v2807_v13 = vld [vmem:[%s3495_s1 + $0x30] sm:$0xff] (!%p141_p2)   ;;  %v2816_v24 = vld [vmem:[%s3495_s1 + $0x38] ss:$0 sps:$4 sm:$0x33] (!%p141_p2)  }
   0x9   : > { %v1312_v25 = vsel (!%p141_p2), %vm562_vm0, %v2816_v24, 0 }
   0xb   : > { %2434 = vmatpush3.bf16.msra.mxu1 (!%p141_p2), %v2790_v2  ;;  %2504 = vmatpush3.bf16.msra.mxu0 (!%p141_p2), %v2791_v3 }
   0xc   : > { %2775 = vmatprep.subr.msk.bf16.mxu1 (!%p141_p2), %vm562_vm0, %v2792_v4  ;;  %2776 = vmatprep.subr.msk.bf16.mxu0 (!%p141_p2), %vm562_vm0, %v2793_v5 }
   0xd   : > { %s3499_s13 = smov (!%p168_p3, %s2151_s13), 1 }
   0xe   : > { %s2779_s26 = smul.u32 384, %s3499_s13  ;;  %s2325_s9 = sshll.u32 %s3499_s13, 9 }
   0xf   : > { %2436 = vmatpush3.bf16.msra.mxu1 %v564_v7  ;;  %2506 = vmatpush3.bf16.msra.mxu0 %v935_v9  ;;  %s3203_s14 = scalar_lea.vmem %s3496_s2, %s2325_s9  ;;  %s2159_s15 = sshll.u32 %s3499_s13, 1 }
  0x10   : > { %s2905_s29 = scalar_lea.vmem %s3494_s0, %s2779_s26  ;;  %2641 = vmatprep.subr.bf16.mxu1 %v2789_v1  ;;  %2571 = vmatprep.subr.bf16.mxu0 %v2798_v6  ;;  %s181_s18 = scalar_lea.vmem %s3497_s3, %s2159_s15 }
  0x11   : > { %v2794_v8 = vld [vmem:[%s2905_s29 + $0x40] sm:$0xff]   ;;  %v2796_v11 = vld [vmem:[%s2905_s29 + $0x48] sm:$0xff]   ;;  %v2799_v14 = vld [vmem:[%s2905_s29 + $0x50] sm:$0xff]  }
  0x12   : > { %v2795_v10 = vld [vmem:[%s2905_s29] sm:$0xff]   ;;  %2437 = vmatprep.mubr.msk.bf16.mxu1 %vm465_vm1, %v2794_v8  ;;  %v2797_v12 = vld [vmem:[%s2905_s29 + $0x8] sm:$0xff]   ;;  %v2800_v15 = vld [vmem:[%s2905_s29 + $0x10] sm:$0xff]  }
  0x13   : > { %2507 = vmatprep.mubr.msk.bf16.mxu0 %vm465_vm1, %v2795_v10  ;;  %2438 = vmatmul.mubr.msk.bf16.vlgmr.msra.gmra.mrb[0].mxu1 %vm465_vm1, %v2796_v11  ;;  %v2801_v16 = vld [vmem:[%s2905_s29 + $0x58] sm:$0xff]   ;;  %v2803_v18 = vld [vmem:[%s2905_s29 + $0x60] sm:$0xff]   ;;  %v2805_v20 = vld [vmem:[%s2905_s29 + $0x68] sm:$0xff]  }
  0x14   : > { %2508 = vmatmul.mubr.msk.bf16.vlgmr.msra.gmra.mrb[0].mxu0 %vm465_vm1, %v2797_v12  ;;  %2644 = vmatpush3.bf16.msra.mxu1 %v2789_v1  ;;  %v2802_v17 = vld [vmem:[%s2905_s29 + $0x18] sm:$0xff]   ;;  %v2804_v19 = vld [vmem:[%s2905_s29 + $0x20] sm:$0xff]   ;;  %v2806_v21 = vld [vmem:[%s2905_s29 + $0x28] sm:$0xff]  }
  0x15   : > { %2572 = vmatpush3.bf16.msra.mxu0 %v2798_v6  ;;  %2441 = vmatprep.mubr.msk.bf16.mxu1 %vm465_vm1, %v2799_v14  ;;  %v2808_v22 = vld [vmem:[%s2905_s29 + $0x70] sm:$0xff]   ;;  %v2810_v26 = vld [vmem:[%s2905_s29 + $0x78] sm:$0xff]   ;;  %v2954_v28 = vld [vmem:[%s2905_s29 + $0x80] sm:$0xff]  }
  0x16   : > { %2511 = vmatprep.mubr.msk.bf16.mxu0 %vm465_vm1, %v2800_v15  ;;  %2573 = vmatprep.subr.bf16.mxu0 %v2807_v13  ;;  %v2809_v23 = vld [vmem:[%s2905_s29 + $0x30] sm:$0xff]   ;;  %v2811_v27 = vld [vmem:[%s2905_s29 + $0x38] sm:$0xff]   ;;  %v2962_v29 = vld [vmem:[%s2905_s29 + $0x88] sm:$0xff]  }
  0x17   : > { %2642 = vmatprep.subr.bf16.mxu1 %v2791_v3  ;;  %v2965_v30 = vld [vmem:[%s2905_s29 + $0x90] sm:$0xff]   ;;  %v2974_v31 = vld [vmem:[%s2905_s29 + $0x98] sm:$0xff]   ;;  %v2977_v32 = vld [vmem:[%s2905_s29 + $0xa0] sm:$0xff]  }
  0x18   : > { %2645 = vmatpush3.bf16.msra.mxu1 %v2791_v3  ;;  %v2986_v33 = vld [vmem:[%s2905_s29 + $0xa8] sm:$0xff]   ;;  %v2989_v34 = vld [vmem:[%s2905_s29 + $0xb0] sm:$0xff]   ;;  %v2998_v35 = vld [vmem:[%s2905_s29 + $0xb8] sm:$0xff]  }
  0x19   : > { %2574 = vmatpush3.bf16.msra.mxu0 %v2807_v13  ;;  %2777 = vmatprep.subr.msk.bf16.mxu1 %vm562_vm0, %v2793_v5  ;;  %v3001_v36 = vld [vmem:[%s2905_s29 + $0xc0] sm:$0xff]   ;;  %v3011_v37 = vld [vmem:[%s2905_s29 + $0xc8] sm:$0xff]   ;;  %v3014_v38 = vld [vmem:[%s2905_s29 + $0xd0] sm:$0xff]  }
  0x1a   : > { %2778 = vmatprep.subr.msk.bf16.mxu0 %vm562_vm0, %v2816_v24  ;;  %v3025_v39 = vld [vmem:[%s2905_s29 + $0xd8] sm:$0xff]   ;;  %v3028_v40 = vld [vmem:[%s2905_s29 + $0xe0] sm:$0xff]   ;;  %v3039_v41 = vld [vmem:[%s2905_s29 + $0xe8] sm:$0xff]  }
  0x1b   : > { %2442 = vmatmul.mubr.msk.bf16.gmra.mrb[4].mxu1 %vm465_vm1, %v2801_v16  ;;  %v3042_v42 = vld [vmem:[%s2905_s29 + $0xf0] sm:$0xff]   ;;  %v3053_v43 = vld [vmem:[%s2905_s29 + $0xf8] sm:$0xff]   ;;  %v2829_v44 = vld [vmem:[%s2905_s29 + $0x100] sm:$0xff]  }
  0x1c   : > { %2512 = vmatmul.mubr.msk.bf16.gmra.mrb[4].mxu0 %vm465_vm1, %v2802_v17  ;;  %2445 = vmatprep.mubr.msk.bf16.mxu1 %vm465_vm1, %v2803_v18  ;;  %v2830_v45 = vld [vmem:[%s2905_s29 + $0x108] sm:$0xff]   ;;  %v2831_v46 = vld [vmem:[%s2905_s29 + $0x110] sm:$0xff]   ;;  %v2832_v47 = vld [vmem:[%s2905_s29 + $0x118] sm:$0xff]  }
  0x1d   : > { %2515 = vmatprep.mubr.msk.bf16.mxu0 %vm465_vm1, %v2804_v19  ;;  %2646 = vmatpush3.bf16.msra.mxu1 %v935_v9  ;;  %v2833_v48 = vld [vmem:[%s2905_s29 + $0x120] sm:$0xff]   ;;  %v2834_v49 = vld [vmem:[%s2905_s29 + $0x128] sm:$0xff]   ;;  %v2835_v50 = vld [vmem:[%s2905_s29 + $0x130] sm:$0xff]  }
  0x1e   : > { %2576 = vmatpush3.bf16.msra.mxu0 %v1312_v25  ;;  %v2836_v51 = vld [vmem:[%s2905_s29 + $0x138] sm:$0xff]   ;;  %v2837_v52 = vld [vmem:[%s2905_s29 + $0x140] sm:$0xff]   ;;  %v2838_v53 = vld [vmem:[%s2905_s29 + $0x148] sm:$0xff]  }
  0x1f   : > { %v2839_v54 = vld [vmem:[%s2905_s29 + $0x150] sm:$0xff]   ;;  %v2840_v55 = vld [vmem:[%s2905_s29 + $0x158] sm:$0xff]   ;;  %v2841_v56 = vld [vmem:[%s2905_s29 + $0x160] sm:$0xff]  }
  0x20   : > { %v2842_v57 = vld [vmem:[%s2905_s29 + $0x168] sm:$0xff]   ;;  %v2843_v58 = vld [vmem:[%s2905_s29 + $0x170] sm:$0xff]   ;;  %v2844_v59 = vld [vmem:[%s2905_s29 + $0x178] sm:$0xff]  }
  0x23   : > { %2446 = vmatmul.mubr.msk.bf16.gmra.mrb[8].mxu1 %vm465_vm1, %v2805_v20 }
  0x24   : > { %2516 = vmatmul.mubr.msk.bf16.gmra.mrb[8].mxu0 %vm465_vm1, %v2806_v21  ;;  %2449 = vmatprep.mubr.msk.bf16.mxu1 %vm465_vm1, %v2808_v22 }
  0x25   : > { %2519 = vmatprep.mubr.msk.bf16.mxu0 %vm465_vm1, %v2809_v23 }
  0x2b   : > { %2450 = vmatmul.mubr.msk.bf16.gmra.mrb[12].mxu1 %vm465_vm1, %v2810_v26 }
  0x2c   : > { %2520 = vmatmul.mubr.msk.bf16.gmra.mrb[12].mxu0 %vm465_vm1, %v2811_v27  ;;  %2453 = vmatprep.mubr.msk.bf16.mxu1 %vm465_vm1, %v2954_v28 }
  0x2d   : > { %2523 = vmatprep.mubr.msk.bf16.mxu0 %vm465_vm1, %v2794_v8 }
  0x33   : > { %2454 = vmatmul.mubr.msk.bf16.gmra.mrb[16].mxu1 %vm465_vm1, %v2962_v29 }
  0x34   : > { %2524 = vmatmul.mubr.msk.bf16.gmra.mrb[16].mxu0 %vm465_vm1, %v2796_v11  ;;  %2457 = vmatprep.mubr.msk.bf16.mxu1 %vm465_vm1, %v2965_v30 }
  0x35   : > { %2527 = vmatprep.mubr.msk.bf16.mxu0 %vm465_vm1, %v2799_v14 }
  0x3b   : > { %2458 = vmatmul.mubr.msk.bf16.gmra.mrb[20].mxu1 %vm465_vm1, %v2974_v31 }
  0x3c   : > { %2528 = vmatmul.mubr.msk.bf16.gmra.mrb[20].mxu0 %vm465_vm1, %v2801_v16  ;;  %2461 = vmatprep.mubr.msk.bf16.mxu1 %vm465_vm1, %v2977_v32 }
  0x3d   : > { %2531 = vmatprep.mubr.msk.bf16.mxu0 %vm465_vm1, %v2803_v18 }
  0x43   : > { %2462 = vmatmul.mubr.msk.bf16.gmra.mrb[24].mxu1 %vm465_vm1, %v2986_v33 }
  0x44   : > { %2532 = vmatmul.mubr.msk.bf16.gmra.mrb[24].mxu0 %vm465_vm1, %v2805_v20  ;;  %2465 = vmatprep.mubr.msk.bf16.mxu1 %vm465_vm1, %v2989_v34 }
  0x45   : > { %2535 = vmatprep.mubr.msk.bf16.mxu0 %vm465_vm1, %v2808_v22 }
  0x4b   : > { %2466 = vmatmul.mubr.msk.bf16.gmra.mrb[28].mxu1 %vm465_vm1, %v2998_v35 }
  0x4c   : > { %2536 = vmatmul.mubr.msk.bf16.gmra.mrb[28].mxu0 %vm465_vm1, %v2810_v26  ;;  %2469 = vmatprep.mubr.msk.bf16.mxu1 %vm465_vm1, %v3001_v36 }
  0x4d   : > { %2577 = vmatprep.mubr.msk.bf16.mxu0 %vm465_vm1, %v2954_v28 }
  0x53   : > { %2470 = vmatmul.mubr.msk.bf16.gmra.mrb[32].mxu1 %vm465_vm1, %v3011_v37 }
  0x54   : > { %2578 = vmatmul.mubr.msk.bf16.vlgmr.msra.gmra.mrb[0].mxu0 %vm465_vm1, %v2962_v29  ;;  %2473 = vmatprep.mubr.msk.bf16.mxu1 %vm465_vm1, %v3014_v38 }
  0x55   : > { %2581 = vmatprep.mubr.msk.bf16.mxu0 %vm465_vm1, %v2965_v30 }
  0x5b   : > { %2474 = vmatmul.mubr.msk.bf16.gmra.mrb[36].mxu1 %vm465_vm1, %v3025_v39 }
  0x5c   : > { %2582 = vmatmul.mubr.msk.bf16.gmra.mrb[4].mxu0 %vm465_vm1, %v2974_v31  ;;  %2477 = vmatprep.mubr.msk.bf16.mxu1 %vm465_vm1, %v3028_v40 }
  0x5d   : > { %2585 = vmatprep.mubr.msk.bf16.mxu0 %vm465_vm1, %v2977_v32 }
  0x63   : > { %2478 = vmatmul.mubr.msk.bf16.gmra.mrb[40].mxu1 %vm465_vm1, %v3039_v41 }
  0x64   : > { %2586 = vmatmul.mubr.msk.bf16.gmra.mrb[8].mxu0 %vm465_vm1, %v2986_v33  ;;  %2481 = vmatprep.mubr.msk.bf16.mxu1 %vm465_vm1, %v3042_v42 }
  0x65   : > { %2589 = vmatprep.mubr.msk.bf16.mxu0 %vm465_vm1, %v2989_v34 }
  0x6b   : > { %2482 = vmatmul.mubr.msk.bf16.gmra.mrb[44].mxu1 %vm465_vm1, %v3053_v43 }
  0x6c   : > { %2590 = vmatmul.mubr.msk.bf16.gmra.mrb[12].mxu0 %vm465_vm1, %v2998_v35  ;;  %2485 = vmatprep.mubr.msk.bf16.mxu1 %vm465_vm1, %v2829_v44 }
  0x6d   : > { %2593 = vmatprep.mubr.msk.bf16.mxu0 %vm465_vm1, %v3001_v36 }
  0x73   : > { %2486 = vmatmul.mubr.msk.bf16.gmra.mrb[48].mxu1 %vm465_vm1, %v2830_v45 }
  0x74   : > { %2594 = vmatmul.mubr.msk.bf16.gmra.mrb[16].mxu0 %vm465_vm1, %v3011_v37  ;;  %2489 = vmatprep.mubr.msk.bf16.mxu1 %vm465_vm1, %v2831_v46 }
  0x75   : > { %2597 = vmatprep.mubr.msk.bf16.mxu0 %vm465_vm1, %v3014_v38 }
  0x7b   : > { %2490 = vmatmul.mubr.msk.bf16.gmra.mrb[52].mxu1 %vm465_vm1, %v2832_v47 }
  0x7c   : > { %2598 = vmatmul.mubr.msk.bf16.gmra.mrb[20].mxu0 %vm465_vm1, %v3025_v39  ;;  %2493 = vmatprep.mubr.msk.bf16.mxu1 %vm465_vm1, %v2833_v48 }
  0x7d   : > { %2601 = vmatprep.mubr.msk.bf16.mxu0 %vm465_vm1, %v3028_v40 }
  0x83   : > { %2494 = vmatmul.mubr.msk.bf16.gmra.mrb[56].mxu1 %vm465_vm1, %v2834_v49 }
  0x84   : > { %2602 = vmatmul.mubr.msk.bf16.gmra.mrb[24].mxu0 %vm465_vm1, %v3039_v41  ;;  %2497 = vmatprep.mubr.msk.bf16.mxu1 %vm465_vm1, %v2835_v50 }
  0x85   : > { %2605 = vmatprep.mubr.msk.bf16.mxu0 %vm465_vm1, %v3042_v42 }
  0x8b   : > { %2498 = vmatmul.mubr.msk.bf16.gmra.mrb[60].mxu1 %vm465_vm1, %v2836_v51 }
  0x8c   : > { %2606 = vmatmul.mubr.msk.bf16.gmra.mrb[28].mxu0 %vm465_vm1, %v3053_v43  ;;  %2539 = vmatprep.mubr.msk.bf16.mxu1 %vm465_vm1, %v2954_v28 }
  0x8d   : > { %2609 = vmatprep.mubr.msk.bf16.mxu0 %vm465_vm1, %v2829_v44 }
  0x93   : > { %2540 = vmatmul.mubr.msk.bf16.vlgmr.msra.gmra.mrb[32].mxu1 %vm465_vm1, %v2962_v29 }
  0x94   : > { %2610 = vmatmul.mubr.msk.bf16.gmra.mrb[32].mxu0 %vm465_vm1, %v2830_v45  ;;  %2543 = vmatprep.mubr.msk.bf16.mxu1 %vm465_vm1, %v2965_v30 }
  0x95   : > { %2613 = vmatprep.mubr.msk.bf16.mxu0 %vm465_vm1, %v2831_v46 }
  0x9b   : > { %2544 = vmatmul.mubr.msk.bf16.gmra.mrb[36].mxu1 %vm465_vm1, %v2974_v31 }
  0x9c   : > { %2614 = vmatmul.mubr.msk.bf16.gmra.mrb[36].mxu0 %vm465_vm1, %v2832_v47  ;;  %2547 = vmatprep.mubr.msk.bf16.mxu1 %vm465_vm1, %v2977_v32 }
  0x9d   : > { %2617 = vmatprep.mubr.msk.bf16.mxu0 %vm465_vm1, %v2833_v48 }
  0xa3   : > { %2548 = vmatmul.mubr.msk.bf16.gmra.mrb[40].mxu1 %vm465_vm1, %v2986_v33 }
  0xa4   : > { %2618 = vmatmul.mubr.msk.bf16.gmra.mrb[40].mxu0 %vm465_vm1, %v2834_v49  ;;  %2551 = vmatprep.mubr.msk.bf16.mxu1 %vm465_vm1, %v2989_v34 }
  0xa5   : > { %2621 = vmatprep.mubr.msk.bf16.mxu0 %vm465_vm1, %v2835_v50 }
  0xab   : > { %2552 = vmatmul.mubr.msk.bf16.gmra.mrb[44].mxu1 %vm465_vm1, %v2998_v35 }
  0xac   : > { %2622 = vmatmul.mubr.msk.bf16.gmra.mrb[44].mxu0 %vm465_vm1, %v2836_v51  ;;  %2555 = vmatprep.mubr.msk.bf16.mxu1 %vm465_vm1, %v3001_v36 }
  0xad   : > { %2625 = vmatprep.mubr.msk.bf16.mxu0 %vm465_vm1, %v2837_v52 }
  0xb3   : > { %2556 = vmatmul.mubr.msk.bf16.gmra.mrb[48].mxu1 %vm465_vm1, %v3011_v37 }
  0xb4   : > { %2626 = vmatmul.mubr.msk.bf16.gmra.mrb[48].mxu0 %vm465_vm1, %v2838_v53  ;;  %2559 = vmatprep.mubr.msk.bf16.mxu1 %vm465_vm1, %v3014_v38 }
  0xb5   : > { %2629 = vmatprep.mubr.msk.bf16.mxu0 %vm465_vm1, %v2839_v54 }
  0xbb   : > { %2560 = vmatmul.mubr.msk.bf16.gmra.mrb[52].mxu1 %vm465_vm1, %v3025_v39 }
  0xbc   : > { %2630 = vmatmul.mubr.msk.bf16.gmra.mrb[52].mxu0 %vm465_vm1, %v2840_v55  ;;  %2563 = vmatprep.mubr.msk.bf16.mxu1 %vm465_vm1, %v3028_v40 }
  0xbd   : > { %2633 = vmatprep.mubr.msk.bf16.mxu0 %vm465_vm1, %v2841_v56 }
  0xc3   : > { %2564 = vmatmul.mubr.msk.bf16.gmra.mrb[56].mxu1 %vm465_vm1, %v3039_v41 }
  0xc4   : > { %2634 = vmatmul.mubr.msk.bf16.gmra.mrb[56].mxu0 %vm465_vm1, %v2842_v57  ;;  %2567 = vmatprep.mubr.msk.bf16.mxu1 %vm465_vm1, %v3042_v42 }
  0xc5   : > { %2637 = vmatprep.mubr.msk.bf16.mxu0 %vm465_vm1, %v2843_v58 }
  0xcb   : > { %2568 = vmatmul.mubr.msk.bf16.gmra.mrb[60].mxu1 %vm465_vm1, %v3053_v43 }
  0xcc   : > { %2638 = vmatmul.mubr.msk.bf16.gmra.mrb[60].mxu0 %vm465_vm1, %v2844_v59 }
  0xe6   : > { %v2439_v60 = vpop.f32.mrb[0].mxu1 }
  0xe7   : > { %v600_v61 = vpop.f32.mrb[1].mxu1 }
  0xe8   : > { %v2440_v62 = vpop.f32.mrb[2].mxu1 }
  0xe9   : > { %v603_v63 = vpop.f32.mrb[3].mxu1 }
  0xee   : > { %v2443_v0 = vpop.f32.mrb[4].mxu1 }
  0xef   : > { %v616_v1 = vpop.f32.mrb[5].mxu1 }
  0xf0   : > { %v3147_v2 = vpop.f32.mrb[6].mxu1 }
  0xf1   : > { %v3149_v3 = vpop.f32.mrb[7].mxu1 }
  0xf6   : > { %v3151_v4 = vpop.f32.mrb[8].mxu1 }
  0xf7   : > { %v3153_v5 = vpop.f32.mrb[9].mxu1 }
  0xf8   : > { %v3155_v6 = vpop.f32.mrb[10].mxu1 }
  0xf9   : > { %v3157_v7 = vpop.f32.mrb[11].mxu1 }
  0xfe   : > { %v3159_v8 = vpop.f32.mrb[12].mxu1 }
  0xff   : > { %v3161_v9 = vpop.f32.mrb[13].mxu1 }
 0x100   : > { %v3163_v10 = vpop.f32.mrb[14].mxu1 }
 0x101   : > { %v3165_v11 = vpop.f32.mrb[15].mxu1 }
 0x106   : > { %v3167_v12 = vpop.f32.mrb[16].mxu1 }
 0x107   : > { %v3169_v13 = vpop.f32.mrb[17].mxu1 }
 0x108   : > { %v3171_v14 = vpop.f32.mrb[18].mxu1 }
 0x109   : > { %v3173_v15 = vpop.f32.mrb[19].mxu1 }
 0x10e   : > { %v3175_v16 = vpop.f32.mrb[20].mxu1 }
 0x10f   : > { %v3177_v17 = vpop.f32.mrb[21].mxu1 }
 0x110   : > { %v3179_v18 = vpop.f32.mrb[22].mxu1 }
 0x111   : > { %v3181_v19 = vpop.f32.mrb[23].mxu1 }
 0x116   : > { %v3183_v20 = vpop.f32.mrb[24].mxu1 }
 0x117   : > { %v3185_v21 = vpop.f32.mrb[25].mxu1 }
 0x118   : > { %v3187_v22 = vpop.f32.mrb[26].mxu1 }
 0x119   : > { %v3189_v23 = vpop.f32.mrb[27].mxu1 }
 0x11e   : > { %v3191_v24 = vpop.f32.mrb[28].mxu1 }
 0x11f   : > { %v3193_v25 = vpop.f32.mrb[29].mxu1 }
 0x120   : > { %v3195_v26 = vpop.f32.mrb[30].mxu1 }
 0x121   : > { %v3197_v27 = vpop.f32.mrb[31].mxu1 }
 0x127   : > { %v2579_v28 = vpop.f32.mrb[0].mxu0 }
 0x128   : > { %v2647_v29 = vadd.f32 %v2579_v28, %v2439_v60  ;;  %v1348_v30 = vpop.f32.mrb[1].mxu0 }
 0x129   : > { %v2648_v31 = vadd.f32 %v1348_v30, %v600_v61  ;;  %v2580_v32 = vpop.f32.mrb[2].mxu0 }
 0x12a   : > { %1670 = vst.msk [vmem:[%s3203_s14 + $0x10] sm:$0xff] %vm1667_vm2, %v2647_v29  ;;  %v2649_v33 = vadd.f32 %v2580_v32, %v2440_v62  ;;  %v1351_v34 = vpop.f32.mrb[3].mxu0  ;;  %v1869_v37 = vmul.f32 %v2647_v29, %v2647_v29  ;;  %v1735_v43 = vsel %vm1667_vm2, %v2647_v29, 0.0 }
 0x12b   : > { %1668 = vst.msk [vmem:[%s3203_s14] sm:$0xff] %vm1667_vm2, %v2648_v31  ;;  %v1867_v35 = vmul.f32 %v2648_v31, %v2648_v31  ;;  %v2650_v36 = vadd.f32 %v1351_v34, %v603_v63  ;;  %v1732_v38 = vsel %vm1667_vm2, %v2648_v31, 0.0 }
 0x12c   : > { %1671 = vst.msk [vmem:[%s3203_s14 + $0x18] sm:$0xff] %vm1667_vm2, %v2649_v33  ;;  %v1870_v41 = vmul.f32 %v2649_v33, %v2649_v33  ;;  %v1934_v51 = vsel %vm1667_vm2, %v1869_v37, 0.0  ;;  %v1737_v52 = vsel %vm1667_vm2, %v2649_v33, 0.0 }
 0x12d   : > { %1669 = vst.msk [vmem:[%s3203_s14 + $0x8] sm:$0xff] %vm1667_vm2, %v2650_v36  ;;  %v1733_v39 = vsel %vm1667_vm2, %v2650_v36, 0.0  ;;  %v1868_v40 = vmul.f32 %v2650_v36, %v2650_v36  ;;  %v1931_v44 = vsel %vm1667_vm2, %v1867_v35, 0.0 }
 0x12e   : > { %v1734_v42 = vadd.f32 %v1733_v39, %v1732_v38  ;;  %v1936_v55 = vsel %vm1667_vm2, %v1870_v41, 0.0 }
 0x12f   : > { %v1932_v45 = vsel %vm1667_vm2, %v1868_v40, 0.0  ;;  %v2583_v46 = vpop.f32.mrb[4].mxu0 }
 0x130   : > { %v1736_v47 = vadd.f32 %v1735_v43, %v1734_v42  ;;  %v1933_v48 = vadd.f32 %v1932_v45, %v1931_v44  ;;  %v2651_v49 = vadd.f32 %v2583_v46, %v2443_v0  ;;  %v1364_v50 = vpop.f32.mrb[5].mxu0 }
 0x131   : > { %v2652_v53 = vadd.f32 %v1364_v50, %v616_v1  ;;  %v2584_v54 = vpop.f32.mrb[6].mxu0 }
 0x132   : > { %v1935_v56 = vadd.f32 %v1934_v51, %v1933_v48  ;;  %1674 = vst.msk [vmem:[%s3203_s14 + $0x30] sm:$0xff] %vm1667_vm2, %v2651_v49  ;;  %v1738_v57 = vadd.f32 %v1737_v52, %v1736_v47  ;;  %v1367_v58 = vpop.f32.mrb[7].mxu0  ;;  %v2653_v61 = vadd.f32 %v2584_v54, %v3147_v2  ;;  %v1873_v29 = vmul.f32 %v2651_v49, %v2651_v49 }
 0x133   : > { %1672 = vst.msk [vmem:[%s3203_s14 + $0x20] sm:$0xff] %vm1667_vm2, %v2652_v53  ;;  %v1739_v59 = vsel %vm1667_vm2, %v2652_v53, 0.0  ;;  %v1871_v60 = vmul.f32 %v2652_v53, %v2652_v53  ;;  %v2654_v62 = vadd.f32 %v1367_v58, %v3149_v3  ;;  %v1743_v33 = vsel %vm1667_vm2, %v2651_v49, 0.0 }
 0x134   : > { %v1740_v63 = vadd.f32 %v1739_v59, %v1738_v57  ;;  %v1937_v0 = vadd.f32 %v1936_v55, %v1935_v56  ;;  %1675 = vst.msk [vmem:[%s3203_s14 + $0x38] sm:$0xff] %vm1667_vm2, %v2653_v61  ;;  %v1874_v3 = vmul.f32 %v2653_v61, %v2653_v61  ;;  %v1745_v38 = vsel %vm1667_vm2, %v2653_v61, 0.0 }
 0x135   : > { %v1938_v1 = vsel %vm1667_vm2, %v1871_v60, 0.0  ;;  %1673 = vst.msk [vmem:[%s3203_s14 + $0x28] sm:$0xff] %vm1667_vm2, %v2654_v62  ;;  %v1741_v28 = vsel %vm1667_vm2, %v2654_v62, 0.0  ;;  %v1872_v32 = vmul.f32 %v2654_v62, %v2654_v62  ;;  %v1942_v42 = vsel %vm1667_vm2, %v1873_v29, 0.0 }
 0x136   : > { %v1939_v30 = vadd.f32 %v1938_v1, %v1937_v0  ;;  %v1742_v31 = vadd.f32 %v1741_v28, %v1740_v63 }
 0x137   : > { %v2587_v2 = vpop.f32.mrb[8].mxu0  ;;  %v1940_v35 = vsel %vm1667_vm2, %v1872_v32, 0.0 }
 0x138   : > { %v1744_v34 = vadd.f32 %v1743_v33, %v1742_v31  ;;  %v2655_v36 = vadd.f32 %v2587_v2, %v3151_v4  ;;  %v1380_v37 = vpop.f32.mrb[9].mxu0  ;;  %v1941_v39 = vadd.f32 %v1940_v35, %v1939_v30 }
 0x139   : > { %v2656_v40 = vadd.f32 %v1380_v37, %v3153_v5  ;;  %v2588_v41 = vpop.f32.mrb[10].mxu0  ;;  %v1944_v5 = vsel %vm1667_vm2, %v1874_v3, 0.0 }
 0x13a   : > { %1678 = vst.msk [vmem:[%s3203_s14 + $0x50] sm:$0xff] %vm1667_vm2, %v2655_v36  ;;  %v1746_v43 = vadd.f32 %v1745_v38, %v1744_v34  ;;  %v2657_v44 = vadd.f32 %v2588_v41, %v3155_v6  ;;  %v1383_v45 = vpop.f32.mrb[11].mxu0  ;;  %v1943_v46 = vadd.f32 %v1942_v42, %v1941_v39  ;;  %v1877_v53 = vmul.f32 %v2655_v36, %v2655_v36 }
 0x13b   : > { %1676 = vst.msk [vmem:[%s3203_s14 + $0x40] sm:$0xff] %vm1667_vm2, %v2656_v40  ;;  %v1747_v4 = vsel %vm1667_vm2, %v2656_v40, 0.0  ;;  %v1875_v47 = vmul.f32 %v2656_v40, %v2656_v40  ;;  %v2658_v48 = vadd.f32 %v1383_v45, %v3157_v7  ;;  %v1751_v55 = vsel %vm1667_vm2, %v2655_v36, 0.0 }
 0x13c   : > { %v1748_v49 = vadd.f32 %v1747_v4, %v1746_v43  ;;  %1679 = vst.msk [vmem:[%s3203_s14 + $0x58] sm:$0xff] %vm1667_vm2, %v2657_v44  ;;  %v1945_v50 = vadd.f32 %v1944_v5, %v1943_v46  ;;  %v1878_v58 = vmul.f32 %v2657_v44, %v2657_v44  ;;  %v1753_v62 = vsel %vm1667_vm2, %v2657_v44, 0.0 }
 0x13d   : > { %v1946_v51 = vsel %vm1667_vm2, %v1875_v47, 0.0  ;;  %1677 = vst.msk [vmem:[%s3203_s14 + $0x48] sm:$0xff] %vm1667_vm2, %v2658_v48  ;;  %v1749_v6 = vsel %vm1667_vm2, %v2658_v48, 0.0  ;;  %v1876_v52 = vmul.f32 %v2658_v48, %v2658_v48  ;;  %v1950_v28 = vsel %vm1667_vm2, %v1877_v53, 0.0 }
 0x13e   : > { %v1750_v54 = vadd.f32 %v1749_v6, %v1748_v49  ;;  %v1947_v56 = vadd.f32 %v1946_v51, %v1945_v50 }
 0x13f   : > { %v1948_v7 = vsel %vm1667_vm2, %v1876_v52, 0.0  ;;  %v2591_v57 = vpop.f32.mrb[12].mxu0 }
 0x140   : > { %v1752_v59 = vadd.f32 %v1751_v55, %v1750_v54  ;;  %v2659_v60 = vadd.f32 %v2591_v57, %v3159_v8  ;;  %v1396_v61 = vpop.f32.mrb[13].mxu0  ;;  %v1949_v63 = vadd.f32 %v1948_v7, %v1947_v56 }
 0x141   : > { %v2660_v0 = vadd.f32 %v1396_v61, %v3161_v9  ;;  %v2592_v1 = vpop.f32.mrb[14].mxu0  ;;  %v1952_v9 = vsel %vm1667_vm2, %v1878_v58, 0.0 }
 0x142   : > { %1682 = vst.msk [vmem:[%s3203_s14 + $0x70] sm:$0xff] %vm1667_vm2, %v2659_v60  ;;  %v1754_v29 = vadd.f32 %v1753_v62, %v1752_v59  ;;  %v2661_v30 = vadd.f32 %v2592_v1, %v3163_v10  ;;  %v1399_v31 = vpop.f32.mrb[15].mxu0  ;;  %v1951_v32 = vadd.f32 %v1950_v28, %v1949_v63  ;;  %v1881_v37 = vmul.f32 %v2659_v60, %v2659_v60 }
 0x143   : > { %1680 = vst.msk [vmem:[%s3203_s14 + $0x60] sm:$0xff] %vm1667_vm2, %v2660_v0  ;;  %v1755_v8 = vsel %vm1667_vm2, %v2660_v0, 0.0  ;;  %v1879_v33 = vmul.f32 %v2660_v0, %v2660_v0  ;;  %v2662_v2 = vadd.f32 %v1399_v31, %v3165_v11  ;;  %v1759_v39 = vsel %vm1667_vm2, %v2659_v60, 0.0 }
 0x144   : > { %v1756_v3 = vadd.f32 %v1755_v8, %v1754_v29  ;;  %1683 = vst.msk [vmem:[%s3203_s14 + $0x78] sm:$0xff] %vm1667_vm2, %v2661_v30  ;;  %v1953_v34 = vadd.f32 %v1952_v9, %v1951_v32  ;;  %v1882_v42 = vmul.f32 %v2661_v30, %v2661_v30  ;;  %v1761_v46 = vsel %vm1667_vm2, %v2661_v30, 0.0 }
 0x145   : > { %v1954_v35 = vsel %vm1667_vm2, %v1879_v33, 0.0  ;;  %1681 = vst.msk [vmem:[%s3203_s14 + $0x68] sm:$0xff] %vm1667_vm2, %v2662_v2  ;;  %v1757_v10 = vsel %vm1667_vm2, %v2662_v2, 0.0  ;;  %v1880_v36 = vmul.f32 %v2662_v2, %v2662_v2  ;;  %v1958_v5 = vsel %vm1667_vm2, %v1881_v37, 0.0 }
 0x146   : > { %v1758_v38 = vadd.f32 %v1757_v10, %v1756_v3  ;;  %v1955_v40 = vadd.f32 %v1954_v35, %v1953_v34 }
 0x147   : > { %v1956_v11 = vsel %vm1667_vm2, %v1880_v36, 0.0  ;;  %v2595_v41 = vpop.f32.mrb[16].mxu0 }
 0x148   : > { %v1760_v43 = vadd.f32 %v1759_v39, %v1758_v38  ;;  %v2663_v44 = vadd.f32 %v2595_v41, %v3167_v12  ;;  %v1412_v45 = vpop.f32.mrb[17].mxu0  ;;  %v1957_v4 = vadd.f32 %v1956_v11, %v1955_v40 }
 0x149   : > { %v2664_v47 = vadd.f32 %v1412_v45, %v3169_v13  ;;  %v2596_v48 = vpop.f32.mrb[18].mxu0  ;;  %v1960_v13 = vsel %vm1667_vm2, %v1882_v42, 0.0 }
 0x14a   : > { %1686 = vst.msk [vmem:[%s3203_s14 + $0x90] sm:$0xff] %vm1667_vm2, %v2663_v44  ;;  %v1762_v49 = vadd.f32 %v1761_v46, %v1760_v43  ;;  %v2665_v50 = vadd.f32 %v2596_v48, %v3171_v14  ;;  %v1415_v51 = vpop.f32.mrb[19].mxu0  ;;  %v1959_v6 = vadd.f32 %v1958_v5, %v1957_v4  ;;  %v1885_v57 = vmul.f32 %v2663_v44, %v2663_v44 }
 0x14b   : > { %1684 = vst.msk [vmem:[%s3203_s14 + $0x80] sm:$0xff] %vm1667_vm2, %v2664_v47  ;;  %v1763_v12 = vsel %vm1667_vm2, %v2664_v47, 0.0  ;;  %v1883_v52 = vmul.f32 %v2664_v47, %v2664_v47  ;;  %v2666_v53 = vadd.f32 %v1415_v51, %v3173_v15  ;;  %v1767_v59 = vsel %vm1667_vm2, %v2663_v44, 0.0 }
 0x14c   : > { %v1764_v54 = vadd.f32 %v1763_v12, %v1762_v49  ;;  %1687 = vst.msk [vmem:[%s3203_s14 + $0x98] sm:$0xff] %vm1667_vm2, %v2665_v50  ;;  %v1961_v55 = vadd.f32 %v1960_v13, %v1959_v6  ;;  %v1886_v62 = vmul.f32 %v2665_v50, %v2665_v50  ;;  %v1769_v28 = vsel %vm1667_vm2, %v2665_v50, 0.0 }
 0x14d   : > { %v1962_v56 = vsel %vm1667_vm2, %v1883_v52, 0.0  ;;  %1685 = vst.msk [vmem:[%s3203_s14 + $0x88] sm:$0xff] %vm1667_vm2, %v2666_v53  ;;  %v1765_v14 = vsel %vm1667_vm2, %v2666_v53, 0.0  ;;  %v1884_v7 = vmul.f32 %v2666_v53, %v2666_v53  ;;  %v1966_v32 = vsel %vm1667_vm2, %v1885_v57, 0.0 }
 0x14e   : > { %v1766_v58 = vadd.f32 %v1765_v14, %v1764_v54  ;;  %v1963_v60 = vadd.f32 %v1962_v56, %v1961_v55 }
 0x14f   : > { %v1964_v15 = vsel %vm1667_vm2, %v1884_v7, 0.0  ;;  %v2599_v61 = vpop.f32.mrb[20].mxu0 }
 0x150   : > { %v1768_v63 = vadd.f32 %v1767_v59, %v1766_v58  ;;  %v2667_v0 = vadd.f32 %v2599_v61, %v3175_v16  ;;  %v1428_v1 = vpop.f32.mrb[21].mxu0  ;;  %v1965_v29 = vadd.f32 %v1964_v15, %v1963_v60 }
 0x151   : > { %v2668_v30 = vadd.f32 %v1428_v1, %v3177_v17  ;;  %v2600_v31 = vpop.f32.mrb[22].mxu0  ;;  %v1968_v17 = vsel %vm1667_vm2, %v1886_v62, 0.0 }
 0x152   : > { %1690 = vst.msk [vmem:[%s3203_s14 + $0xb0] sm:$0xff] %vm1667_vm2, %v2667_v0  ;;  %v1770_v8 = vadd.f32 %v1769_v28, %v1768_v63  ;;  %v2669_v33 = vadd.f32 %v2600_v31, %v3179_v18  ;;  %v1431_v2 = vpop.f32.mrb[23].mxu0  ;;  %v1967_v9 = vadd.f32 %v1966_v32, %v1965_v29  ;;  %v1889_v38 = vmul.f32 %v2667_v0, %v2667_v0 }
 0x153   : > { %1688 = vst.msk [vmem:[%s3203_s14 + $0xa0] sm:$0xff] %vm1667_vm2, %v2668_v30  ;;  %v1771_v16 = vsel %vm1667_vm2, %v2668_v30, 0.0  ;;  %v1887_v3 = vmul.f32 %v2668_v30, %v2668_v30  ;;  %v2670_v34 = vadd.f32 %v1431_v2, %v3181_v19  ;;  %v1775_v40 = vsel %vm1667_vm2, %v2667_v0, 0.0 }
 0x154   : > { %v1772_v35 = vadd.f32 %v1771_v16, %v1770_v8  ;;  %1691 = vst.msk [vmem:[%s3203_s14 + $0xb8] sm:$0xff] %vm1667_vm2, %v2669_v33  ;;  %v1969_v10 = vadd.f32 %v1968_v17, %v1967_v9  ;;  %v1890_v42 = vmul.f32 %v2669_v33, %v2669_v33  ;;  %v1777_v46 = vsel %vm1667_vm2, %v2669_v33, 0.0 }
 0x155   : > { %v1970_v36 = vsel %vm1667_vm2, %v1887_v3, 0.0  ;;  %1689 = vst.msk [vmem:[%s3203_s14 + $0xa8] sm:$0xff] %vm1667_vm2, %v2670_v34  ;;  %v1773_v18 = vsel %vm1667_vm2, %v2670_v34, 0.0  ;;  %v1888_v37 = vmul.f32 %v2670_v34, %v2670_v34  ;;  %v1974_v5 = vsel %vm1667_vm2, %v1889_v38, 0.0 }
 0x156   : > { %v1774_v39 = vadd.f32 %v1773_v18, %v1772_v35  ;;  %v1971_v11 = vadd.f32 %v1970_v36, %v1969_v10 }
 0x157   : > { %v1972_v19 = vsel %vm1667_vm2, %v1888_v37, 0.0  ;;  %v2603_v41 = vpop.f32.mrb[24].mxu0 }
 0x158   : > { %v1776_v43 = vadd.f32 %v1775_v40, %v1774_v39  ;;  %v2671_v44 = vadd.f32 %v2603_v41, %v3183_v20  ;;  %v1444_v45 = vpop.f32.mrb[25].mxu0  ;;  %v1973_v4 = vadd.f32 %v1972_v19, %v1971_v11 }
 0x159   : > { %v2672_v47 = vadd.f32 %v1444_v45, %v3185_v21  ;;  %v2604_v48 = vpop.f32.mrb[26].mxu0  ;;  %v1976_v21 = vsel %vm1667_vm2, %v1890_v42, 0.0 }
 0x15a   : > { %1694 = vst.msk [vmem:[%s3203_s14 + $0xd0] sm:$0xff] %vm1667_vm2, %v2671_v44  ;;  %v1778_v49 = vadd.f32 %v1777_v46, %v1776_v43  ;;  %v2673_v50 = vadd.f32 %v2604_v48, %v3187_v22  ;;  %v1447_v51 = vpop.f32.mrb[27].mxu0  ;;  %v1975_v6 = vadd.f32 %v1974_v5, %v1973_v4  ;;  %v1893_v56 = vmul.f32 %v2671_v44, %v2671_v44 }
 0x15b   : > { %1692 = vst.msk [vmem:[%s3203_s14 + $0xc0] sm:$0xff] %vm1667_vm2, %v2672_v47  ;;  %v1779_v20 = vsel %vm1667_vm2, %v2672_v47, 0.0  ;;  %v1891_v12 = vmul.f32 %v2672_v47, %v2672_v47  ;;  %v2674_v52 = vadd.f32 %v1447_v51, %v3189_v23  ;;  %v1783_v7 = vsel %vm1667_vm2, %v2671_v44, 0.0 }
 0x15c   : > { %v1780_v53 = vadd.f32 %v1779_v20, %v1778_v49  ;;  %1695 = vst.msk [vmem:[%s3203_s14 + $0xd8] sm:$0xff] %vm1667_vm2, %v2673_v50  ;;  %v1977_v13 = vadd.f32 %v1976_v21, %v1975_v6  ;;  %v1894_v59 = vmul.f32 %v2673_v50, %v2673_v50  ;;  %v1785_v62 = vsel %vm1667_vm2, %v2673_v50, 0.0 }
 0x15d   : > { %v1978_v54 = vsel %vm1667_vm2, %v1891_v12, 0.0  ;;  %1693 = vst.msk [vmem:[%s3203_s14 + $0xc8] sm:$0xff] %vm1667_vm2, %v2674_v52  ;;  %v1781_v22 = vsel %vm1667_vm2, %v2674_v52, 0.0  ;;  %v1892_v55 = vmul.f32 %v2674_v52, %v2674_v52  ;;  %v1982_v28 = vsel %vm1667_vm2, %v1893_v56, 0.0 }
 0x15e   : > { %v1782_v14 = vadd.f32 %v1781_v22, %v1780_v53  ;;  %v1979_v57 = vadd.f32 %v1978_v54, %v1977_v13 }
 0x15f   : > { %v1980_v23 = vsel %vm1667_vm2, %v1892_v55, 0.0  ;;  %v2607_v58 = vpop.f32.mrb[28].mxu0 }
 0x160   : > { %v1784_v60 = vadd.f32 %v1783_v7, %v1782_v14  ;;  %v2675_v15 = vadd.f32 %v2607_v58, %v3191_v24  ;;  %v1460_v61 = vpop.f32.mrb[29].mxu0  ;;  %v1981_v63 = vadd.f32 %v1980_v23, %v1979_v57 }
 0x161   : > { %v2676_v0 = vadd.f32 %v1460_v61, %v3193_v25  ;;  %v2608_v1 = vpop.f32.mrb[30].mxu0  ;;  %v1984_v25 = vsel %vm1667_vm2, %v1894_v59, 0.0 }
 0x162   : > { %1698 = vst.msk [vmem:[%s3203_s14 + $0xf0] sm:$0xff] %vm1667_vm2, %v2675_v15  ;;  %v1786_v29 = vadd.f32 %v1785_v62, %v1784_v60  ;;  %v2677_v30 = vadd.f32 %v2608_v1, %v3195_v26  ;;  %v1463_v31 = vpop.f32.mrb[31].mxu0  ;;  %v1983_v32 = vadd.f32 %v1982_v28, %v1981_v63  ;;  %v1897_v34 = vmul.f32 %v2675_v15, %v2675_v15 }
 0x163   : > { %1696 = vst.msk [vmem:[%s3203_s14 + $0xe0] sm:$0xff] %vm1667_vm2, %v2676_v0  ;;  %v1787_v24 = vsel %vm1667_vm2, %v2676_v0, 0.0  ;;  %v1895_v8 = vmul.f32 %v2676_v0, %v2676_v0  ;;  %v2678_v33 = vadd.f32 %v1463_v31, %v3197_v27  ;;  %v1791_v10 = vsel %vm1667_vm2, %v2675_v15, 0.0 }
 0x164   : > { %v1788_v2 = vadd.f32 %v1787_v24, %v1786_v29  ;;  %1699 = vst.msk [vmem:[%s3203_s14 + $0xf8] sm:$0xff] %vm1667_vm2, %v2677_v30  ;;  %v1985_v9 = vadd.f32 %v1984_v25, %v1983_v32  ;;  %v1898_v38 = vmul.f32 %v2677_v30, %v2677_v30  ;;  %v1793_v41 = vsel %vm1667_vm2, %v2677_v30, 0.0 }
 0x165   : > { %v1986_v16 = vsel %vm1667_vm2, %v1895_v8, 0.0  ;;  %1697 = vst.msk [vmem:[%s3203_s14 + $0xe8] sm:$0xff] %vm1667_vm2, %v2678_v33  ;;  %v1789_v26 = vsel %vm1667_vm2, %v2678_v33, 0.0  ;;  %v1896_v3 = vmul.f32 %v2678_v33, %v2678_v33  ;;  %v1990_v46 = vsel %vm1667_vm2, %v1897_v34, 0.0 }
 0x166   : > { %v1790_v17 = vadd.f32 %v1789_v26, %v1788_v2  ;;  %v2541_v35 = vpop.f32.mrb[32].mxu1  ;;  %v1987_v27 = vadd.f32 %v1986_v16, %v1985_v9  ;;  %v1992_v6 = vsel %vm1667_vm2, %v1898_v38, 0.0 }
 0x167   : > { %v1988_v36 = vsel %vm1667_vm2, %v1896_v3, 0.0  ;;  %v2611_v18 = vpop.f32.mrb[32].mxu0  ;;  %v1099_v37 = vpop.f32.mrb[33].mxu1 }
 0x168   : > { %v1792_v39 = vadd.f32 %v1791_v10, %v1790_v17  ;;  %v2679_v40 = vadd.f32 %v2611_v18, %v2541_v35  ;;  %v1476_v11 = vpop.f32.mrb[33].mxu0  ;;  %v2542_v19 = vpop.f32.mrb[34].mxu1  ;;  %v1989_v42 = vadd.f32 %v1988_v36, %v1987_v27 }
 0x169   : > { %v2680_v43 = vadd.f32 %v1476_v11, %v1099_v37  ;;  %v2612_v44 = vpop.f32.mrb[34].mxu0  ;;  %v1102_v45 = vpop.f32.mrb[35].mxu1 }
 0x16a   : > { %1702 = vst.msk [vmem:[%s3203_s14 + $0x110] sm:$0xff] %vm1667_vm2, %v2679_v40  ;;  %v1794_v4 = vadd.f32 %v1793_v41, %v1792_v39  ;;  %v2681_v47 = vadd.f32 %v2612_v44, %v2542_v19  ;;  %v1479_v48 = vpop.f32.mrb[35].mxu0  ;;  %v1991_v5 = vadd.f32 %v1990_v46, %v1989_v42  ;;  %v1901_v13 = vmul.f32 %v2679_v40, %v2679_v40 }
 0x16b   : > { %1700 = vst.msk [vmem:[%s3203_s14 + $0x100] sm:$0xff] %vm1667_vm2, %v2680_v43  ;;  %v1795_v49 = vsel %vm1667_vm2, %v2680_v43, 0.0  ;;  %v1899_v50 = vmul.f32 %v2680_v43, %v2680_v43  ;;  %v2682_v51 = vadd.f32 %v1479_v48, %v1102_v45  ;;  %v1799_v55 = vsel %vm1667_vm2, %v2679_v40, 0.0 }
 0x16c   : > { %v1796_v20 = vadd.f32 %v1795_v49, %v1794_v4  ;;  %1703 = vst.msk [vmem:[%s3203_s14 + $0x118] sm:$0xff] %vm1667_vm2, %v2681_v47  ;;  %v1993_v12 = vadd.f32 %v1992_v6, %v1991_v5  ;;  %v1902_v23 = vmul.f32 %v2681_v47, %v2681_v47  ;;  %v1801_v61 = vsel %vm1667_vm2, %v2681_v47, 0.0 }
 0x16d   : > { %v1994_v52 = vsel %vm1667_vm2, %v1899_v50, 0.0  ;;  %1701 = vst.msk [vmem:[%s3203_s14 + $0x108] sm:$0xff] %vm1667_vm2, %v2682_v51  ;;  %v1797_v21 = vsel %vm1667_vm2, %v2682_v51, 0.0  ;;  %v1900_v53 = vmul.f32 %v2682_v51, %v2682_v51  ;;  %v1998_v28 = vsel %vm1667_vm2, %v1901_v13, 0.0 }
 0x16e   : > { %v1798_v54 = vadd.f32 %v1797_v21, %v1796_v20  ;;  %v2545_v22 = vpop.f32.mrb[36].mxu1  ;;  %v1995_v56 = vadd.f32 %v1994_v52, %v1993_v12  ;;  %v2000_v25 = vsel %vm1667_vm2, %v1902_v23, 0.0 }
 0x16f   : > { %v1996_v14 = vsel %vm1667_vm2, %v1900_v53, 0.0  ;;  %v2615_v7 = vpop.f32.mrb[36].mxu0  ;;  %v1115_v57 = vpop.f32.mrb[37].mxu1 }
 0x170   : > { %v1800_v58 = vadd.f32 %v1799_v55, %v1798_v54  ;;  %v2683_v59 = vadd.f32 %v2615_v7, %v2545_v22  ;;  %v1492_v60 = vpop.f32.mrb[37].mxu0  ;;  %v2546_v15 = vpop.f32.mrb[38].mxu1  ;;  %v1997_v62 = vadd.f32 %v1996_v14, %v1995_v56 }
 0x171   : > { %v2684_v63 = vadd.f32 %v1492_v60, %v1115_v57  ;;  %v2616_v0 = vpop.f32.mrb[38].mxu0  ;;  %v1118_v1 = vpop.f32.mrb[39].mxu1 }
 0x172   : > { %1706 = vst.msk [vmem:[%s3203_s14 + $0x130] sm:$0xff] %vm1667_vm2, %v2683_v59  ;;  %v1802_v29 = vadd.f32 %v1801_v61, %v1800_v58  ;;  %v2685_v30 = vadd.f32 %v2616_v0, %v2546_v15  ;;  %v1495_v31 = vpop.f32.mrb[39].mxu0  ;;  %v1999_v32 = vadd.f32 %v1998_v28, %v1997_v62  ;;  %v1905_v34 = vmul.f32 %v2683_v59, %v2683_v59 }
 0x173   : > { %1704 = vst.msk [vmem:[%s3203_s14 + $0x120] sm:$0xff] %vm1667_vm2, %v2684_v63  ;;  %v1803_v24 = vsel %vm1667_vm2, %v2684_v63, 0.0  ;;  %v1903_v8 = vmul.f32 %v2684_v63, %v2684_v63  ;;  %v2686_v33 = vadd.f32 %v1495_v31, %v1118_v1  ;;  %v1807_v10 = vsel %vm1667_vm2, %v2683_v59, 0.0 }
 0x174   : > { %v1804_v2 = vadd.f32 %v1803_v24, %v1802_v29  ;;  %1707 = vst.msk [vmem:[%s3203_s14 + $0x138] sm:$0xff] %vm1667_vm2, %v2685_v30  ;;  %v2001_v9 = vadd.f32 %v2000_v25, %v1999_v32  ;;  %v1906_v38 = vmul.f32 %v2685_v30, %v2685_v30  ;;  %v1809_v41 = vsel %vm1667_vm2, %v2685_v30, 0.0 }
 0x175   : > { %v2002_v16 = vsel %vm1667_vm2, %v1903_v8, 0.0  ;;  %1705 = vst.msk [vmem:[%s3203_s14 + $0x128] sm:$0xff] %vm1667_vm2, %v2686_v33  ;;  %v1805_v26 = vsel %vm1667_vm2, %v2686_v33, 0.0  ;;  %v1904_v3 = vmul.f32 %v2686_v33, %v2686_v33  ;;  %v2006_v46 = vsel %vm1667_vm2, %v1905_v34, 0.0 }
 0x176   : > { %v1806_v17 = vadd.f32 %v1805_v26, %v1804_v2  ;;  %v2549_v35 = vpop.f32.mrb[40].mxu1  ;;  %v2003_v27 = vadd.f32 %v2002_v16, %v2001_v9  ;;  %v2008_v6 = vsel %vm1667_vm2, %v1906_v38, 0.0 }
 0x177   : > { %v2004_v36 = vsel %vm1667_vm2, %v1904_v3, 0.0  ;;  %v2619_v18 = vpop.f32.mrb[40].mxu0  ;;  %v1131_v37 = vpop.f32.mrb[41].mxu1 }
 0x178   : > { %v1808_v39 = vadd.f32 %v1807_v10, %v1806_v17  ;;  %v2687_v40 = vadd.f32 %v2619_v18, %v2549_v35  ;;  %v1508_v11 = vpop.f32.mrb[41].mxu0  ;;  %v2550_v19 = vpop.f32.mrb[42].mxu1  ;;  %v2005_v42 = vadd.f32 %v2004_v36, %v2003_v27 }
 0x179   : > { %v2688_v43 = vadd.f32 %v1508_v11, %v1131_v37  ;;  %v2620_v44 = vpop.f32.mrb[42].mxu0  ;;  %v1134_v45 = vpop.f32.mrb[43].mxu1 }
 0x17a   : > { %1710 = vst.msk [vmem:[%s3203_s14 + $0x150] sm:$0xff] %vm1667_vm2, %v2687_v40  ;;  %v1810_v4 = vadd.f32 %v1809_v41, %v1808_v39  ;;  %v2689_v47 = vadd.f32 %v2620_v44, %v2550_v19  ;;  %v1511_v48 = vpop.f32.mrb[43].mxu0  ;;  %v2007_v5 = vadd.f32 %v2006_v46, %v2005_v42  ;;  %v1909_v13 = vmul.f32 %v2687_v40, %v2687_v40 }
 0x17b   : > { %1708 = vst.msk [vmem:[%s3203_s14 + $0x140] sm:$0xff] %vm1667_vm2, %v2688_v43  ;;  %v1811_v49 = vsel %vm1667_vm2, %v2688_v43, 0.0  ;;  %v1907_v50 = vmul.f32 %v2688_v43, %v2688_v43  ;;  %v2690_v51 = vadd.f32 %v1511_v48, %v1134_v45  ;;  %v1815_v55 = vsel %vm1667_vm2, %v2687_v40, 0.0 }
 0x17c   : > { %v1812_v20 = vadd.f32 %v1811_v49, %v1810_v4  ;;  %1711 = vst.msk [vmem:[%s3203_s14 + $0x158] sm:$0xff] %vm1667_vm2, %v2689_v47  ;;  %v2009_v12 = vadd.f32 %v2008_v6, %v2007_v5  ;;  %v1910_v23 = vmul.f32 %v2689_v47, %v2689_v47  ;;  %v1817_v61 = vsel %vm1667_vm2, %v2689_v47, 0.0 }
 0x17d   : > { %v2010_v52 = vsel %vm1667_vm2, %v1907_v50, 0.0  ;;  %1709 = vst.msk [vmem:[%s3203_s14 + $0x148] sm:$0xff] %vm1667_vm2, %v2690_v51  ;;  %v1813_v21 = vsel %vm1667_vm2, %v2690_v51, 0.0  ;;  %v1908_v53 = vmul.f32 %v2690_v51, %v2690_v51  ;;  %v2014_v28 = vsel %vm1667_vm2, %v1909_v13, 0.0 }
 0x17e   : > { %v1814_v54 = vadd.f32 %v1813_v21, %v1812_v20  ;;  %v2553_v22 = vpop.f32.mrb[44].mxu1  ;;  %v2011_v56 = vadd.f32 %v2010_v52, %v2009_v12  ;;  %v2016_v25 = vsel %vm1667_vm2, %v1910_v23, 0.0 }
 0x17f   : > { %v2012_v14 = vsel %vm1667_vm2, %v1908_v53, 0.0  ;;  %v2623_v7 = vpop.f32.mrb[44].mxu0  ;;  %v1147_v57 = vpop.f32.mrb[45].mxu1 }
 0x180   : > { %v1816_v58 = vadd.f32 %v1815_v55, %v1814_v54  ;;  %v2691_v59 = vadd.f32 %v2623_v7, %v2553_v22  ;;  %v1524_v60 = vpop.f32.mrb[45].mxu0  ;;  %v2554_v15 = vpop.f32.mrb[46].mxu1  ;;  %v2013_v62 = vadd.f32 %v2012_v14, %v2011_v56 }
 0x181   : > { %v2692_v63 = vadd.f32 %v1524_v60, %v1147_v57  ;;  %v2624_v0 = vpop.f32.mrb[46].mxu0  ;;  %v1150_v1 = vpop.f32.mrb[47].mxu1 }
 0x182   : > { %1714 = vst.msk [vmem:[%s3203_s14 + $0x170] sm:$0xff] %vm1667_vm2, %v2691_v59  ;;  %v1818_v29 = vadd.f32 %v1817_v61, %v1816_v58  ;;  %v2693_v30 = vadd.f32 %v2624_v0, %v2554_v15  ;;  %v1527_v31 = vpop.f32.mrb[47].mxu0  ;;  %v2015_v32 = vadd.f32 %v2014_v28, %v2013_v62  ;;  %v1913_v34 = vmul.f32 %v2691_v59, %v2691_v59 }
 0x183   : > { %1712 = vst.msk [vmem:[%s3203_s14 + $0x160] sm:$0xff] %vm1667_vm2, %v2692_v63  ;;  %v1819_v24 = vsel %vm1667_vm2, %v2692_v63, 0.0  ;;  %v1911_v8 = vmul.f32 %v2692_v63, %v2692_v63  ;;  %v2694_v33 = vadd.f32 %v1527_v31, %v1150_v1  ;;  %v1823_v10 = vsel %vm1667_vm2, %v2691_v59, 0.0 }
 0x184   : > { %v1820_v2 = vadd.f32 %v1819_v24, %v1818_v29  ;;  %1715 = vst.msk [vmem:[%s3203_s14 + $0x178] sm:$0xff] %vm1667_vm2, %v2693_v30  ;;  %v2017_v9 = vadd.f32 %v2016_v25, %v2015_v32  ;;  %v1914_v38 = vmul.f32 %v2693_v30, %v2693_v30  ;;  %v1825_v41 = vsel %vm1667_vm2, %v2693_v30, 0.0 }
 0x185   : > { %v2018_v16 = vsel %vm1667_vm2, %v1911_v8, 0.0  ;;  %1713 = vst.msk [vmem:[%s3203_s14 + $0x168] sm:$0xff] %vm1667_vm2, %v2694_v33  ;;  %v1821_v26 = vsel %vm1667_vm2, %v2694_v33, 0.0  ;;  %v1912_v3 = vmul.f32 %v2694_v33, %v2694_v33  ;;  %v2022_v46 = vsel %vm1667_vm2, %v1913_v34, 0.0 }
 0x186   : > { %v1822_v17 = vadd.f32 %v1821_v26, %v1820_v2  ;;  %v2557_v35 = vpop.f32.mrb[48].mxu1  ;;  %v2019_v27 = vadd.f32 %v2018_v16, %v2017_v9  ;;  %v2024_v6 = vsel %vm1667_vm2, %v1914_v38, 0.0 }
 0x187   : > { %v2020_v36 = vsel %vm1667_vm2, %v1912_v3, 0.0  ;;  %v2627_v18 = vpop.f32.mrb[48].mxu0  ;;  %v1163_v37 = vpop.f32.mrb[49].mxu1 }
 0x188   : > { %v1824_v39 = vadd.f32 %v1823_v10, %v1822_v17  ;;  %v2695_v40 = vadd.f32 %v2627_v18, %v2557_v35  ;;  %v1540_v11 = vpop.f32.mrb[49].mxu0  ;;  %v2558_v19 = vpop.f32.mrb[50].mxu1  ;;  %v2021_v42 = vadd.f32 %v2020_v36, %v2019_v27 }
 0x189   : > { %v2696_v43 = vadd.f32 %v1540_v11, %v1163_v37  ;;  %v2628_v44 = vpop.f32.mrb[50].mxu0  ;;  %v1166_v45 = vpop.f32.mrb[51].mxu1 }
 0x18a   : > { %1718 = vst.msk [vmem:[%s3203_s14 + $0x190] sm:$0xff] %vm1667_vm2, %v2695_v40  ;;  %v1826_v4 = vadd.f32 %v1825_v41, %v1824_v39  ;;  %v2697_v47 = vadd.f32 %v2628_v44, %v2558_v19  ;;  %v1543_v48 = vpop.f32.mrb[51].mxu0  ;;  %v2023_v5 = vadd.f32 %v2022_v46, %v2021_v42  ;;  %v1917_v13 = vmul.f32 %v2695_v40, %v2695_v40 }
 0x18b   : > { %1716 = vst.msk [vmem:[%s3203_s14 + $0x180] sm:$0xff] %vm1667_vm2, %v2696_v43  ;;  %v1827_v49 = vsel %vm1667_vm2, %v2696_v43, 0.0  ;;  %v1915_v50 = vmul.f32 %v2696_v43, %v2696_v43  ;;  %v2698_v51 = vadd.f32 %v1543_v48, %v1166_v45  ;;  %v1831_v55 = vsel %vm1667_vm2, %v2695_v40, 0.0 }
 0x18c   : > { %v1828_v20 = vadd.f32 %v1827_v49, %v1826_v4  ;;  %1719 = vst.msk [vmem:[%s3203_s14 + $0x198] sm:$0xff] %vm1667_vm2, %v2697_v47  ;;  %v2025_v12 = vadd.f32 %v2024_v6, %v2023_v5  ;;  %v1918_v23 = vmul.f32 %v2697_v47, %v2697_v47  ;;  %v1833_v61 = vsel %vm1667_vm2, %v2697_v47, 0.0 }
 0x18d   : > { %v2026_v52 = vsel %vm1667_vm2, %v1915_v50, 0.0  ;;  %1717 = vst.msk [vmem:[%s3203_s14 + $0x188] sm:$0xff] %vm1667_vm2, %v2698_v51  ;;  %v1829_v21 = vsel %vm1667_vm2, %v2698_v51, 0.0  ;;  %v1916_v53 = vmul.f32 %v2698_v51, %v2698_v51  ;;  %v2030_v28 = vsel %vm1667_vm2, %v1917_v13, 0.0 }
 0x18e   : > { %v1830_v54 = vadd.f32 %v1829_v21, %v1828_v20  ;;  %v2561_v22 = vpop.f32.mrb[52].mxu1  ;;  %v2027_v56 = vadd.f32 %v2026_v52, %v2025_v12  ;;  %v2032_v25 = vsel %vm1667_vm2, %v1918_v23, 0.0 }
 0x18f   : > { %v2028_v14 = vsel %vm1667_vm2, %v1916_v53, 0.0  ;;  %v2631_v7 = vpop.f32.mrb[52].mxu0  ;;  %v1179_v57 = vpop.f32.mrb[53].mxu1 }
 0x190   : > { %v1832_v58 = vadd.f32 %v1831_v55, %v1830_v54  ;;  %v2699_v59 = vadd.f32 %v2631_v7, %v2561_v22  ;;  %v1556_v60 = vpop.f32.mrb[53].mxu0  ;;  %v2562_v15 = vpop.f32.mrb[54].mxu1  ;;  %v2029_v62 = vadd.f32 %v2028_v14, %v2027_v56 }
 0x191   : > { %v2700_v63 = vadd.f32 %v1556_v60, %v1179_v57  ;;  %v2632_v0 = vpop.f32.mrb[54].mxu0  ;;  %v1182_v1 = vpop.f32.mrb[55].mxu1 }
 0x192   : > { %1722 = vst.msk [vmem:[%s3203_s14 + $0x1b0] sm:$0xff] %vm1667_vm2, %v2699_v59  ;;  %v1834_v29 = vadd.f32 %v1833_v61, %v1832_v58  ;;  %v2701_v30 = vadd.f32 %v2632_v0, %v2562_v15  ;;  %v1559_v31 = vpop.f32.mrb[55].mxu0  ;;  %v2031_v32 = vadd.f32 %v2030_v28, %v2029_v62  ;;  %v1921_v34 = vmul.f32 %v2699_v59, %v2699_v59 }
 0x193   : > { %1720 = vst.msk [vmem:[%s3203_s14 + $0x1a0] sm:$0xff] %vm1667_vm2, %v2700_v63  ;;  %v1835_v24 = vsel %vm1667_vm2, %v2700_v63, 0.0  ;;  %v1919_v8 = vmul.f32 %v2700_v63, %v2700_v63  ;;  %v2702_v33 = vadd.f32 %v1559_v31, %v1182_v1  ;;  %v1839_v10 = vsel %vm1667_vm2, %v2699_v59, 0.0 }
 0x194   : > { %v1836_v2 = vadd.f32 %v1835_v24, %v1834_v29  ;;  %1723 = vst.msk [vmem:[%s3203_s14 + $0x1b8] sm:$0xff] %vm1667_vm2, %v2701_v30  ;;  %v2033_v9 = vadd.f32 %v2032_v25, %v2031_v32  ;;  %v1922_v38 = vmul.f32 %v2701_v30, %v2701_v30  ;;  %v1841_v41 = vsel %vm1667_vm2, %v2701_v30, 0.0 }
 0x195   : > { %v2034_v16 = vsel %vm1667_vm2, %v1919_v8, 0.0  ;;  %1721 = vst.msk [vmem:[%s3203_s14 + $0x1a8] sm:$0xff] %vm1667_vm2, %v2702_v33  ;;  %v1837_v26 = vsel %vm1667_vm2, %v2702_v33, 0.0  ;;  %v1920_v3 = vmul.f32 %v2702_v33, %v2702_v33  ;;  %v2038_v46 = vsel %vm1667_vm2, %v1921_v34, 0.0 }
 0x196   : > { %v1838_v17 = vadd.f32 %v1837_v26, %v1836_v2  ;;  %v2565_v35 = vpop.f32.mrb[56].mxu1  ;;  %v2035_v27 = vadd.f32 %v2034_v16, %v2033_v9  ;;  %v2040_v6 = vsel %vm1667_vm2, %v1922_v38, 0.0 }
 0x197   : > { %v2036_v36 = vsel %vm1667_vm2, %v1920_v3, 0.0  ;;  %v2635_v18 = vpop.f32.mrb[56].mxu0  ;;  %v1195_v37 = vpop.f32.mrb[57].mxu1 }
 0x198   : > { %v1840_v39 = vadd.f32 %v1839_v10, %v1838_v17  ;;  %v2703_v40 = vadd.f32 %v2635_v18, %v2565_v35  ;;  %v1572_v11 = vpop.f32.mrb[57].mxu0  ;;  %v2566_v19 = vpop.f32.mrb[58].mxu1  ;;  %v2037_v42 = vadd.f32 %v2036_v36, %v2035_v27 }
 0x199   : > { %v2704_v43 = vadd.f32 %v1572_v11, %v1195_v37  ;;  %v2636_v44 = vpop.f32.mrb[58].mxu0  ;;  %v1198_v45 = vpop.f32.mrb[59].mxu1 }
 0x19a   : > { %1726 = vst.msk [vmem:[%s3203_s14 + $0x1d0] sm:$0xff] %vm1667_vm2, %v2703_v40  ;;  %v1842_v4 = vadd.f32 %v1841_v41, %v1840_v39  ;;  %v2705_v47 = vadd.f32 %v2636_v44, %v2566_v19  ;;  %v1575_v48 = vpop.f32.mrb[59].mxu0  ;;  %v2039_v5 = vadd.f32 %v2038_v46, %v2037_v42  ;;  %v1925_v13 = vmul.f32 %v2703_v40, %v2703_v40 }
 0x19b   : > { %1724 = vst.msk [vmem:[%s3203_s14 + $0x1c0] sm:$0xff] %vm1667_vm2, %v2704_v43  ;;  %v1843_v49 = vsel %vm1667_vm2, %v2704_v43, 0.0  ;;  %v1923_v50 = vmul.f32 %v2704_v43, %v2704_v43  ;;  %v2706_v51 = vadd.f32 %v1575_v48, %v1198_v45  ;;  %v1847_v55 = vsel %vm1667_vm2, %v2703_v40, 0.0 }
 0x19c   : > { %v1844_v20 = vadd.f32 %v1843_v49, %v1842_v4  ;;  %1727 = vst.msk [vmem:[%s3203_s14 + $0x1d8] sm:$0xff] %vm1667_vm2, %v2705_v47  ;;  %v2041_v12 = vadd.f32 %v2040_v6, %v2039_v5  ;;  %v1926_v23 = vmul.f32 %v2705_v47, %v2705_v47  ;;  %v1849_v61 = vsel %vm1667_vm2, %v2705_v47, 0.0 }
 0x19d   : > { %v2042_v52 = vsel %vm1667_vm2, %v1923_v50, 0.0  ;;  %1725 = vst.msk [vmem:[%s3203_s14 + $0x1c8] sm:$0xff] %vm1667_vm2, %v2706_v51  ;;  %v1845_v21 = vsel %vm1667_vm2, %v2706_v51, 0.0  ;;  %v1924_v53 = vmul.f32 %v2706_v51, %v2706_v51  ;;  %v2046_v28 = vsel %vm1667_vm2, %v1925_v13, 0.0 }
 0x19e   : > { %v1846_v54 = vadd.f32 %v1845_v21, %v1844_v20  ;;  %v2569_v22 = vpop.f32.mrb[60].mxu1  ;;  %v2043_v56 = vadd.f32 %v2042_v52, %v2041_v12  ;;  %v2048_v25 = vsel %vm1667_vm2, %v1926_v23, 0.0 }
 0x19f   : > { %v2044_v14 = vsel %vm1667_vm2, %v1924_v53, 0.0  ;;  %v2639_v7 = vpop.f32.mrb[60].mxu0  ;;  %v1211_v57 = vpop.f32.mrb[61].mxu1 }
 0x1a0   : > { %v1848_v58 = vadd.f32 %v1847_v55, %v1846_v54  ;;  %v2707_v59 = vadd.f32 %v2639_v7, %v2569_v22  ;;  %v1588_v60 = vpop.f32.mrb[61].mxu0  ;;  %v2570_v15 = vpop.f32.mrb[62].mxu1  ;;  %v2045_v62 = vadd.f32 %v2044_v14, %v2043_v56 }
 0x1a1   : > { %v2708_v63 = vadd.f32 %v1588_v60, %v1211_v57  ;;  %v2640_v0 = vpop.f32.mrb[62].mxu0  ;;  %v1214_v1 = vpop.f32.mrb[63].mxu1 }
 0x1a2   : > { %1730 = vst.msk [vmem:[%s3203_s14 + $0x1f0] sm:$0xff] %vm1667_vm2, %v2707_v59  ;;  %v1850_v29 = vadd.f32 %v1849_v61, %v1848_v58  ;;  %v2709_v30 = vadd.f32 %v2640_v0, %v2570_v15  ;;  %v1591_v31 = vpop.f32.mrb[63].mxu0  ;;  %v2047_v32 = vadd.f32 %v2046_v28, %v2045_v62  ;;  %v1929_v34 = vmul.f32 %v2707_v59, %v2707_v59 }
 0x1a3   : > { %1728 = vst.msk [vmem:[%s3203_s14 + $0x1e0] sm:$0xff] %vm1667_vm2, %v2708_v63  ;;  %v1851_v24 = vsel %vm1667_vm2, %v2708_v63, 0.0  ;;  %v1927_v8 = vmul.f32 %v2708_v63, %v2708_v63  ;;  %v2710_v33 = vadd.f32 %v1591_v31, %v1214_v1  ;;  %v1855_v35 = vsel %vm1667_vm2, %v2707_v59, 0.0 }
 0x1a4   : > { %v1852_v2 = vadd.f32 %v1851_v24, %v1850_v29  ;;  %1731 = vst.msk [vmem:[%s3203_s14 + $0x1f8] sm:$0xff] %vm1667_vm2, %v2709_v30  ;;  %v2049_v9 = vadd.f32 %v2048_v25, %v2047_v32  ;;  %v1930_v36 = vmul.f32 %v2709_v30, %v2709_v30  ;;  %v1857_v37 = vsel %vm1667_vm2, %v2709_v30, 0.0 }
 0x1a5   : > { %v2050_v16 = vsel %vm1667_vm2, %v1927_v8, 0.0  ;;  %1729 = vst.msk [vmem:[%s3203_s14 + $0x1e8] sm:$0xff] %vm1667_vm2, %v2710_v33  ;;  %v1853_v26 = vsel %vm1667_vm2, %v2710_v33, 0.0  ;;  %v1928_v3 = vmul.f32 %v2710_v33, %v2710_v33  ;;  %v2054_v39 = vsel %vm1667_vm2, %v1929_v34, 0.0 }
 0x1a6   : > { %v1854_v17 = vadd.f32 %v1853_v26, %v1852_v2  ;;  %v2051_v10 = vadd.f32 %v2050_v16, %v2049_v9  ;;  %v2056_v19 = vsel %vm1667_vm2, %v1930_v36, 0.0 }
 0x1a7   : > { %v2052_v27 = vsel %vm1667_vm2, %v1928_v3, 0.0 }
 0x1a8   : > { %v1856_v18 = vadd.f32 %v1855_v35, %v1854_v17  ;;  %v2053_v38 = vadd.f32 %v2052_v27, %v2051_v10 }
 0x1aa   : > { %v1858_v40 = vadd.f32 %v1857_v37, %v1856_v18  ;;  %v2055_v11 = vadd.f32 %v2054_v39, %v2053_v38 }
 0x1ac   : > { %v1859_v41 = vrot.slane %v1858_v40, 4  ;;  %v2057_v42 = vadd.f32 %v2056_v19, %v2055_v11 }
 0x1ae   : > { %v1860_v43 = vadd.f32 %v1859_v41, %v1858_v40  ;;  %v2058_v44 = vrot.slane %v2057_v42, 4 }
 0x1b0   : > { %v1861_v45 = vrot.slane %v1860_v43, 2  ;;  %v2059_v46 = vadd.f32 %v2058_v44, %v2057_v42 }
 0x1b2   : > { %v1862_v4 = vadd.f32 %v1861_v45, %v1860_v43  ;;  %v2060_v47 = vrot.slane %v2059_v46, 2 }
 0x1b4   : > { %v1863_v48 = vrot.slane %v1862_v4, 1  ;;  %v2061_v5 = vadd.f32 %v2060_v47, %v2059_v46 }
 0x1b6   : > { %v1864_v49 = vadd.f32 %v1863_v48, %v1862_v4  ;;  %v2062_v50 = vrot.slane %v2061_v5, 1 }
 0x1b8   : > { %1866 = vst.msk [vmem:[%s181_s18] sm:$0x1] %vm1865_vm3, %v1864_v49  ;;  %v2063_v51 = vadd.f32 %v2062_v50, %v2061_v5 }
 0x1ba   : > { %2064 = vst.msk [vmem:[%s181_s18 + $0x1] sm:$0x1] %vm1865_vm3, %v2063_v51 }
 0x1bb PF: > { %s14_s12 = sadd.s32 1, %s2851_s12  }
 0x1bc   : > { %p11_p4 = scmp.ge.s32.totalorder %s14_s12, 4  }
 0x1be   :  { %13 = sbr.rel (!%p11_p4) target bundleno = 1 (0x1), region = 72 }

// kernel: down_forward.12
= control target key start
LH: loop header
LB: loop body
LE: loop exit
PB: predicated region body
PF: predicated region fallthrough
CT: control target
= control target key end

     0   :  { %s2777_s12 = smov 0   ;;  %s3310_s0 = inlined_call_operand.vmem [shape: bf16[2,10,64,36], index: 0, kind: input, shape index: {}]   ;;  %s3311_s1 = inlined_call_operand.vmem [shape: bf16[3,36,4], index: 1, kind: input, shape index: {}]   ;;  %s3312_s2 = inlined_call_operand.vmem [shape: f32[2,512,4], index: 2, kind: output, shape index: {0}]   ;;  %s3313_s3 = inlined_call_operand.vmem [shape: f32[2,2,4], index: 3, kind: output, shape index: {1}]  }
   0x1 LB: > { %s2071_s13 = sadd.s32 4294967295, %s2755_s12   ;;  %p2075_p0 = scmp.ge.s32.totalorder %s2755_s12, 1  ;;  %s2755_s12 = sphi %s2777_s12, %s14_s12  }
   0x2   : > { %p140_p1 = scmp.lt.s32.totalorder %s2755_s12, 3 }
   0x4   : > { %p141_p2 = pnand %p2075_p0, %p140_p1 }
   0x5   : > { %v2700_v0 = vld [vmem:[%s3311_s1 + $0x14] sm:$0xff] (!%p141_p2)   ;;  %v2701_v1 = vld [vmem:[%s3311_s1] sm:$0xff] (!%p141_p2)   ;;  %p168_p3 = scmp.lt.s32.totalorder (!%p141_p2), %s2071_s13, 1  ;;  %v2703_v3 = vld [vmem:[%s3311_s1 + $0x8] sm:$0xff] (!%p141_p2)   ;;  %vm546_vm0 = vcmask (!%p141_p2), 1041408   ;;  %vm449_vm1 = vcmask (!%p141_p2), 293888  }
   0x6   : > { %144 = sbr.rel (%p141_p2) target bundleno = 443 (0x1bb), region = 28  ;;  %2343 = vmatprep.subr.bf16.mxu1 (!%p141_p2), %v2700_v0  ;;  %v2702_v2 = vld [vmem:[%s3311_s1 + $0x1c] sm:$0xff] (!%p141_p2)   ;;  %2413 = vmatprep.subr.bf16.mxu0 (!%p141_p2), %v2701_v1  ;;  %v2704_v4 = vld [vmem:[%s3311_s1 + $0x24] ss:$0 sps:$4 sm:$0x33] (!%p141_p2)   ;;  %v2710_v6 = vld [vmem:[%s3311_s1 + $0x28] sm:$0xff] (!%p141_p2)  }
   0x7   : > { %2344 = vmatpush3.bf16.msra.mxu1 (!%p141_p2), %v2700_v0  ;;  %2414 = vmatpush3.bf16.msra.mxu0 (!%p141_p2), %v2701_v1  ;;  %v2705_v5 = vld [vmem:[%s3311_s1 + $0x10] ss:$0 sps:$4 sm:$0x33] (!%p141_p2)   ;;  %v548_v7 = vsel (!%p141_p2), %vm546_vm0, %v2704_v4, 0  ;;  %vm1587_vm2 = vcmask (!%p141_p2), 31744   ;;  %vm1785_vm3 = vcmask (!%p141_p2), 24576  }
   0x8   : > { %2345 = vmatprep.subr.bf16.mxu1 (!%p141_p2), %v2702_v2  ;;  %2415 = vmatprep.subr.bf16.mxu0 (!%p141_p2), %v2703_v3  ;;  %v887_v9 = vsel (!%p141_p2), %vm546_vm0, %v2705_v5, 0  ;;  %v2717_v13 = vld [vmem:[%s3311_s1 + $0x30] sm:$0xff] (!%p141_p2)   ;;  %v2724_v19 = vld [vmem:[%s3311_s1 + $0x38] ss:$0 sps:$4 sm:$0x33] (!%p141_p2)  }
   0x9   : > { %v1232_v21 = vsel (!%p141_p2), %vm546_vm0, %v2724_v19, 0 }
   0xb   : > { %2346 = vmatpush3.bf16.msra.mxu1 (!%p141_p2), %v2702_v2  ;;  %2416 = vmatpush3.bf16.msra.mxu0 (!%p141_p2), %v2703_v3 }
   0xc   : > { %2687 = vmatprep.subr.msk.bf16.mxu1 (!%p141_p2), %vm546_vm0, %v2704_v4  ;;  %2688 = vmatprep.subr.msk.bf16.mxu0 (!%p141_p2), %vm546_vm0, %v2705_v5 }
   0xd   : > { %s3315_s13 = smov (!%p168_p3, %s2071_s13), 1 }
   0xe   : > { %s2691_s26 = smul.u32 320, %s3315_s13  ;;  %s2237_s9 = sshll.u32 %s3315_s13, 9 }
   0xf   : > { %2348 = vmatpush3.bf16.msra.mxu1 %v548_v7  ;;  %2418 = vmatpush3.bf16.msra.mxu0 %v887_v9  ;;  %s3019_s14 = scalar_lea.vmem %s3312_s2, %s2237_s9  ;;  %s2079_s15 = sshll.u32 %s3315_s13, 1 }
  0x10   : > { %s2809_s29 = scalar_lea.vmem %s3310_s0, %s2691_s26  ;;  %2553 = vmatprep.subr.bf16.mxu1 %v2701_v1  ;;  %2483 = vmatprep.subr.bf16.mxu0 %v2710_v6  ;;  %s181_s18 = scalar_lea.vmem %s3313_s3, %s2079_s15 }
  0x11   : > { %v2706_v8 = vld [vmem:[%s2809_s29 + $0x20] sm:$0xff]   ;;  %v2708_v11 = vld [vmem:[%s2809_s29 + $0x28] sm:$0xff]   ;;  %v2711_v14 = vld [vmem:[%s2809_s29 + $0x30] sm:$0xff]  }
  0x12   : > { %v2707_v10 = vld [vmem:[%s2809_s29] sm:$0xff]   ;;  %2349 = vmatprep.mubr.msk.bf16.mxu1 %vm449_vm1, %v2706_v8  ;;  %v2709_v12 = vld [vmem:[%s2809_s29 + $0x8] sm:$0xff]   ;;  %v2712_v15 = vld [vmem:[%s2809_s29 + $0x10] sm:$0xff]  }
  0x13   : > { %2419 = vmatprep.mubr.msk.bf16.mxu0 %vm449_vm1, %v2707_v10  ;;  %2350 = vmatmul.mubr.msk.bf16.vlgmr.msra.gmra.mrb[0].mxu1 %vm449_vm1, %v2708_v11  ;;  %v2713_v16 = vld [vmem:[%s2809_s29 + $0x38] sm:$0xff]   ;;  %v2715_v18 = vld [vmem:[%s2809_s29 + $0x40] sm:$0xff]   ;;  %v2716_v20 = vld [vmem:[%s2809_s29 + $0x48] sm:$0xff]  }
  0x14   : > { %2420 = vmatmul.mubr.msk.bf16.vlgmr.msra.gmra.mrb[0].mxu0 %vm449_vm1, %v2709_v12  ;;  %2556 = vmatpush3.bf16.msra.mxu1 %v2701_v1  ;;  %v2714_v17 = vld [vmem:[%s2809_s29 + $0x18] sm:$0xff]   ;;  %v2718_v22 = vld [vmem:[%s2809_s29 + $0x50] sm:$0xff]   ;;  %v2720_v24 = vld [vmem:[%s2809_s29 + $0x60] sm:$0xff]  }
  0x15   : > { %2484 = vmatpush3.bf16.msra.mxu0 %v2710_v6  ;;  %2353 = vmatprep.mubr.msk.bf16.mxu1 %vm449_vm1, %v2711_v14  ;;  %v2719_v23 = vld [vmem:[%s2809_s29 + $0x58] sm:$0xff]   ;;  %v2721_v25 = vld [vmem:[%s2809_s29 + $0x68] sm:$0xff]   ;;  %v2722_v26 = vld [vmem:[%s2809_s29 + $0x70] sm:$0xff]  }
  0x16   : > { %2423 = vmatprep.mubr.msk.bf16.mxu0 %vm449_vm1, %v2712_v15  ;;  %2485 = vmatprep.subr.bf16.mxu0 %v2717_v13  ;;  %v2723_v27 = vld [vmem:[%s2809_s29 + $0x78] sm:$0xff]   ;;  %v2725_v28 = vld [vmem:[%s2809_s29 + $0x80] sm:$0xff]   ;;  %v2726_v29 = vld [vmem:[%s2809_s29 + $0x88] sm:$0xff]  }
  0x17   : > { %2554 = vmatprep.subr.bf16.mxu1 %v2703_v3  ;;  %v2727_v30 = vld [vmem:[%s2809_s29 + $0x90] sm:$0xff]   ;;  %v2728_v31 = vld [vmem:[%s2809_s29 + $0x98] sm:$0xff]   ;;  %v2729_v32 = vld [vmem:[%s2809_s29 + $0xa0] sm:$0xff]  }
  0x18   : > { %2557 = vmatpush3.bf16.msra.mxu1 %v2703_v3  ;;  %v2730_v33 = vld [vmem:[%s2809_s29 + $0xa8] sm:$0xff]   ;;  %v2731_v34 = vld [vmem:[%s2809_s29 + $0xb0] sm:$0xff]   ;;  %v2732_v35 = vld [vmem:[%s2809_s29 + $0xb8] sm:$0xff]  }
  0x19   : > { %2486 = vmatpush3.bf16.msra.mxu0 %v2717_v13  ;;  %2689 = vmatprep.subr.msk.bf16.mxu1 %vm546_vm0, %v2705_v5  ;;  %v2733_v36 = vld [vmem:[%s2809_s29 + $0xc0] sm:$0xff]   ;;  %v2734_v37 = vld [vmem:[%s2809_s29 + $0xc8] sm:$0xff]   ;;  %v2735_v38 = vld [vmem:[%s2809_s29 + $0xd0] sm:$0xff]  }
  0x1a   : > { %2690 = vmatprep.subr.msk.bf16.mxu0 %vm546_vm0, %v2724_v19  ;;  %v2736_v39 = vld [vmem:[%s2809_s29 + $0xd8] sm:$0xff]   ;;  %v2737_v40 = vld [vmem:[%s2809_s29 + $0xe0] sm:$0xff]   ;;  %v2738_v41 = vld [vmem:[%s2809_s29 + $0xe8] sm:$0xff]  }
  0x1b   : > { %2354 = vmatmul.mubr.msk.bf16.gmra.mrb[4].mxu1 %vm449_vm1, %v2713_v16  ;;  %v2739_v42 = vld [vmem:[%s2809_s29 + $0xf0] sm:$0xff]   ;;  %v2740_v43 = vld [vmem:[%s2809_s29 + $0xf8] sm:$0xff]   ;;  %v2741_v44 = vld [vmem:[%s2809_s29 + $0x100] sm:$0xff]  }
  0x1c   : > { %2424 = vmatmul.mubr.msk.bf16.gmra.mrb[4].mxu0 %vm449_vm1, %v2714_v17  ;;  %2357 = vmatprep.mubr.msk.bf16.mxu1 %vm449_vm1, %v2715_v18  ;;  %v2742_v45 = vld [vmem:[%s2809_s29 + $0x108] sm:$0xff]   ;;  %v2743_v46 = vld [vmem:[%s2809_s29 + $0x110] sm:$0xff]   ;;  %v2744_v47 = vld [vmem:[%s2809_s29 + $0x118] sm:$0xff]  }
  0x1d   : > { %2427 = vmatprep.mubr.msk.bf16.mxu0 %vm449_vm1, %v2706_v8  ;;  %2558 = vmatpush3.bf16.msra.mxu1 %v887_v9  ;;  %v2745_v48 = vld [vmem:[%s2809_s29 + $0x120] sm:$0xff]   ;;  %v2746_v49 = vld [vmem:[%s2809_s29 + $0x128] sm:$0xff]   ;;  %v2747_v50 = vld [vmem:[%s2809_s29 + $0x130] sm:$0xff]  }
  0x1e   : > { %2488 = vmatpush3.bf16.msra.mxu0 %v1232_v21  ;;  %v2748_v51 = vld [vmem:[%s2809_s29 + $0x138] sm:$0xff]  }
  0x23   : > { %2358 = vmatmul.mubr.msk.bf16.gmra.mrb[8].mxu1 %vm449_vm1, %v2716_v20 }
  0x24   : > { %2428 = vmatmul.mubr.msk.bf16.gmra.mrb[8].mxu0 %vm449_vm1, %v2708_v11  ;;  %2361 = vmatprep.mubr.msk.bf16.mxu1 %vm449_vm1, %v2718_v22 }
  0x25   : > { %2431 = vmatprep.mubr.msk.bf16.mxu0 %vm449_vm1, %v2711_v14 }
  0x2b   : > { %2362 = vmatmul.mubr.msk.bf16.gmra.mrb[12].mxu1 %vm449_vm1, %v2719_v23 }
  0x2c   : > { %2432 = vmatmul.mubr.msk.bf16.gmra.mrb[12].mxu0 %vm449_vm1, %v2713_v16  ;;  %2365 = vmatprep.mubr.msk.bf16.mxu1 %vm449_vm1, %v2720_v24 }
  0x2d   : > { %2435 = vmatprep.mubr.msk.bf16.mxu0 %vm449_vm1, %v2715_v18 }
  0x33   : > { %2366 = vmatmul.mubr.msk.bf16.gmra.mrb[16].mxu1 %vm449_vm1, %v2721_v25 }
  0x34   : > { %2436 = vmatmul.mubr.msk.bf16.gmra.mrb[16].mxu0 %vm449_vm1, %v2716_v20  ;;  %2369 = vmatprep.mubr.msk.bf16.mxu1 %vm449_vm1, %v2722_v26 }
  0x35   : > { %2439 = vmatprep.mubr.msk.bf16.mxu0 %vm449_vm1, %v2718_v22 }
  0x3b   : > { %2370 = vmatmul.mubr.msk.bf16.gmra.mrb[20].mxu1 %vm449_vm1, %v2723_v27 }
  0x3c   : > { %2440 = vmatmul.mubr.msk.bf16.gmra.mrb[20].mxu0 %vm449_vm1, %v2719_v23  ;;  %2373 = vmatprep.mubr.msk.bf16.mxu1 %vm449_vm1, %v2725_v28 }
  0x3d   : > { %2443 = vmatprep.mubr.msk.bf16.mxu0 %vm449_vm1, %v2720_v24 }
  0x43   : > { %2374 = vmatmul.mubr.msk.bf16.gmra.mrb[24].mxu1 %vm449_vm1, %v2726_v29 }
  0x44   : > { %2444 = vmatmul.mubr.msk.bf16.gmra.mrb[24].mxu0 %vm449_vm1, %v2721_v25  ;;  %2377 = vmatprep.mubr.msk.bf16.mxu1 %vm449_vm1, %v2727_v30 }
  0x45   : > { %2447 = vmatprep.mubr.msk.bf16.mxu0 %vm449_vm1, %v2722_v26 }
  0x4b   : > { %2378 = vmatmul.mubr.msk.bf16.gmra.mrb[28].mxu1 %vm449_vm1, %v2728_v31 }
  0x4c   : > { %2448 = vmatmul.mubr.msk.bf16.gmra.mrb[28].mxu0 %vm449_vm1, %v2723_v27  ;;  %2381 = vmatprep.mubr.msk.bf16.mxu1 %vm449_vm1, %v2729_v32 }
  0x4d   : > { %2489 = vmatprep.mubr.msk.bf16.mxu0 %vm449_vm1, %v2715_v18 }
  0x53   : > { %2382 = vmatmul.mubr.msk.bf16.gmra.mrb[32].mxu1 %vm449_vm1, %v2730_v33 }
  0x54   : > { %2490 = vmatmul.mubr.msk.bf16.vlgmr.msra.gmra.mrb[0].mxu0 %vm449_vm1, %v2716_v20  ;;  %2385 = vmatprep.mubr.msk.bf16.mxu1 %vm449_vm1, %v2731_v34 }
  0x55   : > { %2493 = vmatprep.mubr.msk.bf16.mxu0 %vm449_vm1, %v2718_v22 }
  0x5b   : > { %2386 = vmatmul.mubr.msk.bf16.gmra.mrb[36].mxu1 %vm449_vm1, %v2732_v35 }
  0x5c   : > { %2494 = vmatmul.mubr.msk.bf16.gmra.mrb[4].mxu0 %vm449_vm1, %v2719_v23  ;;  %2389 = vmatprep.mubr.msk.bf16.mxu1 %vm449_vm1, %v2733_v36 }
  0x5d   : > { %2497 = vmatprep.mubr.msk.bf16.mxu0 %vm449_vm1, %v2720_v24 }
  0x63   : > { %2390 = vmatmul.mubr.msk.bf16.gmra.mrb[40].mxu1 %vm449_vm1, %v2734_v37 }
  0x64   : > { %2498 = vmatmul.mubr.msk.bf16.gmra.mrb[8].mxu0 %vm449_vm1, %v2721_v25  ;;  %2393 = vmatprep.mubr.msk.bf16.mxu1 %vm449_vm1, %v2735_v38 }
  0x65   : > { %2501 = vmatprep.mubr.msk.bf16.mxu0 %vm449_vm1, %v2722_v26 }
  0x6b   : > { %2394 = vmatmul.mubr.msk.bf16.gmra.mrb[44].mxu1 %vm449_vm1, %v2736_v39 }
  0x6c   : > { %2502 = vmatmul.mubr.msk.bf16.gmra.mrb[12].mxu0 %vm449_vm1, %v2723_v27  ;;  %2397 = vmatprep.mubr.msk.bf16.mxu1 %vm449_vm1, %v2737_v40 }
  0x6d   : > { %2505 = vmatprep.mubr.msk.bf16.mxu0 %vm449_vm1, %v2725_v28 }
  0x73   : > { %2398 = vmatmul.mubr.msk.bf16.gmra.mrb[48].mxu1 %vm449_vm1, %v2738_v41 }
  0x74   : > { %2506 = vmatmul.mubr.msk.bf16.gmra.mrb[16].mxu0 %vm449_vm1, %v2726_v29  ;;  %2401 = vmatprep.mubr.msk.bf16.mxu1 %vm449_vm1, %v2739_v42 }
  0x75   : > { %2509 = vmatprep.mubr.msk.bf16.mxu0 %vm449_vm1, %v2727_v30 }
  0x7b   : > { %2402 = vmatmul.mubr.msk.bf16.gmra.mrb[52].mxu1 %vm449_vm1, %v2740_v43 }
  0x7c   : > { %2510 = vmatmul.mubr.msk.bf16.gmra.mrb[20].mxu0 %vm449_vm1, %v2728_v31  ;;  %2405 = vmatprep.mubr.msk.bf16.mxu1 %vm449_vm1, %v2741_v44 }
  0x7d   : > { %2513 = vmatprep.mubr.msk.bf16.mxu0 %vm449_vm1, %v2729_v32 }
  0x83   : > { %2406 = vmatmul.mubr.msk.bf16.gmra.mrb[56].mxu1 %vm449_vm1, %v2742_v45 }
  0x84   : > { %2514 = vmatmul.mubr.msk.bf16.gmra.mrb[24].mxu0 %vm449_vm1, %v2730_v33  ;;  %2409 = vmatprep.mubr.msk.bf16.mxu1 %vm449_vm1, %v2743_v46 }
  0x85   : > { %2517 = vmatprep.mubr.msk.bf16.mxu0 %vm449_vm1, %v2731_v34 }
  0x8b   : > { %2410 = vmatmul.mubr.msk.bf16.gmra.mrb[60].mxu1 %vm449_vm1, %v2744_v47 }
  0x8c   : > { %2518 = vmatmul.mubr.msk.bf16.gmra.mrb[28].mxu0 %vm449_vm1, %v2732_v35  ;;  %2451 = vmatprep.mubr.msk.bf16.mxu1 %vm449_vm1, %v2725_v28 }
  0x8d   : > { %2521 = vmatprep.mubr.msk.bf16.mxu0 %vm449_vm1, %v2733_v36 }
  0x93   : > { %2452 = vmatmul.mubr.msk.bf16.vlgmr.msra.gmra.mrb[32].mxu1 %vm449_vm1, %v2726_v29 }
  0x94   : > { %2522 = vmatmul.mubr.msk.bf16.gmra.mrb[32].mxu0 %vm449_vm1, %v2734_v37  ;;  %2455 = vmatprep.mubr.msk.bf16.mxu1 %vm449_vm1, %v2727_v30 }
  0x95   : > { %2525 = vmatprep.mubr.msk.bf16.mxu0 %vm449_vm1, %v2735_v38 }
  0x9b   : > { %2456 = vmatmul.mubr.msk.bf16.gmra.mrb[36].mxu1 %vm449_vm1, %v2728_v31 }
  0x9c   : > { %2526 = vmatmul.mubr.msk.bf16.gmra.mrb[36].mxu0 %vm449_vm1, %v2736_v39  ;;  %2459 = vmatprep.mubr.msk.bf16.mxu1 %vm449_vm1, %v2729_v32 }
  0x9d   : > { %2529 = vmatprep.mubr.msk.bf16.mxu0 %vm449_vm1, %v2737_v40 }
  0xa3   : > { %2460 = vmatmul.mubr.msk.bf16.gmra.mrb[40].mxu1 %vm449_vm1, %v2730_v33 }
  0xa4   : > { %2530 = vmatmul.mubr.msk.bf16.gmra.mrb[40].mxu0 %vm449_vm1, %v2738_v41  ;;  %2463 = vmatprep.mubr.msk.bf16.mxu1 %vm449_vm1, %v2731_v34 }
  0xa5   : > { %2533 = vmatprep.mubr.msk.bf16.mxu0 %vm449_vm1, %v2739_v42 }
  0xab   : > { %2464 = vmatmul.mubr.msk.bf16.gmra.mrb[44].mxu1 %vm449_vm1, %v2732_v35 }
  0xac   : > { %2534 = vmatmul.mubr.msk.bf16.gmra.mrb[44].mxu0 %vm449_vm1, %v2740_v43  ;;  %2467 = vmatprep.mubr.msk.bf16.mxu1 %vm449_vm1, %v2733_v36 }
  0xad   : > { %2537 = vmatprep.mubr.msk.bf16.mxu0 %vm449_vm1, %v2741_v44 }
  0xb3   : > { %2468 = vmatmul.mubr.msk.bf16.gmra.mrb[48].mxu1 %vm449_vm1, %v2734_v37 }
  0xb4   : > { %2538 = vmatmul.mubr.msk.bf16.gmra.mrb[48].mxu0 %vm449_vm1, %v2742_v45  ;;  %2471 = vmatprep.mubr.msk.bf16.mxu1 %vm449_vm1, %v2735_v38 }
  0xb5   : > { %2541 = vmatprep.mubr.msk.bf16.mxu0 %vm449_vm1, %v2743_v46 }
  0xbb   : > { %2472 = vmatmul.mubr.msk.bf16.gmra.mrb[52].mxu1 %vm449_vm1, %v2736_v39 }
  0xbc   : > { %2542 = vmatmul.mubr.msk.bf16.gmra.mrb[52].mxu0 %vm449_vm1, %v2744_v47  ;;  %2475 = vmatprep.mubr.msk.bf16.mxu1 %vm449_vm1, %v2737_v40 }
  0xbd   : > { %2545 = vmatprep.mubr.msk.bf16.mxu0 %vm449_vm1, %v2745_v48 }
  0xc3   : > { %2476 = vmatmul.mubr.msk.bf16.gmra.mrb[56].mxu1 %vm449_vm1, %v2738_v41 }
  0xc4   : > { %2546 = vmatmul.mubr.msk.bf16.gmra.mrb[56].mxu0 %vm449_vm1, %v2746_v49  ;;  %2479 = vmatprep.mubr.msk.bf16.mxu1 %vm449_vm1, %v2739_v42 }
  0xc5   : > { %2549 = vmatprep.mubr.msk.bf16.mxu0 %vm449_vm1, %v2747_v50 }
  0xcb   : > { %2480 = vmatmul.mubr.msk.bf16.gmra.mrb[60].mxu1 %vm449_vm1, %v2740_v43 }
  0xcc   : > { %2550 = vmatmul.mubr.msk.bf16.gmra.mrb[60].mxu0 %vm449_vm1, %v2748_v51 }
  0xe6   : > { %v2351_v52 = vpop.f32.mrb[0].mxu1 }
  0xe7   : > { %v584_v53 = vpop.f32.mrb[1].mxu1 }
  0xe8   : > { %v2352_v54 = vpop.f32.mrb[2].mxu1 }
  0xe9   : > { %v587_v55 = vpop.f32.mrb[3].mxu1 }
  0xee   : > { %v2355_v56 = vpop.f32.mrb[4].mxu1 }
  0xef   : > { %v600_v57 = vpop.f32.mrb[5].mxu1 }
  0xf0   : > { %v2963_v58 = vpop.f32.mrb[6].mxu1 }
  0xf1   : > { %v2965_v59 = vpop.f32.mrb[7].mxu1 }
  0xf6   : > { %v2967_v60 = vpop.f32.mrb[8].mxu1 }
  0xf7   : > { %v2969_v61 = vpop.f32.mrb[9].mxu1 }
  0xf8   : > { %v2971_v62 = vpop.f32.mrb[10].mxu1 }
  0xf9   : > { %v2973_v63 = vpop.f32.mrb[11].mxu1 }
  0xfe   : > { %v2975_v0 = vpop.f32.mrb[12].mxu1 }
  0xff   : > { %v2977_v1 = vpop.f32.mrb[13].mxu1 }
 0x100   : > { %v2979_v2 = vpop.f32.mrb[14].mxu1 }
 0x101   : > { %v2981_v3 = vpop.f32.mrb[15].mxu1 }
 0x106   : > { %v2983_v4 = vpop.f32.mrb[16].mxu1 }
 0x107   : > { %v2985_v5 = vpop.f32.mrb[17].mxu1 }
 0x108   : > { %v2987_v6 = vpop.f32.mrb[18].mxu1 }
 0x109   : > { %v2989_v7 = vpop.f32.mrb[19].mxu1 }
 0x10e   : > { %v2991_v8 = vpop.f32.mrb[20].mxu1 }
 0x10f   : > { %v2993_v9 = vpop.f32.mrb[21].mxu1 }
 0x110   : > { %v2995_v10 = vpop.f32.mrb[22].mxu1 }
 0x111   : > { %v2997_v11 = vpop.f32.mrb[23].mxu1 }
 0x116   : > { %v2999_v12 = vpop.f32.mrb[24].mxu1 }
 0x117   : > { %v3001_v13 = vpop.f32.mrb[25].mxu1 }
 0x118   : > { %v3003_v14 = vpop.f32.mrb[26].mxu1 }
 0x119   : > { %v3005_v15 = vpop.f32.mrb[27].mxu1 }
 0x11e   : > { %v3007_v16 = vpop.f32.mrb[28].mxu1 }
 0x11f   : > { %v3009_v17 = vpop.f32.mrb[29].mxu1 }
 0x120   : > { %v3011_v18 = vpop.f32.mrb[30].mxu1 }
 0x121   : > { %v3013_v19 = vpop.f32.mrb[31].mxu1 }
 0x127   : > { %v2491_v20 = vpop.f32.mrb[0].mxu0 }
 0x128   : > { %v2559_v21 = vadd.f32 %v2491_v20, %v2351_v52  ;;  %v1268_v22 = vpop.f32.mrb[1].mxu0 }
 0x129   : > { %v2560_v23 = vadd.f32 %v1268_v22, %v584_v53  ;;  %v2492_v24 = vpop.f32.mrb[2].mxu0 }
 0x12a   : > { %1590 = vst.msk [vmem:[%s3019_s14 + $0x10] sm:$0xff] %vm1587_vm2, %v2559_v21  ;;  %v2561_v25 = vadd.f32 %v2492_v24, %v2352_v54  ;;  %v1271_v26 = vpop.f32.mrb[3].mxu0  ;;  %v1789_v29 = vmul.f32 %v2559_v21, %v2559_v21  ;;  %v1655_v35 = vsel %vm1587_vm2, %v2559_v21, 0.0 }
 0x12b   : > { %1588 = vst.msk [vmem:[%s3019_s14] sm:$0xff] %vm1587_vm2, %v2560_v23  ;;  %v1787_v27 = vmul.f32 %v2560_v23, %v2560_v23  ;;  %v2562_v28 = vadd.f32 %v1271_v26, %v587_v55  ;;  %v1652_v30 = vsel %vm1587_vm2, %v2560_v23, 0.0 }
 0x12c   : > { %1591 = vst.msk [vmem:[%s3019_s14 + $0x18] sm:$0xff] %vm1587_vm2, %v2561_v25  ;;  %v1790_v33 = vmul.f32 %v2561_v25, %v2561_v25  ;;  %v1854_v43 = vsel %vm1587_vm2, %v1789_v29, 0.0  ;;  %v1657_v44 = vsel %vm1587_vm2, %v2561_v25, 0.0 }
 0x12d   : > { %1589 = vst.msk [vmem:[%s3019_s14 + $0x8] sm:$0xff] %vm1587_vm2, %v2562_v28  ;;  %v1653_v31 = vsel %vm1587_vm2, %v2562_v28, 0.0  ;;  %v1788_v32 = vmul.f32 %v2562_v28, %v2562_v28  ;;  %v1851_v36 = vsel %vm1587_vm2, %v1787_v27, 0.0 }
 0x12e   : > { %v1654_v34 = vadd.f32 %v1653_v31, %v1652_v30  ;;  %v1856_v47 = vsel %vm1587_vm2, %v1790_v33, 0.0 }
 0x12f   : > { %v1852_v37 = vsel %vm1587_vm2, %v1788_v32, 0.0  ;;  %v2495_v38 = vpop.f32.mrb[4].mxu0 }
 0x130   : > { %v1656_v39 = vadd.f32 %v1655_v35, %v1654_v34  ;;  %v1853_v40 = vadd.f32 %v1852_v37, %v1851_v36  ;;  %v2563_v41 = vadd.f32 %v2495_v38, %v2355_v56  ;;  %v1284_v42 = vpop.f32.mrb[5].mxu0 }
 0x131   : > { %v2564_v45 = vadd.f32 %v1284_v42, %v600_v57  ;;  %v2496_v46 = vpop.f32.mrb[6].mxu0 }
 0x132   : > { %v1855_v48 = vadd.f32 %v1854_v43, %v1853_v40  ;;  %1594 = vst.msk [vmem:[%s3019_s14 + $0x30] sm:$0xff] %vm1587_vm2, %v2563_v41  ;;  %v1658_v49 = vadd.f32 %v1657_v44, %v1656_v39  ;;  %v1287_v50 = vpop.f32.mrb[7].mxu0  ;;  %v2565_v53 = vadd.f32 %v2496_v46, %v2963_v58  ;;  %v1793_v21 = vmul.f32 %v2563_v41, %v2563_v41 }
 0x133   : > { %1592 = vst.msk [vmem:[%s3019_s14 + $0x20] sm:$0xff] %vm1587_vm2, %v2564_v45  ;;  %v1659_v51 = vsel %vm1587_vm2, %v2564_v45, 0.0  ;;  %v1791_v52 = vmul.f32 %v2564_v45, %v2564_v45  ;;  %v2566_v54 = vadd.f32 %v1287_v50, %v2965_v59  ;;  %v1663_v25 = vsel %vm1587_vm2, %v2563_v41, 0.0 }
 0x134   : > { %v1660_v55 = vadd.f32 %v1659_v51, %v1658_v49  ;;  %v1857_v56 = vadd.f32 %v1856_v47, %v1855_v48  ;;  %1595 = vst.msk [vmem:[%s3019_s14 + $0x38] sm:$0xff] %vm1587_vm2, %v2565_v53  ;;  %v1794_v59 = vmul.f32 %v2565_v53, %v2565_v53  ;;  %v1665_v30 = vsel %vm1587_vm2, %v2565_v53, 0.0 }
 0x135   : > { %v1858_v57 = vsel %vm1587_vm2, %v1791_v52, 0.0  ;;  %1593 = vst.msk [vmem:[%s3019_s14 + $0x28] sm:$0xff] %vm1587_vm2, %v2566_v54  ;;  %v1661_v20 = vsel %vm1587_vm2, %v2566_v54, 0.0  ;;  %v1792_v24 = vmul.f32 %v2566_v54, %v2566_v54  ;;  %v1862_v34 = vsel %vm1587_vm2, %v1793_v21, 0.0 }
 0x136   : > { %v1859_v22 = vadd.f32 %v1858_v57, %v1857_v56  ;;  %v1662_v23 = vadd.f32 %v1661_v20, %v1660_v55 }
 0x137   : > { %v2499_v58 = vpop.f32.mrb[8].mxu0  ;;  %v1860_v27 = vsel %vm1587_vm2, %v1792_v24, 0.0 }
 0x138   : > { %v1664_v26 = vadd.f32 %v1663_v25, %v1662_v23  ;;  %v2567_v28 = vadd.f32 %v2499_v58, %v2967_v60  ;;  %v1300_v29 = vpop.f32.mrb[9].mxu0  ;;  %v1861_v31 = vadd.f32 %v1860_v27, %v1859_v22 }
 0x139   : > { %v2568_v32 = vadd.f32 %v1300_v29, %v2969_v61  ;;  %v2500_v33 = vpop.f32.mrb[10].mxu0  ;;  %v1864_v61 = vsel %vm1587_vm2, %v1794_v59, 0.0 }
 0x13a   : > { %1598 = vst.msk [vmem:[%s3019_s14 + $0x50] sm:$0xff] %vm1587_vm2, %v2567_v28  ;;  %v1666_v35 = vadd.f32 %v1665_v30, %v1664_v26  ;;  %v2569_v36 = vadd.f32 %v2500_v33, %v2971_v62  ;;  %v1303_v37 = vpop.f32.mrb[11].mxu0  ;;  %v1863_v38 = vadd.f32 %v1862_v34, %v1861_v31  ;;  %v1797_v45 = vmul.f32 %v2567_v28, %v2567_v28 }
 0x13b   : > { %1596 = vst.msk [vmem:[%s3019_s14 + $0x40] sm:$0xff] %vm1587_vm2, %v2568_v32  ;;  %v1667_v60 = vsel %vm1587_vm2, %v2568_v32, 0.0  ;;  %v1795_v39 = vmul.f32 %v2568_v32, %v2568_v32  ;;  %v2570_v40 = vadd.f32 %v1303_v37, %v2973_v63  ;;  %v1671_v47 = vsel %vm1587_vm2, %v2567_v28, 0.0 }
 0x13c   : > { %v1668_v41 = vadd.f32 %v1667_v60, %v1666_v35  ;;  %1599 = vst.msk [vmem:[%s3019_s14 + $0x58] sm:$0xff] %vm1587_vm2, %v2569_v36  ;;  %v1865_v42 = vadd.f32 %v1864_v61, %v1863_v38  ;;  %v1798_v50 = vmul.f32 %v2569_v36, %v2569_v36  ;;  %v1673_v54 = vsel %vm1587_vm2, %v2569_v36, 0.0 }
 0x13d   : > { %v1866_v43 = vsel %vm1587_vm2, %v1795_v39, 0.0  ;;  %1597 = vst.msk [vmem:[%s3019_s14 + $0x48] sm:$0xff] %vm1587_vm2, %v2570_v40  ;;  %v1669_v62 = vsel %vm1587_vm2, %v2570_v40, 0.0  ;;  %v1796_v44 = vmul.f32 %v2570_v40, %v2570_v40  ;;  %v1870_v20 = vsel %vm1587_vm2, %v1797_v45, 0.0 }
 0x13e   : > { %v1670_v46 = vadd.f32 %v1669_v62, %v1668_v41  ;;  %v1867_v48 = vadd.f32 %v1866_v43, %v1865_v42 }
 0x13f   : > { %v1868_v63 = vsel %vm1587_vm2, %v1796_v44, 0.0  ;;  %v2503_v49 = vpop.f32.mrb[12].mxu0 }
 0x140   : > { %v1672_v51 = vadd.f32 %v1671_v47, %v1670_v46  ;;  %v2571_v52 = vadd.f32 %v2503_v49, %v2975_v0  ;;  %v1316_v53 = vpop.f32.mrb[13].mxu0  ;;  %v1869_v55 = vadd.f32 %v1868_v63, %v1867_v48 }
 0x141   : > { %v2572_v56 = vadd.f32 %v1316_v53, %v2977_v1  ;;  %v2504_v57 = vpop.f32.mrb[14].mxu0  ;;  %v1872_v1 = vsel %vm1587_vm2, %v1798_v50, 0.0 }
 0x142   : > { %1602 = vst.msk [vmem:[%s3019_s14 + $0x70] sm:$0xff] %vm1587_vm2, %v2571_v52  ;;  %v1674_v21 = vadd.f32 %v1673_v54, %v1672_v51  ;;  %v2573_v22 = vadd.f32 %v2504_v57, %v2979_v2  ;;  %v1319_v23 = vpop.f32.mrb[15].mxu0  ;;  %v1871_v24 = vadd.f32 %v1870_v20, %v1869_v55  ;;  %v1801_v29 = vmul.f32 %v2571_v52, %v2571_v52 }
 0x143   : > { %1600 = vst.msk [vmem:[%s3019_s14 + $0x60] sm:$0xff] %vm1587_vm2, %v2572_v56  ;;  %v1675_v0 = vsel %vm1587_vm2, %v2572_v56, 0.0  ;;  %v1799_v25 = vmul.f32 %v2572_v56, %v2572_v56  ;;  %v2574_v58 = vadd.f32 %v1319_v23, %v2981_v3  ;;  %v1679_v31 = vsel %vm1587_vm2, %v2571_v52, 0.0 }
 0x144   : > { %v1676_v59 = vadd.f32 %v1675_v0, %v1674_v21  ;;  %1603 = vst.msk [vmem:[%s3019_s14 + $0x78] sm:$0xff] %vm1587_vm2, %v2573_v22  ;;  %v1873_v26 = vadd.f32 %v1872_v1, %v1871_v24  ;;  %v1802_v34 = vmul.f32 %v2573_v22, %v2573_v22  ;;  %v1681_v38 = vsel %vm1587_vm2, %v2573_v22, 0.0 }
 0x145   : > { %v1874_v27 = vsel %vm1587_vm2, %v1799_v25, 0.0  ;;  %1601 = vst.msk [vmem:[%s3019_s14 + $0x68] sm:$0xff] %vm1587_vm2, %v2574_v58  ;;  %v1677_v2 = vsel %vm1587_vm2, %v2574_v58, 0.0  ;;  %v1800_v28 = vmul.f32 %v2574_v58, %v2574_v58  ;;  %v1878_v61 = vsel %vm1587_vm2, %v1801_v29, 0.0 }
 0x146   : > { %v1678_v30 = vadd.f32 %v1677_v2, %v1676_v59  ;;  %v1875_v32 = vadd.f32 %v1874_v27, %v1873_v26 }
 0x147   : > { %v1876_v3 = vsel %vm1587_vm2, %v1800_v28, 0.0  ;;  %v2507_v33 = vpop.f32.mrb[16].mxu0 }
 0x148   : > { %v1680_v35 = vadd.f32 %v1679_v31, %v1678_v30  ;;  %v2575_v36 = vadd.f32 %v2507_v33, %v2983_v4  ;;  %v1332_v37 = vpop.f32.mrb[17].mxu0  ;;  %v1877_v60 = vadd.f32 %v1876_v3, %v1875_v32 }
 0x149   : > { %v2576_v39 = vadd.f32 %v1332_v37, %v2985_v5  ;;  %v2508_v40 = vpop.f32.mrb[18].mxu0  ;;  %v1880_v5 = vsel %vm1587_vm2, %v1802_v34, 0.0 }
 0x14a   : > { %1606 = vst.msk [vmem:[%s3019_s14 + $0x90] sm:$0xff] %vm1587_vm2, %v2575_v36  ;;  %v1682_v41 = vadd.f32 %v1681_v38, %v1680_v35  ;;  %v2577_v42 = vadd.f32 %v2508_v40, %v2987_v6  ;;  %v1335_v43 = vpop.f32.mrb[19].mxu0  ;;  %v1879_v62 = vadd.f32 %v1878_v61, %v1877_v60  ;;  %v1805_v49 = vmul.f32 %v2575_v36, %v2575_v36 }
 0x14b   : > { %1604 = vst.msk [vmem:[%s3019_s14 + $0x80] sm:$0xff] %vm1587_vm2, %v2576_v39  ;;  %v1683_v4 = vsel %vm1587_vm2, %v2576_v39, 0.0  ;;  %v1803_v44 = vmul.f32 %v2576_v39, %v2576_v39  ;;  %v2578_v45 = vadd.f32 %v1335_v43, %v2989_v7  ;;  %v1687_v51 = vsel %vm1587_vm2, %v2575_v36, 0.0 }
 0x14c   : > { %v1684_v46 = vadd.f32 %v1683_v4, %v1682_v41  ;;  %1607 = vst.msk [vmem:[%s3019_s14 + $0x98] sm:$0xff] %vm1587_vm2, %v2577_v42  ;;  %v1881_v47 = vadd.f32 %v1880_v5, %v1879_v62  ;;  %v1806_v54 = vmul.f32 %v2577_v42, %v2577_v42  ;;  %v1689_v20 = vsel %vm1587_vm2, %v2577_v42, 0.0 }
 0x14d   : > { %v1882_v48 = vsel %vm1587_vm2, %v1803_v44, 0.0  ;;  %1605 = vst.msk [vmem:[%s3019_s14 + $0x88] sm:$0xff] %vm1587_vm2, %v2578_v45  ;;  %v1685_v6 = vsel %vm1587_vm2, %v2578_v45, 0.0  ;;  %v1804_v63 = vmul.f32 %v2578_v45, %v2578_v45  ;;  %v1886_v24 = vsel %vm1587_vm2, %v1805_v49, 0.0 }
 0x14e   : > { %v1686_v50 = vadd.f32 %v1685_v6, %v1684_v46  ;;  %v1883_v52 = vadd.f32 %v1882_v48, %v1881_v47 }
 0x14f   : > { %v1884_v7 = vsel %vm1587_vm2, %v1804_v63, 0.0  ;;  %v2511_v53 = vpop.f32.mrb[20].mxu0 }
 0x150   : > { %v1688_v55 = vadd.f32 %v1687_v51, %v1686_v50  ;;  %v2579_v56 = vadd.f32 %v2511_v53, %v2991_v8  ;;  %v1348_v57 = vpop.f32.mrb[21].mxu0  ;;  %v1885_v21 = vadd.f32 %v1884_v7, %v1883_v52 }
 0x151   : > { %v2580_v22 = vadd.f32 %v1348_v57, %v2993_v9  ;;  %v2512_v23 = vpop.f32.mrb[22].mxu0  ;;  %v1888_v9 = vsel %vm1587_vm2, %v1806_v54, 0.0 }
 0x152   : > { %1610 = vst.msk [vmem:[%s3019_s14 + $0xb0] sm:$0xff] %vm1587_vm2, %v2579_v56  ;;  %v1690_v0 = vadd.f32 %v1689_v20, %v1688_v55  ;;  %v2581_v25 = vadd.f32 %v2512_v23, %v2995_v10  ;;  %v1351_v58 = vpop.f32.mrb[23].mxu0  ;;  %v1887_v1 = vadd.f32 %v1886_v24, %v1885_v21  ;;  %v1809_v30 = vmul.f32 %v2579_v56, %v2579_v56 }
 0x153   : > { %1608 = vst.msk [vmem:[%s3019_s14 + $0xa0] sm:$0xff] %vm1587_vm2, %v2580_v22  ;;  %v1691_v8 = vsel %vm1587_vm2, %v2580_v22, 0.0  ;;  %v1807_v59 = vmul.f32 %v2580_v22, %v2580_v22  ;;  %v2582_v26 = vadd.f32 %v1351_v58, %v2997_v11  ;;  %v1695_v32 = vsel %vm1587_vm2, %v2579_v56, 0.0 }
 0x154   : > { %v1692_v27 = vadd.f32 %v1691_v8, %v1690_v0  ;;  %1611 = vst.msk [vmem:[%s3019_s14 + $0xb8] sm:$0xff] %vm1587_vm2, %v2581_v25  ;;  %v1889_v2 = vadd.f32 %v1888_v9, %v1887_v1  ;;  %v1810_v34 = vmul.f32 %v2581_v25, %v2581_v25  ;;  %v1697_v38 = vsel %vm1587_vm2, %v2581_v25, 0.0 }
 0x155   : > { %v1890_v28 = vsel %vm1587_vm2, %v1807_v59, 0.0  ;;  %1609 = vst.msk [vmem:[%s3019_s14 + $0xa8] sm:$0xff] %vm1587_vm2, %v2582_v26  ;;  %v1693_v10 = vsel %vm1587_vm2, %v2582_v26, 0.0  ;;  %v1808_v29 = vmul.f32 %v2582_v26, %v2582_v26  ;;  %v1894_v61 = vsel %vm1587_vm2, %v1809_v30, 0.0 }
 0x156   : > { %v1694_v31 = vadd.f32 %v1693_v10, %v1692_v27  ;;  %v1891_v3 = vadd.f32 %v1890_v28, %v1889_v2 }
 0x157   : > { %v1892_v11 = vsel %vm1587_vm2, %v1808_v29, 0.0  ;;  %v2515_v33 = vpop.f32.mrb[24].mxu0 }
 0x158   : > { %v1696_v35 = vadd.f32 %v1695_v32, %v1694_v31  ;;  %v2583_v36 = vadd.f32 %v2515_v33, %v2999_v12  ;;  %v1364_v37 = vpop.f32.mrb[25].mxu0  ;;  %v1893_v60 = vadd.f32 %v1892_v11, %v1891_v3 }
 0x159   : > { %v2584_v39 = vadd.f32 %v1364_v37, %v3001_v13  ;;  %v2516_v40 = vpop.f32.mrb[26].mxu0  ;;  %v1896_v13 = vsel %vm1587_vm2, %v1810_v34, 0.0 }
 0x15a   : > { %1614 = vst.msk [vmem:[%s3019_s14 + $0xd0] sm:$0xff] %vm1587_vm2, %v2583_v36  ;;  %v1698_v41 = vadd.f32 %v1697_v38, %v1696_v35  ;;  %v2585_v42 = vadd.f32 %v2516_v40, %v3003_v14  ;;  %v1367_v43 = vpop.f32.mrb[27].mxu0  ;;  %v1895_v62 = vadd.f32 %v1894_v61, %v1893_v60  ;;  %v1813_v48 = vmul.f32 %v2583_v36, %v2583_v36 }
 0x15b   : > { %1612 = vst.msk [vmem:[%s3019_s14 + $0xc0] sm:$0xff] %vm1587_vm2, %v2584_v39  ;;  %v1699_v12 = vsel %vm1587_vm2, %v2584_v39, 0.0  ;;  %v1811_v4 = vmul.f32 %v2584_v39, %v2584_v39  ;;  %v2586_v44 = vadd.f32 %v1367_v43, %v3005_v15  ;;  %v1703_v63 = vsel %vm1587_vm2, %v2583_v36, 0.0 }
 0x15c   : > { %v1700_v45 = vadd.f32 %v1699_v12, %v1698_v41  ;;  %1615 = vst.msk [vmem:[%s3019_s14 + $0xd8] sm:$0xff] %vm1587_vm2, %v2585_v42  ;;  %v1897_v5 = vadd.f32 %v1896_v13, %v1895_v62  ;;  %v1814_v51 = vmul.f32 %v2585_v42, %v2585_v42  ;;  %v1705_v54 = vsel %vm1587_vm2, %v2585_v42, 0.0 }
 0x15d   : > { %v1898_v46 = vsel %vm1587_vm2, %v1811_v4, 0.0  ;;  %1613 = vst.msk [vmem:[%s3019_s14 + $0xc8] sm:$0xff] %vm1587_vm2, %v2586_v44  ;;  %v1701_v14 = vsel %vm1587_vm2, %v2586_v44, 0.0  ;;  %v1812_v47 = vmul.f32 %v2586_v44, %v2586_v44  ;;  %v1902_v20 = vsel %vm1587_vm2, %v1813_v48, 0.0 }
 0x15e   : > { %v1702_v6 = vadd.f32 %v1701_v14, %v1700_v45  ;;  %v1899_v49 = vadd.f32 %v1898_v46, %v1897_v5 }
 0x15f   : > { %v1900_v15 = vsel %vm1587_vm2, %v1812_v47, 0.0  ;;  %v2519_v50 = vpop.f32.mrb[28].mxu0 }
 0x160   : > { %v1704_v52 = vadd.f32 %v1703_v63, %v1702_v6  ;;  %v2587_v7 = vadd.f32 %v2519_v50, %v3007_v16  ;;  %v1380_v53 = vpop.f32.mrb[29].mxu0  ;;  %v1901_v55 = vadd.f32 %v1900_v15, %v1899_v49 }
 0x161   : > { %v2588_v56 = vadd.f32 %v1380_v53, %v3009_v17  ;;  %v2520_v57 = vpop.f32.mrb[30].mxu0  ;;  %v1904_v17 = vsel %vm1587_vm2, %v1814_v51, 0.0 }
 0x162   : > { %1618 = vst.msk [vmem:[%s3019_s14 + $0xf0] sm:$0xff] %vm1587_vm2, %v2587_v7  ;;  %v1706_v21 = vadd.f32 %v1705_v54, %v1704_v52  ;;  %v2589_v22 = vadd.f32 %v2520_v57, %v3011_v18  ;;  %v1383_v23 = vpop.f32.mrb[31].mxu0  ;;  %v1903_v24 = vadd.f32 %v1902_v20, %v1901_v55  ;;  %v1817_v26 = vmul.f32 %v2587_v7, %v2587_v7 }
 0x163   : > { %1616 = vst.msk [vmem:[%s3019_s14 + $0xe0] sm:$0xff] %vm1587_vm2, %v2588_v56  ;;  %v1707_v16 = vsel %vm1587_vm2, %v2588_v56, 0.0  ;;  %v1815_v0 = vmul.f32 %v2588_v56, %v2588_v56  ;;  %v2590_v25 = vadd.f32 %v1383_v23, %v3013_v19  ;;  %v1711_v2 = vsel %vm1587_vm2, %v2587_v7, 0.0 }
 0x164   : > { %v1708_v58 = vadd.f32 %v1707_v16, %v1706_v21  ;;  %1619 = vst.msk [vmem:[%s3019_s14 + $0xf8] sm:$0xff] %vm1587_vm2, %v2589_v22  ;;  %v1905_v1 = vadd.f32 %v1904_v17, %v1903_v24  ;;  %v1818_v30 = vmul.f32 %v2589_v22, %v2589_v22  ;;  %v1713_v33 = vsel %vm1587_vm2, %v2589_v22, 0.0 }
 0x165   : > { %v1906_v8 = vsel %vm1587_vm2, %v1815_v0, 0.0  ;;  %1617 = vst.msk [vmem:[%s3019_s14 + $0xe8] sm:$0xff] %vm1587_vm2, %v2590_v25  ;;  %v1709_v18 = vsel %vm1587_vm2, %v2590_v25, 0.0  ;;  %v1816_v59 = vmul.f32 %v2590_v25, %v2590_v25  ;;  %v1910_v38 = vsel %vm1587_vm2, %v1817_v26, 0.0 }
 0x166   : > { %v1710_v9 = vadd.f32 %v1709_v18, %v1708_v58  ;;  %v2453_v27 = vpop.f32.mrb[32].mxu1  ;;  %v1907_v19 = vadd.f32 %v1906_v8, %v1905_v1  ;;  %v1912_v62 = vsel %vm1587_vm2, %v1818_v30, 0.0 }
 0x167   : > { %v1908_v28 = vsel %vm1587_vm2, %v1816_v59, 0.0  ;;  %v2523_v10 = vpop.f32.mrb[32].mxu0  ;;  %v1051_v29 = vpop.f32.mrb[33].mxu1 }
 0x168   : > { %v1712_v31 = vadd.f32 %v1711_v2, %v1710_v9  ;;  %v2591_v32 = vadd.f32 %v2523_v10, %v2453_v27  ;;  %v1396_v3 = vpop.f32.mrb[33].mxu0  ;;  %v2454_v11 = vpop.f32.mrb[34].mxu1  ;;  %v1909_v34 = vadd.f32 %v1908_v28, %v1907_v19 }
 0x169   : > { %v2592_v35 = vadd.f32 %v1396_v3, %v1051_v29  ;;  %v2524_v36 = vpop.f32.mrb[34].mxu0  ;;  %v1054_v37 = vpop.f32.mrb[35].mxu1 }
 0x16a   : > { %1622 = vst.msk [vmem:[%s3019_s14 + $0x110] sm:$0xff] %vm1587_vm2, %v2591_v32  ;;  %v1714_v60 = vadd.f32 %v1713_v33, %v1712_v31  ;;  %v2593_v39 = vadd.f32 %v2524_v36, %v2454_v11  ;;  %v1399_v40 = vpop.f32.mrb[35].mxu0  ;;  %v1911_v61 = vadd.f32 %v1910_v38, %v1909_v34  ;;  %v1821_v5 = vmul.f32 %v2591_v32, %v2591_v32 }
 0x16b   : > { %1620 = vst.msk [vmem:[%s3019_s14 + $0x100] sm:$0xff] %vm1587_vm2, %v2592_v35  ;;  %v1715_v41 = vsel %vm1587_vm2, %v2592_v35, 0.0  ;;  %v1819_v42 = vmul.f32 %v2592_v35, %v2592_v35  ;;  %v2594_v43 = vadd.f32 %v1399_v40, %v1054_v37  ;;  %v1719_v47 = vsel %vm1587_vm2, %v2591_v32, 0.0 }
 0x16c   : > { %v1716_v12 = vadd.f32 %v1715_v41, %v1714_v60  ;;  %1623 = vst.msk [vmem:[%s3019_s14 + $0x118] sm:$0xff] %vm1587_vm2, %v2593_v39  ;;  %v1913_v4 = vadd.f32 %v1912_v62, %v1911_v61  ;;  %v1822_v15 = vmul.f32 %v2593_v39, %v2593_v39  ;;  %v1721_v53 = vsel %vm1587_vm2, %v2593_v39, 0.0 }
 0x16d   : > { %v1914_v44 = vsel %vm1587_vm2, %v1819_v42, 0.0  ;;  %1621 = vst.msk [vmem:[%s3019_s14 + $0x108] sm:$0xff] %vm1587_vm2, %v2594_v43  ;;  %v1717_v13 = vsel %vm1587_vm2, %v2594_v43, 0.0  ;;  %v1820_v45 = vmul.f32 %v2594_v43, %v2594_v43  ;;  %v1918_v20 = vsel %vm1587_vm2, %v1821_v5, 0.0 }
 0x16e   : > { %v1718_v46 = vadd.f32 %v1717_v13, %v1716_v12  ;;  %v2457_v14 = vpop.f32.mrb[36].mxu1  ;;  %v1915_v48 = vadd.f32 %v1914_v44, %v1913_v4  ;;  %v1920_v17 = vsel %vm1587_vm2, %v1822_v15, 0.0 }
 0x16f   : > { %v1916_v6 = vsel %vm1587_vm2, %v1820_v45, 0.0  ;;  %v2527_v63 = vpop.f32.mrb[36].mxu0  ;;  %v1067_v49 = vpop.f32.mrb[37].mxu1 }
 0x170   : > { %v1720_v50 = vadd.f32 %v1719_v47, %v1718_v46  ;;  %v2595_v51 = vadd.f32 %v2527_v63, %v2457_v14  ;;  %v1412_v52 = vpop.f32.mrb[37].mxu0  ;;  %v2458_v7 = vpop.f32.mrb[38].mxu1  ;;  %v1917_v54 = vadd.f32 %v1916_v6, %v1915_v48 }
 0x171   : > { %v2596_v55 = vadd.f32 %v1412_v52, %v1067_v49  ;;  %v2528_v56 = vpop.f32.mrb[38].mxu0  ;;  %v1070_v57 = vpop.f32.mrb[39].mxu1 }
 0x172   : > { %1626 = vst.msk [vmem:[%s3019_s14 + $0x130] sm:$0xff] %vm1587_vm2, %v2595_v51  ;;  %v1722_v21 = vadd.f32 %v1721_v53, %v1720_v50  ;;  %v2597_v22 = vadd.f32 %v2528_v56, %v2458_v7  ;;  %v1415_v23 = vpop.f32.mrb[39].mxu0  ;;  %v1919_v24 = vadd.f32 %v1918_v20, %v1917_v54  ;;  %v1825_v26 = vmul.f32 %v2595_v51, %v2595_v51 }
 0x173   : > { %1624 = vst.msk [vmem:[%s3019_s14 + $0x120] sm:$0xff] %vm1587_vm2, %v2596_v55  ;;  %v1723_v16 = vsel %vm1587_vm2, %v2596_v55, 0.0  ;;  %v1823_v0 = vmul.f32 %v2596_v55, %v2596_v55  ;;  %v2598_v25 = vadd.f32 %v1415_v23, %v1070_v57  ;;  %v1727_v2 = vsel %vm1587_vm2, %v2595_v51, 0.0 }
 0x174   : > { %v1724_v58 = vadd.f32 %v1723_v16, %v1722_v21  ;;  %1627 = vst.msk [vmem:[%s3019_s14 + $0x138] sm:$0xff] %vm1587_vm2, %v2597_v22  ;;  %v1921_v1 = vadd.f32 %v1920_v17, %v1919_v24  ;;  %v1826_v30 = vmul.f32 %v2597_v22, %v2597_v22  ;;  %v1729_v33 = vsel %vm1587_vm2, %v2597_v22, 0.0 }
 0x175   : > { %v1922_v8 = vsel %vm1587_vm2, %v1823_v0, 0.0  ;;  %1625 = vst.msk [vmem:[%s3019_s14 + $0x128] sm:$0xff] %vm1587_vm2, %v2598_v25  ;;  %v1725_v18 = vsel %vm1587_vm2, %v2598_v25, 0.0  ;;  %v1824_v59 = vmul.f32 %v2598_v25, %v2598_v25  ;;  %v1926_v38 = vsel %vm1587_vm2, %v1825_v26, 0.0 }
 0x176   : > { %v1726_v9 = vadd.f32 %v1725_v18, %v1724_v58  ;;  %v2461_v27 = vpop.f32.mrb[40].mxu1  ;;  %v1923_v19 = vadd.f32 %v1922_v8, %v1921_v1  ;;  %v1928_v62 = vsel %vm1587_vm2, %v1826_v30, 0.0 }
 0x177   : > { %v1924_v28 = vsel %vm1587_vm2, %v1824_v59, 0.0  ;;  %v2531_v10 = vpop.f32.mrb[40].mxu0  ;;  %v1083_v29 = vpop.f32.mrb[41].mxu1 }
 0x178   : > { %v1728_v31 = vadd.f32 %v1727_v2, %v1726_v9  ;;  %v2599_v32 = vadd.f32 %v2531_v10, %v2461_v27  ;;  %v1428_v3 = vpop.f32.mrb[41].mxu0  ;;  %v2462_v11 = vpop.f32.mrb[42].mxu1  ;;  %v1925_v34 = vadd.f32 %v1924_v28, %v1923_v19 }
 0x179   : > { %v2600_v35 = vadd.f32 %v1428_v3, %v1083_v29  ;;  %v2532_v36 = vpop.f32.mrb[42].mxu0  ;;  %v1086_v37 = vpop.f32.mrb[43].mxu1 }
 0x17a   : > { %1630 = vst.msk [vmem:[%s3019_s14 + $0x150] sm:$0xff] %vm1587_vm2, %v2599_v32  ;;  %v1730_v60 = vadd.f32 %v1729_v33, %v1728_v31  ;;  %v2601_v39 = vadd.f32 %v2532_v36, %v2462_v11  ;;  %v1431_v40 = vpop.f32.mrb[43].mxu0  ;;  %v1927_v61 = vadd.f32 %v1926_v38, %v1925_v34  ;;  %v1829_v5 = vmul.f32 %v2599_v32, %v2599_v32 }
 0x17b   : > { %1628 = vst.msk [vmem:[%s3019_s14 + $0x140] sm:$0xff] %vm1587_vm2, %v2600_v35  ;;  %v1731_v41 = vsel %vm1587_vm2, %v2600_v35, 0.0  ;;  %v1827_v42 = vmul.f32 %v2600_v35, %v2600_v35  ;;  %v2602_v43 = vadd.f32 %v1431_v40, %v1086_v37  ;;  %v1735_v47 = vsel %vm1587_vm2, %v2599_v32, 0.0 }
 0x17c   : > { %v1732_v12 = vadd.f32 %v1731_v41, %v1730_v60  ;;  %1631 = vst.msk [vmem:[%s3019_s14 + $0x158] sm:$0xff] %vm1587_vm2, %v2601_v39  ;;  %v1929_v4 = vadd.f32 %v1928_v62, %v1927_v61  ;;  %v1830_v15 = vmul.f32 %v2601_v39, %v2601_v39  ;;  %v1737_v53 = vsel %vm1587_vm2, %v2601_v39, 0.0 }
 0x17d   : > { %v1930_v44 = vsel %vm1587_vm2, %v1827_v42, 0.0  ;;  %1629 = vst.msk [vmem:[%s3019_s14 + $0x148] sm:$0xff] %vm1587_vm2, %v2602_v43  ;;  %v1733_v13 = vsel %vm1587_vm2, %v2602_v43, 0.0  ;;  %v1828_v45 = vmul.f32 %v2602_v43, %v2602_v43  ;;  %v1934_v20 = vsel %vm1587_vm2, %v1829_v5, 0.0 }
 0x17e   : > { %v1734_v46 = vadd.f32 %v1733_v13, %v1732_v12  ;;  %v2465_v14 = vpop.f32.mrb[44].mxu1  ;;  %v1931_v48 = vadd.f32 %v1930_v44, %v1929_v4  ;;  %v1936_v17 = vsel %vm1587_vm2, %v1830_v15, 0.0 }
 0x17f   : > { %v1932_v6 = vsel %vm1587_vm2, %v1828_v45, 0.0  ;;  %v2535_v63 = vpop.f32.mrb[44].mxu0  ;;  %v1099_v49 = vpop.f32.mrb[45].mxu1 }
 0x180   : > { %v1736_v50 = vadd.f32 %v1735_v47, %v1734_v46  ;;  %v2603_v51 = vadd.f32 %v2535_v63, %v2465_v14  ;;  %v1444_v52 = vpop.f32.mrb[45].mxu0  ;;  %v2466_v7 = vpop.f32.mrb[46].mxu1  ;;  %v1933_v54 = vadd.f32 %v1932_v6, %v1931_v48 }
 0x181   : > { %v2604_v55 = vadd.f32 %v1444_v52, %v1099_v49  ;;  %v2536_v56 = vpop.f32.mrb[46].mxu0  ;;  %v1102_v57 = vpop.f32.mrb[47].mxu1 }
 0x182   : > { %1634 = vst.msk [vmem:[%s3019_s14 + $0x170] sm:$0xff] %vm1587_vm2, %v2603_v51  ;;  %v1738_v21 = vadd.f32 %v1737_v53, %v1736_v50  ;;  %v2605_v22 = vadd.f32 %v2536_v56, %v2466_v7  ;;  %v1447_v23 = vpop.f32.mrb[47].mxu0  ;;  %v1935_v24 = vadd.f32 %v1934_v20, %v1933_v54  ;;  %v1833_v26 = vmul.f32 %v2603_v51, %v2603_v51 }
 0x183   : > { %1632 = vst.msk [vmem:[%s3019_s14 + $0x160] sm:$0xff] %vm1587_vm2, %v2604_v55  ;;  %v1739_v16 = vsel %vm1587_vm2, %v2604_v55, 0.0  ;;  %v1831_v0 = vmul.f32 %v2604_v55, %v2604_v55  ;;  %v2606_v25 = vadd.f32 %v1447_v23, %v1102_v57  ;;  %v1743_v2 = vsel %vm1587_vm2, %v2603_v51, 0.0 }
 0x184   : > { %v1740_v58 = vadd.f32 %v1739_v16, %v1738_v21  ;;  %1635 = vst.msk [vmem:[%s3019_s14 + $0x178] sm:$0xff] %vm1587_vm2, %v2605_v22  ;;  %v1937_v1 = vadd.f32 %v1936_v17, %v1935_v24  ;;  %v1834_v30 = vmul.f32 %v2605_v22, %v2605_v22  ;;  %v1745_v33 = vsel %vm1587_vm2, %v2605_v22, 0.0 }
 0x185   : > { %v1938_v8 = vsel %vm1587_vm2, %v1831_v0, 0.0  ;;  %1633 = vst.msk [vmem:[%s3019_s14 + $0x168] sm:$0xff] %vm1587_vm2, %v2606_v25  ;;  %v1741_v18 = vsel %vm1587_vm2, %v2606_v25, 0.0  ;;  %v1832_v59 = vmul.f32 %v2606_v25, %v2606_v25  ;;  %v1942_v38 = vsel %vm1587_vm2, %v1833_v26, 0.0 }
 0x186   : > { %v1742_v9 = vadd.f32 %v1741_v18, %v1740_v58  ;;  %v2469_v27 = vpop.f32.mrb[48].mxu1  ;;  %v1939_v19 = vadd.f32 %v1938_v8, %v1937_v1  ;;  %v1944_v62 = vsel %vm1587_vm2, %v1834_v30, 0.0 }
 0x187   : > { %v1940_v28 = vsel %vm1587_vm2, %v1832_v59, 0.0  ;;  %v2539_v10 = vpop.f32.mrb[48].mxu0  ;;  %v1115_v29 = vpop.f32.mrb[49].mxu1 }
 0x188   : > { %v1744_v31 = vadd.f32 %v1743_v2, %v1742_v9  ;;  %v2607_v32 = vadd.f32 %v2539_v10, %v2469_v27  ;;  %v1460_v3 = vpop.f32.mrb[49].mxu0  ;;  %v2470_v11 = vpop.f32.mrb[50].mxu1  ;;  %v1941_v34 = vadd.f32 %v1940_v28, %v1939_v19 }
 0x189   : > { %v2608_v35 = vadd.f32 %v1460_v3, %v1115_v29  ;;  %v2540_v36 = vpop.f32.mrb[50].mxu0  ;;  %v1118_v37 = vpop.f32.mrb[51].mxu1 }
 0x18a   : > { %1638 = vst.msk [vmem:[%s3019_s14 + $0x190] sm:$0xff] %vm1587_vm2, %v2607_v32  ;;  %v1746_v60 = vadd.f32 %v1745_v33, %v1744_v31  ;;  %v2609_v39 = vadd.f32 %v2540_v36, %v2470_v11  ;;  %v1463_v40 = vpop.f32.mrb[51].mxu0  ;;  %v1943_v61 = vadd.f32 %v1942_v38, %v1941_v34  ;;  %v1837_v5 = vmul.f32 %v2607_v32, %v2607_v32 }
 0x18b   : > { %1636 = vst.msk [vmem:[%s3019_s14 + $0x180] sm:$0xff] %vm1587_vm2, %v2608_v35  ;;  %v1747_v41 = vsel %vm1587_vm2, %v2608_v35, 0.0  ;;  %v1835_v42 = vmul.f32 %v2608_v35, %v2608_v35  ;;  %v2610_v43 = vadd.f32 %v1463_v40, %v1118_v37  ;;  %v1751_v47 = vsel %vm1587_vm2, %v2607_v32, 0.0 }
 0x18c   : > { %v1748_v12 = vadd.f32 %v1747_v41, %v1746_v60  ;;  %1639 = vst.msk [vmem:[%s3019_s14 + $0x198] sm:$0xff] %vm1587_vm2, %v2609_v39  ;;  %v1945_v4 = vadd.f32 %v1944_v62, %v1943_v61  ;;  %v1838_v15 = vmul.f32 %v2609_v39, %v2609_v39  ;;  %v1753_v53 = vsel %vm1587_vm2, %v2609_v39, 0.0 }
 0x18d   : > { %v1946_v44 = vsel %vm1587_vm2, %v1835_v42, 0.0  ;;  %1637 = vst.msk [vmem:[%s3019_s14 + $0x188] sm:$0xff] %vm1587_vm2, %v2610_v43  ;;  %v1749_v13 = vsel %vm1587_vm2, %v2610_v43, 0.0  ;;  %v1836_v45 = vmul.f32 %v2610_v43, %v2610_v43  ;;  %v1950_v20 = vsel %vm1587_vm2, %v1837_v5, 0.0 }
 0x18e   : > { %v1750_v46 = vadd.f32 %v1749_v13, %v1748_v12  ;;  %v2473_v14 = vpop.f32.mrb[52].mxu1  ;;  %v1947_v48 = vadd.f32 %v1946_v44, %v1945_v4  ;;  %v1952_v17 = vsel %vm1587_vm2, %v1838_v15, 0.0 }
 0x18f   : > { %v1948_v6 = vsel %vm1587_vm2, %v1836_v45, 0.0  ;;  %v2543_v63 = vpop.f32.mrb[52].mxu0  ;;  %v1131_v49 = vpop.f32.mrb[53].mxu1 }
 0x190   : > { %v1752_v50 = vadd.f32 %v1751_v47, %v1750_v46  ;;  %v2611_v51 = vadd.f32 %v2543_v63, %v2473_v14  ;;  %v1476_v52 = vpop.f32.mrb[53].mxu0  ;;  %v2474_v7 = vpop.f32.mrb[54].mxu1  ;;  %v1949_v54 = vadd.f32 %v1948_v6, %v1947_v48 }
 0x191   : > { %v2612_v55 = vadd.f32 %v1476_v52, %v1131_v49  ;;  %v2544_v56 = vpop.f32.mrb[54].mxu0  ;;  %v1134_v57 = vpop.f32.mrb[55].mxu1 }
 0x192   : > { %1642 = vst.msk [vmem:[%s3019_s14 + $0x1b0] sm:$0xff] %vm1587_vm2, %v2611_v51  ;;  %v1754_v21 = vadd.f32 %v1753_v53, %v1752_v50  ;;  %v2613_v22 = vadd.f32 %v2544_v56, %v2474_v7  ;;  %v1479_v23 = vpop.f32.mrb[55].mxu0  ;;  %v1951_v24 = vadd.f32 %v1950_v20, %v1949_v54  ;;  %v1841_v26 = vmul.f32 %v2611_v51, %v2611_v51 }
 0x193   : > { %1640 = vst.msk [vmem:[%s3019_s14 + $0x1a0] sm:$0xff] %vm1587_vm2, %v2612_v55  ;;  %v1755_v16 = vsel %vm1587_vm2, %v2612_v55, 0.0  ;;  %v1839_v0 = vmul.f32 %v2612_v55, %v2612_v55  ;;  %v2614_v25 = vadd.f32 %v1479_v23, %v1134_v57  ;;  %v1759_v2 = vsel %vm1587_vm2, %v2611_v51, 0.0 }
 0x194   : > { %v1756_v58 = vadd.f32 %v1755_v16, %v1754_v21  ;;  %1643 = vst.msk [vmem:[%s3019_s14 + $0x1b8] sm:$0xff] %vm1587_vm2, %v2613_v22  ;;  %v1953_v1 = vadd.f32 %v1952_v17, %v1951_v24  ;;  %v1842_v30 = vmul.f32 %v2613_v22, %v2613_v22  ;;  %v1761_v33 = vsel %vm1587_vm2, %v2613_v22, 0.0 }
 0x195   : > { %v1954_v8 = vsel %vm1587_vm2, %v1839_v0, 0.0  ;;  %1641 = vst.msk [vmem:[%s3019_s14 + $0x1a8] sm:$0xff] %vm1587_vm2, %v2614_v25  ;;  %v1757_v18 = vsel %vm1587_vm2, %v2614_v25, 0.0  ;;  %v1840_v59 = vmul.f32 %v2614_v25, %v2614_v25  ;;  %v1958_v38 = vsel %vm1587_vm2, %v1841_v26, 0.0 }
 0x196   : > { %v1758_v9 = vadd.f32 %v1757_v18, %v1756_v58  ;;  %v2477_v27 = vpop.f32.mrb[56].mxu1  ;;  %v1955_v19 = vadd.f32 %v1954_v8, %v1953_v1  ;;  %v1960_v62 = vsel %vm1587_vm2, %v1842_v30, 0.0 }
 0x197   : > { %v1956_v28 = vsel %vm1587_vm2, %v1840_v59, 0.0  ;;  %v2547_v10 = vpop.f32.mrb[56].mxu0  ;;  %v1147_v29 = vpop.f32.mrb[57].mxu1 }
 0x198   : > { %v1760_v31 = vadd.f32 %v1759_v2, %v1758_v9  ;;  %v2615_v32 = vadd.f32 %v2547_v10, %v2477_v27  ;;  %v1492_v3 = vpop.f32.mrb[57].mxu0  ;;  %v2478_v11 = vpop.f32.mrb[58].mxu1  ;;  %v1957_v34 = vadd.f32 %v1956_v28, %v1955_v19 }
 0x199   : > { %v2616_v35 = vadd.f32 %v1492_v3, %v1147_v29  ;;  %v2548_v36 = vpop.f32.mrb[58].mxu0  ;;  %v1150_v37 = vpop.f32.mrb[59].mxu1 }
 0x19a   : > { %1646 = vst.msk [vmem:[%s3019_s14 + $0x1d0] sm:$0xff] %vm1587_vm2, %v2615_v32  ;;  %v1762_v60 = vadd.f32 %v1761_v33, %v1760_v31  ;;  %v2617_v39 = vadd.f32 %v2548_v36, %v2478_v11  ;;  %v1495_v40 = vpop.f32.mrb[59].mxu0  ;;  %v1959_v61 = vadd.f32 %v1958_v38, %v1957_v34  ;;  %v1845_v5 = vmul.f32 %v2615_v32, %v2615_v32 }
 0x19b   : > { %1644 = vst.msk [vmem:[%s3019_s14 + $0x1c0] sm:$0xff] %vm1587_vm2, %v2616_v35  ;;  %v1763_v41 = vsel %vm1587_vm2, %v2616_v35, 0.0  ;;  %v1843_v42 = vmul.f32 %v2616_v35, %v2616_v35  ;;  %v2618_v43 = vadd.f32 %v1495_v40, %v1150_v37  ;;  %v1767_v47 = vsel %vm1587_vm2, %v2615_v32, 0.0 }
 0x19c   : > { %v1764_v12 = vadd.f32 %v1763_v41, %v1762_v60  ;;  %1647 = vst.msk [vmem:[%s3019_s14 + $0x1d8] sm:$0xff] %vm1587_vm2, %v2617_v39  ;;  %v1961_v4 = vadd.f32 %v1960_v62, %v1959_v61  ;;  %v1846_v15 = vmul.f32 %v2617_v39, %v2617_v39  ;;  %v1769_v53 = vsel %vm1587_vm2, %v2617_v39, 0.0 }
 0x19d   : > { %v1962_v44 = vsel %vm1587_vm2, %v1843_v42, 0.0  ;;  %1645 = vst.msk [vmem:[%s3019_s14 + $0x1c8] sm:$0xff] %vm1587_vm2, %v2618_v43  ;;  %v1765_v13 = vsel %vm1587_vm2, %v2618_v43, 0.0  ;;  %v1844_v45 = vmul.f32 %v2618_v43, %v2618_v43  ;;  %v1966_v20 = vsel %vm1587_vm2, %v1845_v5, 0.0 }
 0x19e   : > { %v1766_v46 = vadd.f32 %v1765_v13, %v1764_v12  ;;  %v2481_v14 = vpop.f32.mrb[60].mxu1  ;;  %v1963_v48 = vadd.f32 %v1962_v44, %v1961_v4  ;;  %v1968_v17 = vsel %vm1587_vm2, %v1846_v15, 0.0 }
 0x19f   : > { %v1964_v6 = vsel %vm1587_vm2, %v1844_v45, 0.0  ;;  %v2551_v63 = vpop.f32.mrb[60].mxu0  ;;  %v1163_v49 = vpop.f32.mrb[61].mxu1 }
 0x1a0   : > { %v1768_v50 = vadd.f32 %v1767_v47, %v1766_v46  ;;  %v2619_v51 = vadd.f32 %v2551_v63, %v2481_v14  ;;  %v1508_v52 = vpop.f32.mrb[61].mxu0  ;;  %v2482_v7 = vpop.f32.mrb[62].mxu1  ;;  %v1965_v54 = vadd.f32 %v1964_v6, %v1963_v48 }
 0x1a1   : > { %v2620_v55 = vadd.f32 %v1508_v52, %v1163_v49  ;;  %v2552_v56 = vpop.f32.mrb[62].mxu0  ;;  %v1166_v57 = vpop.f32.mrb[63].mxu1 }
 0x1a2   : > { %1650 = vst.msk [vmem:[%s3019_s14 + $0x1f0] sm:$0xff] %vm1587_vm2, %v2619_v51  ;;  %v1770_v21 = vadd.f32 %v1769_v53, %v1768_v50  ;;  %v2621_v22 = vadd.f32 %v2552_v56, %v2482_v7  ;;  %v1511_v23 = vpop.f32.mrb[63].mxu0  ;;  %v1967_v24 = vadd.f32 %v1966_v20, %v1965_v54  ;;  %v1849_v26 = vmul.f32 %v2619_v51, %v2619_v51 }
 0x1a3   : > { %1648 = vst.msk [vmem:[%s3019_s14 + $0x1e0] sm:$0xff] %vm1587_vm2, %v2620_v55  ;;  %v1771_v16 = vsel %vm1587_vm2, %v2620_v55, 0.0  ;;  %v1847_v0 = vmul.f32 %v2620_v55, %v2620_v55  ;;  %v2622_v25 = vadd.f32 %v1511_v23, %v1166_v57  ;;  %v1775_v27 = vsel %vm1587_vm2, %v2619_v51, 0.0 }
 0x1a4   : > { %v1772_v58 = vadd.f32 %v1771_v16, %v1770_v21  ;;  %1651 = vst.msk [vmem:[%s3019_s14 + $0x1f8] sm:$0xff] %vm1587_vm2, %v2621_v22  ;;  %v1969_v1 = vadd.f32 %v1968_v17, %v1967_v24  ;;  %v1850_v28 = vmul.f32 %v2621_v22, %v2621_v22  ;;  %v1777_v29 = vsel %vm1587_vm2, %v2621_v22, 0.0 }
 0x1a5   : > { %v1970_v8 = vsel %vm1587_vm2, %v1847_v0, 0.0  ;;  %1649 = vst.msk [vmem:[%s3019_s14 + $0x1e8] sm:$0xff] %vm1587_vm2, %v2622_v25  ;;  %v1773_v18 = vsel %vm1587_vm2, %v2622_v25, 0.0  ;;  %v1848_v59 = vmul.f32 %v2622_v25, %v2622_v25  ;;  %v1974_v31 = vsel %vm1587_vm2, %v1849_v26, 0.0 }
 0x1a6   : > { %v1774_v9 = vadd.f32 %v1773_v18, %v1772_v58  ;;  %v1971_v2 = vadd.f32 %v1970_v8, %v1969_v1  ;;  %v1976_v11 = vsel %vm1587_vm2, %v1850_v28, 0.0 }
 0x1a7   : > { %v1972_v19 = vsel %vm1587_vm2, %v1848_v59, 0.0 }
 0x1a8   : > { %v1776_v10 = vadd.f32 %v1775_v27, %v1774_v9  ;;  %v1973_v30 = vadd.f32 %v1972_v19, %v1971_v2 }
 0x1aa   : > { %v1778_v32 = vadd.f32 %v1777_v29, %v1776_v10  ;;  %v1975_v3 = vadd.f32 %v1974_v31, %v1973_v30 }
 0x1ac   : > { %v1779_v33 = vrot.slane %v1778_v32, 4  ;;  %v1977_v34 = vadd.f32 %v1976_v11, %v1975_v3 }
 0x1ae   : > { %v1780_v35 = vadd.f32 %v1779_v33, %v1778_v32  ;;  %v1978_v36 = vrot.slane %v1977_v34, 4 }
 0x1b0   : > { %v1781_v37 = vrot.slane %v1780_v35, 2  ;;  %v1979_v38 = vadd.f32 %v1978_v36, %v1977_v34 }
 0x1b2   : > { %v1782_v60 = vadd.f32 %v1781_v37, %v1780_v35  ;;  %v1980_v39 = vrot.slane %v1979_v38, 2 }
 0x1b4   : > { %v1783_v40 = vrot.slane %v1782_v60, 1  ;;  %v1981_v61 = vadd.f32 %v1980_v39, %v1979_v38 }
 0x1b6   : > { %v1784_v41 = vadd.f32 %v1783_v40, %v1782_v60  ;;  %v1982_v42 = vrot.slane %v1981_v61, 1 }
 0x1b8   : > { %1786 = vst.msk [vmem:[%s181_s18] sm:$0x1] %vm1785_vm3, %v1784_v41  ;;  %v1983_v43 = vadd.f32 %v1982_v42, %v1981_v61 }
 0x1ba   : > { %1984 = vst.msk [vmem:[%s181_s18 + $0x1] sm:$0x1] %vm1785_vm3, %v1983_v43 }
 0x1bb PF: > { %s14_s12 = sadd.s32 1, %s2755_s12  }
 0x1bc   : > { %p11_p4 = scmp.ge.s32.totalorder %s14_s12, 4  }
 0x1be   :  { %13 = sbr.rel (!%p11_p4) target bundleno = 1 (0x1), region = 72 }

</bundles_post_ra>
